<compile_context>
chip_gen: v7x
topology: tpu7x:2x2x1
jax: 0.10.0
libtpu: 0.0.40
codegen_flags: <defaults>
</compile_context>

<pallas_src>
import functools
import math

import jax
import jax.numpy as jnp
from jax import lax
from jax.experimental import pallas as pl
from jax.experimental.pallas import tpu as pltpu


# ---------------------------------------------------------------------------
# Pallas kernel: one (batch, time-chunk) tile of the Mamba block.
# ---------------------------------------------------------------------------
def mamba_kernel(hs_ref, w_in_ref, conv_w_ref, conv_b_ref, w_dbc_ref,
                 dt_bias_ref, A_logT_ref, D_ref, w_out_ref,
                 out_ref,
                 dA_s, du_s, b_s, c_s, y_s, state_s, xbuf_s,
                 *, use_roll=True):
    T = hs_ref.shape[1]
    d_state, d_inner = A_logT_ref.shape
    K = conv_w_ref.shape[0]                       # d_conv
    PAD = xbuf_s.shape[0] - T                     # sublane-aligned halo region (=8)
    WIN = PAD + T
    MB = 8 if T % 8 == 0 else 1                   # y-store micro-block (batched vst)

    chunk = pl.program_id(1)

    # ---- per-sequence init / chunk-to-chunk carries -------------------------
    @pl.when(chunk == 0)
    def _init():
        state_s[...] = jnp.zeros_like(state_s)
        xbuf_s[pl.ds(0, PAD), :] = jnp.zeros((PAD, d_inner), jnp.float32)

    @pl.when(chunk > 0)
    def _carry_conv_halo():
        # last (K-1) pre-conv activations of the previous chunk
        tail = xbuf_s[pl.ds(PAD + T - (K - 1), K - 1), :]
        xbuf_s[pl.ds(PAD - (K - 1), K - 1), :] = tail

    # ---- in_proj (bf16 MXU, f32 accumulate) ---------------------------------
    hs = hs_ref[0].astype(jnp.bfloat16)                        # (T, D_pad)
    xz = jnp.dot(hs, w_in_ref[...], preferred_element_type=jnp.float32)
    x = xz[:, :d_inner]                                        # (T, d_inner)
    z = xz[:, d_inner:]                                        # (T, d_inner)

    # ---- causal depthwise conv1d (kernel K, left pad K-1) + SiLU ------------
    xbuf_s[pl.ds(PAD, T), :] = x                               # aligned store
    if use_roll:
        # one aligned read of the whole window; shifted taps via XLU rolls
        win = xbuf_s[...]                                      # (PAD+T, d_inner)
        acc = x * conv_w_ref[K - 1:K, :]                       # newest tap: x itself
        for k in range(K - 1):                                 # static unroll
            s = PAD - (K - 1) + k
            tap = pltpu.roll(win, shift=WIN - s, axis=0)[:T, :]
            acc = acc + tap * conv_w_ref[k:k + 1, :]
    else:
        acc = xbuf_s[pl.ds(PAD - (K - 1), T), :] * conv_w_ref[0:1, :]
        for k in range(1, K):                                  # static unroll
            acc = acc + xbuf_s[pl.ds(PAD - (K - 1) + k, T), :] * conv_w_ref[k:k + 1, :]
    acc = acc + conv_b_ref[...]
    xc = acc * jax.nn.sigmoid(acc)                             # (T, d_inner)
    xc_b = xc.astype(jnp.bfloat16)

    # ---- fused delta / B / C projection (single MXU matmul) -----------------
    x_dbc = jnp.dot(xc_b, w_dbc_ref[...], preferred_element_type=jnp.float32)
    pre = x_dbc[:, :d_inner] + dt_bias_ref[...]
    # softplus (log(1+exp) form for guaranteed Mosaic lowering)
    delta = jnp.maximum(pre, 0.0) + jnp.log(1.0 + jnp.exp(-jnp.abs(pre)))
    Bmat = x_dbc[:, d_inner:d_inner + d_state]                 # (T, d_state)
    Cmat = x_dbc[:, d_inner + d_state:]                        # (T, d_state)

    # ---- discretization: d_inner on lanes, d_state on sublanes --------------
    negA = -jnp.exp(A_logT_ref[...])                           # (d_state, d_inner) f32
    # dA stored in bf16 to halve the dominant load stream in the scan.
    dA_s[...] = jnp.exp(delta[:, None, :] * negA[None, :, :]).astype(jnp.bfloat16)
    du_s[...] = delta * xc                                     # (T, d_inner) f32
    b_s[...] = Bmat[:, :, None]                                # (T, d_state, 1)
    c_s[...] = Cmat[:, :, None]                                # (T, d_state, 1)

    # ---- sequential selective scan ------------------------------------------
    # State (f32) carried in registers; dBu formed on the fly; y accumulated in
    # MB-row register blocks and stored with one aligned (MB, d_inner) vst.
    n_blocks = T // MB

    def block_step(blk, st):
        base = pl.multiple_of(blk * MB, MB)
        rows = []
        for k in range(MB):                                    # static unroll (=MB)
            i = base + k
            st = st * dA_s[i] + du_s[pl.ds(i, 1), :] * b_s[i]  # (d_state, d_inner) f32
            rows.append(jnp.sum(st * c_s[i], axis=0, keepdims=True))
        yblk = rows[0] if MB == 1 else jnp.concatenate(rows, axis=0)
        y_s[pl.ds(base, MB), :] = yblk
        return st

    state_s[...] = lax.fori_loop(0, n_blocks, block_step, state_s[...])

    # ---- skip term, SiLU(z) gate, out_proj ----------------------------------
    y = y_s[...] + xc * D_ref[...]
    y = y * (z * jax.nn.sigmoid(z))
    out_ref[0] = jnp.dot(y.astype(jnp.bfloat16), w_out_ref[...],
                         preferred_element_type=jnp.float32)


# ---------------------------------------------------------------------------
# Wrapper: parameter plumbing + pallas_call
# ---------------------------------------------------------------------------
def _pick_chunk(L, d_inner, d_state, max_chunk=256, scratch_budget=20 << 20):
    """Largest 8-aligned divisor of L whose big per-chunk scratch fits budget."""
    def bytes_for(t):
        # bf16 dA + its f32 pre-cast temp + du + y + conv window (f32)
        return t * d_state * d_inner * 6 + (4 * t + 8) * d_inner * 4

    cands = [t for t in range(8, min(L, max_chunk) + 1, 8) if L % t == 0]
    if not cands:
        return L                                   # no 8-aligned divisor: single chunk
    fit = [t for t in cands if bytes_for(t) <= scratch_budget]
    return max(fit) if fit else min(cands)


def mamba_pallas(hs, p, chunk=None):
    B, L, D = hs.shape
    d_inner = p["D_vec"].shape[0]
    d_state = p["A_log"].shape[1]
    d_conv = p["conv_w"].shape[-1]
    dt_rank = p["w_dt"].shape[1]

    T = _pick_chunk(L, d_inner, d_state) if chunk is None else chunk
    assert L % T == 0, "sequence length must be divisible by the time chunk"
    assert T == L or T % 8 == 0, "time chunk must be a multiple of 8"
    n_chunks = L // T
    PAD = 8                                   # sublane-aligned conv halo region
    assert d_conv - 1 <= PAD

    # lane-dense d_model: pad D to a multiple of 128 (dense MXU columns on the
    # projections, unmasked lane-dense output stores).  Extra rows/cols are zero.
    D_pad = ((D + 127) // 128) * 128
    hs_p = hs if D_pad == D else jnp.pad(hs, ((0, 0), (0, 0), (0, D_pad - D)))

    bf16 = jnp.bfloat16
    # parameter prep (transpose to (in, out), fuse dt path, cast MXU weights)
    w_in_t = jnp.transpose(p["w_in"])                               # (D, 2*d_inner)
    if D_pad != D:
        w_in_t = jnp.pad(w_in_t, ((0, D_pad - D), (0, 0)))
    w_in_t = w_in_t.astype(bf16)
    conv_w_kd = jnp.transpose(p["conv_w"][:, 0, :])                 # (d_conv, d_inner)
    conv_b = p["conv_b"][None, :]                                   # (1, d_inner)
    w_delta_t = jnp.transpose(p["w_dt"] @ p["w_x"][:dt_rank, :])    # (d_inner, d_inner)
    w_bc_t = jnp.transpose(p["w_x"][dt_rank:, :])                   # (d_inner, 2*d_state)
    w_dbc = jnp.concatenate([w_delta_t, w_bc_t], axis=1).astype(bf16)
    dt_bias = p["dt_bias"][None, :]                                 # (1, d_inner)
    A_logT = jnp.transpose(p["A_log"])                              # (d_state, d_inner)
    D_row = p["D_vec"][None, :]                                     # (1, d_inner)
    w_out_t = jnp.transpose(p["w_out"])                             # (d_inner, D)
    if D_pad != D:
        w_out_t = jnp.pad(w_out_t, ((0, 0), (0, D_pad - D)))
    w_out_t = w_out_t.astype(bf16)

    args = (hs_p, w_in_t, conv_w_kd, conv_b, w_dbc, dt_bias, A_logT, D_row, w_out_t)

    def est_vmem(single_buf_weights):
        f32b, bfb = 4, 2
        scratch = (T * d_state * d_inner * bfb              # dA (bf16)
                   + 2 * T * d_inner * f32b                 # du, y
                   + 2 * T * d_state * 128 * f32b           # B, C (lane-padded (..,1))
                   + d_state * d_inner * f32b                # carried SSM state
                   + (PAD + T) * d_inner * f32b)             # conv window + halo
        wmul = 1 if single_buf_weights else 2
        weights = wmul * (bfb * (D_pad * 2 * d_inner
                                 + d_inner * (d_inner + 2 * d_state)
                                 + d_inner * D_pad)
                          + f32b * (4 * 8 + d_state) * d_inner)
        io = 2 * 2 * f32b * T * D_pad                        # double-buffered in/out
        temps = T * d_state * d_inner * f32b                 # f32 dA before bf16 cast
        return scratch + weights + io + temps

    def build(conservative):
        kern = functools.partial(mamba_kernel, use_roll=not conservative)

        def rep(arr):
            nd = arr.ndim
            idx = lambda b, c, nd=nd: (0,) * nd
            if conservative:
                return pl.BlockSpec(arr.shape, idx)
            # constant-index weights never get re-DMA'd: single-buffer them
            return pl.BlockSpec(arr.shape, idx, pipeline_mode=pl.Buffered(1))

        in_specs = ([pl.BlockSpec((1, T, D_pad), lambda b, c: (b, c, 0))]
                    + [rep(a) for a in args[1:]])
        out_specs = pl.BlockSpec((1, T, D_pad), lambda b, c: (b, c, 0))

        scratch_shapes = [
            pltpu.VMEM((T, d_state, d_inner), jnp.bfloat16),  # dA (bf16)
            pltpu.VMEM((T, d_inner), jnp.float32),            # du = delta*xc
            pltpu.VMEM((T, d_state, 1), jnp.float32),         # B, sublane layout
            pltpu.VMEM((T, d_state, 1), jnp.float32),         # C, sublane layout
            pltpu.VMEM((T, d_inner), jnp.float32),            # y accumulator
            pltpu.VMEM((d_state, d_inner), jnp.float32),      # carried SSM state
            pltpu.VMEM((PAD + T, d_inner), jnp.float32),      # conv window + halo
        ]

        # single-buffered scratch + (single|double)-buffered weights + io,
        # plus one big f32 temporary and explicit headroom (no hard 64 MiB clamp).
        vmem_limit = int(min(est_vmem(not conservative) + (8 << 20), 100 << 20))

        return pl.pallas_call(
            kern,
            out_shape=jax.ShapeDtypeStruct((B, L, D_pad), jnp.float32),
            grid_spec=pltpu.PrefetchScalarGridSpec(
                num_scalar_prefetch=0,
                grid=(B, n_chunks),
                in_specs=in_specs,
                out_specs=out_specs,
                scratch_shapes=scratch_shapes),
            compiler_params=pltpu.CompilerParams(
                # batch axis parallel (megacore engages for B >= 2 on v7x);
                # chunk axis must stay arbitrary (carried SSM state / conv halo).
                dimension_semantics=("parallel", "arbitrary"),
                vmem_limit_bytes=vmem_limit),
        )

    try:
        out = build(conservative=False)(*args)
    except Exception:
        # Fallback: double-buffered weights + slice-based conv (v2 structure);
        # numerically identical, only less VMEM-/load-efficient.
        out = build(conservative=True)(*args)

    return out[..., :D] if D_pad != D else out


# ---------------------------------------------------------------------------
# Deterministic parameter init (shapes per Mamba_.__init__)
# ---------------------------------------------------------------------------
def init_params(key, d_model=32, d_state=16, d_conv=4, expand=2,
                dt_min=0.001, dt_max=0.1, dt_init_floor=1e-4):
    d_inner = int(expand * d_model)
    dt_rank = math.ceil(d_model / 16)
    ks = jax.random.split(key, 8)

    def unif(k, shape, scale):
        return jax.random.uniform(k, shape, jnp.float32, -scale, scale)

    w_in = unif(ks[0], (2 * d_inner, d_model), 1.0 / math.sqrt(d_model))
    conv_w = unif(ks[1], (d_inner, 1, d_conv), 1.0 / math.sqrt(d_conv))
    conv_b = unif(ks[2], (d_inner,), 1.0 / math.sqrt(d_conv))
    w_x = unif(ks[3], (dt_rank + 2 * d_state, d_inner), 1.0 / math.sqrt(d_inner))

    dt_init_std = dt_rank ** (-0.5)
    w_dt = unif(ks[4], (d_inner, dt_rank), dt_init_std)

    u = jax.random.uniform(ks[5], (d_inner,), jnp.float32)
    dt = jnp.exp(u * (math.log(dt_max) - math.log(dt_min)) + math.log(dt_min))
    dt = jnp.maximum(dt, dt_init_floor)
    dt_bias = dt + jnp.log(-jnp.expm1(-dt))                   # softplus inverse

    A_log = jnp.log(jnp.broadcast_to(
        jnp.arange(1, d_state + 1, dtype=jnp.float32), (d_inner, d_state)))
    D_vec = jnp.ones((d_inner,), jnp.float32)
    w_out = unif(ks[6], (d_model, d_inner), 1.0 / math.sqrt(d_inner))

    return dict(w_in=w_in, conv_w=conv_w, conv_b=conv_b, w_x=w_x,
                w_dt=w_dt, dt_bias=dt_bias, A_log=A_log, D_vec=D_vec,
                w_out=w_out)


# ---------------------------------------------------------------------------
# Pure-JAX f32 reference (unfused, mirrors the PyTorch module) — test only
# ---------------------------------------------------------------------------
def mamba_ref(hs, p):
    B, L, D = hs.shape
    d_inner = p["D_vec"].shape[0]
    d_state = p["A_log"].shape[1]
    d_conv = p["conv_w"].shape[-1]
    dt_rank = p["w_dt"].shape[1]

    xz = jnp.einsum("bld,ed->ble", hs, p["w_in"])
    x, z = xz[..., :d_inner], xz[..., d_inner:]

    w = p["conv_w"][:, 0, :]                                  # (d_inner, d_conv)
    x_pad = jnp.pad(x, ((0, 0), (d_conv - 1, 0), (0, 0)))
    conv = p["conv_b"][None, None, :]
    for k in range(d_conv):
        conv = conv + x_pad[:, k:k + L, :] * w[:, k][None, None, :]
    xc = conv * jax.nn.sigmoid(conv)

    x_dbl = jnp.einsum("bld,ed->ble", xc, p["w_x"])
    dt_low = x_dbl[..., :dt_rank]
    Bm = x_dbl[..., dt_rank:dt_rank + d_state]
    Cm = x_dbl[..., dt_rank + d_state:]

    delta = jax.nn.softplus(
        jnp.einsum("blr,dr->bld", dt_low, p["w_dt"]) + p["dt_bias"])
    A = -jnp.exp(p["A_log"])
    dA = jnp.exp(delta[..., None] * A[None, None])            # (B,L,d_inner,d_state)
    dBu = (delta * xc)[..., None] * Bm[:, :, None, :]

    def step(s, inp):
        a, b = inp
        s = s * a + b
        return s, s

    _, states = lax.scan(step, jnp.zeros((B, d_inner, d_state), jnp.float32),
                         (jnp.moveaxis(dA, 1, 0), jnp.moveaxis(dBu, 1, 0)))
    states = jnp.moveaxis(states, 0, 1)                       # (B, L, d_inner, d_state)

    y = jnp.sum(states * Cm[:, :, None, :], axis=-1)
    y = y + xc * p["D_vec"]
    y = y * (z * jax.nn.sigmoid(z))
    return jnp.einsum("bld,ed->ble", y, p["w_out"])


if __name__ == "__main__":
    d_model, B, L = 32, 2, 16
    key = jax.random.PRNGKey(0)
    kp, kx = jax.random.split(key)

    params = init_params(kp, d_model=d_model)
    hidden_states = jax.random.normal(kx, (B, L, d_model), jnp.float32)

    # chunk=8 -> two time chunks per sequence: exercises the carried SSM state,
    # the conv-halo hand-off across chunk boundaries, and the 8-row y stores.
    out = mamba_pallas(hidden_states, params, chunk=8)
    out = jax.block_until_ready(out)

    assert out.shape == (B, L, d_model)
    assert bool(jnp.all(jnp.isfinite(out)))

    ref = mamba_ref(hidden_states, params)
    max_err = float(jnp.max(jnp.abs(out - ref)))
    # bf16 MXU operands + bf16 dA in the scan -> looser tolerance than pure f32.
    assert max_err < 5e-2, f"mismatch vs reference: max abs err = {max_err}"

    print("KERNEL_OK")
</pallas_src>

<mosaic_0001>
module attributes {stable_mosaic.version = 11 : i64} {
  func.func @mamba_kernel(%arg0: i32, %arg1: i32, %arg2: memref<1x8x128xf32, #tpu.memory_space<vmem>>, %arg3: memref<128x128xbf16, #tpu.memory_space<vmem>>, %arg4: memref<4x64xf32, #tpu.memory_space<vmem>>, %arg5: memref<1x64xf32, #tpu.memory_space<vmem>>, %arg6: memref<64x96xbf16, #tpu.memory_space<vmem>>, %arg7: memref<1x64xf32, #tpu.memory_space<vmem>>, %arg8: memref<16x64xf32, #tpu.memory_space<vmem>>, %arg9: memref<1x64xf32, #tpu.memory_space<vmem>>, %arg10: memref<64x128xbf16, #tpu.memory_space<vmem>>, %arg11: memref<1x8x128xf32, #tpu.memory_space<vmem>>, %arg12: memref<8x16x64xbf16, #tpu.memory_space<vmem>>, %arg13: memref<8x64xf32, #tpu.memory_space<vmem>>, %arg14: memref<8x16x1xf32, #tpu.memory_space<vmem>>, %arg15: memref<8x16x1xf32, #tpu.memory_space<vmem>>, %arg16: memref<8x64xf32, #tpu.memory_space<vmem>>, %arg17: memref<16x64xf32, #tpu.memory_space<vmem>>, %arg18: memref<16x64xf32, #tpu.memory_space<vmem>>) attributes {dimension_semantics = [#tpu.dimension_semantics<parallel>, #tpu.dimension_semantics<arbitrary>], iteration_bounds = array<i64: 2, 2>, scalar_prefetch = 0 : i64, scratch_operands = 7 : i64, tpu.core_type = #tpu.core_type<tc>, window_params = [{transform_indices = @transform_0, window_bounds = array<i64: 1, 8, 128>}, {pipeline_mode = #tpu.pipeline_mode<synchronous>, transform_indices = @transform_1, window_bounds = array<i64: 128, 128>}, {pipeline_mode = #tpu.pipeline_mode<synchronous>, transform_indices = @transform_2, window_bounds = array<i64: 4, 64>}, {pipeline_mode = #tpu.pipeline_mode<synchronous>, transform_indices = @transform_3, window_bounds = array<i64: 1, 64>}, {pipeline_mode = #tpu.pipeline_mode<synchronous>, transform_indices = @transform_4, window_bounds = array<i64: 64, 96>}, {pipeline_mode = #tpu.pipeline_mode<synchronous>, transform_indices = @transform_5, window_bounds = array<i64: 1, 64>}, {pipeline_mode = #tpu.pipeline_mode<synchronous>, transform_indices = @transform_6, window_bounds = array<i64: 16, 64>}, {pipeline_mode = #tpu.pipeline_mode<synchronous>, transform_indices = @transform_7, window_bounds = array<i64: 1, 64>}, {pipeline_mode = #tpu.pipeline_mode<synchronous>, transform_indices = @transform_8, window_bounds = array<i64: 64, 128>}, {transform_indices = @transform_9, window_bounds = array<i64: 1, 8, 128>}]} {
    %c0_i32 = arith.constant 0 : i32
    %0 = arith.cmpi eq, %arg1, %c0_i32 : i32
    %1 = arith.extui %0 : i1 to i32
    %c0_i32_0 = arith.constant 0 : i32
    %2 = arith.cmpi ne, %1, %c0_i32_0 : i32
    scf.if %2 {
      %cst_123 = arith.constant 0.000000e+00 : f32
      %283 = vector.broadcast %cst_123 : f32 to vector<16x64xf32>
      %c0_124 = arith.constant 0 : index
      %c0_125 = arith.constant 0 : index
      %284 = vector.load %arg17[%c0_124, %c0_125] : memref<16x64xf32, #tpu.memory_space<vmem>>, vector<16x64xf32>
      tpu.vector_store %arg17[%c0_124, %c0_125], %283 {strides = array<i32>} : memref<16x64xf32, #tpu.memory_space<vmem>>, vector<16x64xf32>,
      %cst_126 = arith.constant 0.000000e+00 : f32
      %285 = vector.broadcast %cst_126 : f32 to vector<8x64xf32>
      %c0_127 = arith.constant 0 : index
      %c0_128 = arith.constant 0 : index
      %286 = vector.load %arg18[%c0_127, %c0_128] : memref<16x64xf32, #tpu.memory_space<vmem>>, vector<8x64xf32>
      tpu.vector_store %arg18[%c0_127, %c0_128], %285 {strides = array<i32>} : memref<16x64xf32, #tpu.memory_space<vmem>>, vector<8x64xf32>,
    } else {
    }
    %c0_i32_1 = arith.constant 0 : i32
    %3 = arith.cmpi sgt, %arg1, %c0_i32_1 : i32
    %4 = arith.extui %3 : i1 to i32
    %c0_i32_2 = arith.constant 0 : i32
    %5 = arith.cmpi ne, %4, %c0_i32_2 : i32
    scf.if %5 {
      %c13 = arith.constant 13 : index
      %c0_123 = arith.constant 0 : index
      %283 = vector.load %arg18[%c13, %c0_123] : memref<16x64xf32, #tpu.memory_space<vmem>>, vector<3x64xf32>
      %c5 = arith.constant 5 : index
      %c0_124 = arith.constant 0 : index
      %284 = vector.load %arg18[%c5, %c0_124] : memref<16x64xf32, #tpu.memory_space<vmem>>, vector<3x64xf32>
      tpu.vector_store %arg18[%c5, %c0_124], %283 {strides = array<i32>} : memref<16x64xf32, #tpu.memory_space<vmem>>, vector<3x64xf32>,
    } else {
    }
    %c0 = arith.constant 0 : index
    %c0_3 = arith.constant 0 : index
    %c0_4 = arith.constant 0 : index
    %6 = vector.load %arg2[%c0, %c0_3, %c0_4] : memref<1x8x128xf32, #tpu.memory_space<vmem>>, vector<1x8x128xf32>
    %7 = vector.shape_cast %6 : vector<1x8x128xf32> to vector<8x128xf32>
    %8 = arith.truncf %7 : vector<8x128xf32> to vector<8x128xbf16>
    %c0_5 = arith.constant 0 : index
    %c0_6 = arith.constant 0 : index
    %9 = vector.load %arg3[%c0_5, %c0_6] : memref<128x128xbf16, #tpu.memory_space<vmem>>, vector<128x128xbf16>
    %cst = arith.constant dense<0.000000e+00> : vector<8x128xf32>
    %10 = tpu.matmul %8, %9, %cst {dimension_numbers = #tpu.dot_dimension_numbers<[1], [0], [0], [1], [0, 0, 1, 1], [], []>} : vector<8x128xbf16>, vector<128x128xbf16>, vector<8x128xf32> -> vector<8x128xf32>
    %11 = vector.extract_strided_slice %10 {offsets = [0, 0], sizes = [8, 64], strides = [1, 1]} : vector<8x128xf32> to vector<8x64xf32>
    %12 = vector.extract_strided_slice %10 {offsets = [0, 64], sizes = [8, 64], strides = [1, 1]} : vector<8x128xf32> to vector<8x64xf32>
    %c8 = arith.constant 8 : index
    %c0_7 = arith.constant 0 : index
    %13 = vector.load %arg18[%c8, %c0_7] : memref<16x64xf32, #tpu.memory_space<vmem>>, vector<8x64xf32>
    tpu.vector_store %arg18[%c8, %c0_7], %11 {strides = array<i32>} : memref<16x64xf32, #tpu.memory_space<vmem>>, vector<8x64xf32>,
    %c0_8 = arith.constant 0 : index
    %c0_9 = arith.constant 0 : index
    %14 = vector.load %arg18[%c0_8, %c0_9] : memref<16x64xf32, #tpu.memory_space<vmem>>, vector<16x64xf32>
    %c3 = arith.constant 3 : index
    %c0_10 = arith.constant 0 : index
    %15 = vector.load %arg4[%c3, %c0_10] : memref<4x64xf32, #tpu.memory_space<vmem>>, vector<1x64xf32>
    %16 = vector.broadcast %15 : vector<1x64xf32> to vector<8x64xf32>
    %17 = arith.mulf %11, %16 : vector<8x64xf32>
    %c11_i32 = arith.constant 11 : i32
    %18 = tpu.dynamic_rotate %14 by %c11_i32 dim 0 : vector<16x64xf32>, i32 -> vector<16x64xf32>
    %19 = vector.extract_strided_slice %18 {offsets = [0, 0], sizes = [8, 64], strides = [1, 1]} : vector<16x64xf32> to vector<8x64xf32>
    %c0_11 = arith.constant 0 : index
    %c0_12 = arith.constant 0 : index
    %20 = vector.load %arg4[%c0_11, %c0_12] : memref<4x64xf32, #tpu.memory_space<vmem>>, vector<1x64xf32>
    %21 = vector.broadcast %20 : vector<1x64xf32> to vector<8x64xf32>
    %22 = arith.mulf %19, %21 : vector<8x64xf32>
    %23 = arith.addf %17, %22 : vector<8x64xf32>
    %c10_i32 = arith.constant 10 : i32
    %24 = tpu.dynamic_rotate %14 by %c10_i32 dim 0 : vector<16x64xf32>, i32 -> vector<16x64xf32>
    %25 = vector.extract_strided_slice %24 {offsets = [0, 0], sizes = [8, 64], strides = [1, 1]} : vector<16x64xf32> to vector<8x64xf32>
    %c1 = arith.constant 1 : index
    %c0_13 = arith.constant 0 : index
    %26 = vector.load %arg4[%c1, %c0_13] : memref<4x64xf32, #tpu.memory_space<vmem>>, vector<1x64xf32>
    %27 = vector.broadcast %26 : vector<1x64xf32> to vector<8x64xf32>
    %28 = arith.mulf %25, %27 : vector<8x64xf32>
    %29 = arith.addf %23, %28 : vector<8x64xf32>
    %c9_i32 = arith.constant 9 : i32
    %30 = tpu.dynamic_rotate %14 by %c9_i32 dim 0 : vector<16x64xf32>, i32 -> vector<16x64xf32>
    %31 = vector.extract_strided_slice %30 {offsets = [0, 0], sizes = [8, 64], strides = [1, 1]} : vector<16x64xf32> to vector<8x64xf32>
    %c2 = arith.constant 2 : index
    %c0_14 = arith.constant 0 : index
    %32 = vector.load %arg4[%c2, %c0_14] : memref<4x64xf32, #tpu.memory_space<vmem>>, vector<1x64xf32>
    %33 = vector.broadcast %32 : vector<1x64xf32> to vector<8x64xf32>
    %34 = arith.mulf %31, %33 : vector<8x64xf32>
    %35 = arith.addf %29, %34 : vector<8x64xf32>
    %c0_15 = arith.constant 0 : index
    %c0_16 = arith.constant 0 : index
    %36 = vector.load %arg5[%c0_15, %c0_16] : memref<1x64xf32, #tpu.memory_space<vmem>>, vector<1x64xf32>
    %37 = vector.broadcast %36 : vector<1x64xf32> to vector<8x64xf32>
    %38 = arith.addf %35, %37 : vector<8x64xf32>
    %39 = arith.negf %38 : vector<8x64xf32>
    %40 = math.exp %39 : vector<8x64xf32>
    %cst_17 = arith.constant 1.000000e+00 : f32
    %41 = vector.broadcast %cst_17 : f32 to vector<8x64xf32>
    %42 = arith.addf %41, %40 : vector<8x64xf32>
    %43 = arith.divf %41, %42 : vector<8x64xf32>
    %44 = arith.mulf %38, %43 : vector<8x64xf32>
    %45 = arith.truncf %44 : vector<8x64xf32> to vector<8x64xbf16>
    %c0_18 = arith.constant 0 : index
    %c0_19 = arith.constant 0 : index
    %46 = vector.load %arg6[%c0_18, %c0_19] : memref<64x96xbf16, #tpu.memory_space<vmem>>, vector<64x96xbf16>
    %cst_20 = arith.constant dense<0.000000e+00> : vector<8x96xf32>
    %47 = tpu.matmul %45, %46, %cst_20 {dimension_numbers = #tpu.dot_dimension_numbers<[1], [0], [0], [1], [0, 0, 1, 1], [], []>} : vector<8x64xbf16>, vector<64x96xbf16>, vector<8x96xf32> -> vector<8x96xf32>
    %48 = vector.extract_strided_slice %47 {offsets = [0, 0], sizes = [8, 64], strides = [1, 1]} : vector<8x96xf32> to vector<8x64xf32>
    %c0_21 = arith.constant 0 : index
    %c0_22 = arith.constant 0 : index
    %49 = vector.load %arg7[%c0_21, %c0_22] : memref<1x64xf32, #tpu.memory_space<vmem>>, vector<1x64xf32>
    %50 = vector.broadcast %49 : vector<1x64xf32> to vector<8x64xf32>
    %51 = arith.addf %48, %50 : vector<8x64xf32>
    %cst_23 = arith.constant 0.000000e+00 : f32
    %52 = vector.broadcast %cst_23 : f32 to vector<8x64xf32>
    %53 = arith.maximumf %51, %52 : vector<8x64xf32>
    %54 = math.absf %51 : vector<8x64xf32>
    %cst_24 = arith.constant 0.000000e+00 : f32
    %55 = vector.broadcast %cst_24 : f32 to vector<8x64xf32>
    %56 = arith.subf %55, %54 : vector<8x64xf32>
    %57 = math.exp %56 : vector<8x64xf32>
    %cst_25 = arith.constant 1.000000e+00 : f32
    %58 = vector.broadcast %cst_25 : f32 to vector<8x64xf32>
    %59 = arith.addf %58, %57 : vector<8x64xf32>
    %60 = math.log %59 : vector<8x64xf32>
    %61 = arith.addf %53, %60 : vector<8x64xf32>
    %62 = vector.extract_strided_slice %47 {offsets = [0, 64], sizes = [8, 16], strides = [1, 1]} : vector<8x96xf32> to vector<8x16xf32>
    %63 = vector.extract_strided_slice %47 {offsets = [0, 80], sizes = [8, 16], strides = [1, 1]} : vector<8x96xf32> to vector<8x16xf32>
    %c0_26 = arith.constant 0 : index
    %c0_27 = arith.constant 0 : index
    %64 = vector.load %arg8[%c0_26, %c0_27] : memref<16x64xf32, #tpu.memory_space<vmem>>, vector<16x64xf32>
    %65 = math.exp %64 : vector<16x64xf32>
    %cst_28 = arith.constant 0.000000e+00 : f32
    %66 = vector.broadcast %cst_28 : f32 to vector<16x64xf32>
    %67 = arith.subf %66, %65 : vector<16x64xf32>
    %68 = vector.shape_cast %61 : vector<8x64xf32> to vector<8x1x64xf32>
    %69 = vector.shape_cast %67 : vector<16x64xf32> to vector<1x16x64xf32>
    %70 = vector.broadcast %68 : vector<8x1x64xf32> to vector<8x16x64xf32>
    %71 = vector.broadcast %69 : vector<1x16x64xf32> to vector<8x16x64xf32>
    %72 = arith.mulf %70, %71 : vector<8x16x64xf32>
    %73 = math.exp %72 : vector<8x16x64xf32>
    %74 = arith.truncf %73 : vector<8x16x64xf32> to vector<8x16x64xbf16>
    %c0_29 = arith.constant 0 : index
    %c0_30 = arith.constant 0 : index
    %c0_31 = arith.constant 0 : index
    %75 = vector.load %arg12[%c0_29, %c0_30, %c0_31] : memref<8x16x64xbf16, #tpu.memory_space<vmem>>, vector<8x16x64xbf16>
    tpu.vector_store %arg12[%c0_29, %c0_30, %c0_31], %74 {strides = array<i32>} : memref<8x16x64xbf16, #tpu.memory_space<vmem>>, vector<8x16x64xbf16>,
    %76 = arith.mulf %61, %44 : vector<8x64xf32>
    %c0_32 = arith.constant 0 : index
    %c0_33 = arith.constant 0 : index
    %77 = vector.load %arg13[%c0_32, %c0_33] : memref<8x64xf32, #tpu.memory_space<vmem>>, vector<8x64xf32>
    tpu.vector_store %arg13[%c0_32, %c0_33], %76 {strides = array<i32>} : memref<8x64xf32, #tpu.memory_space<vmem>>, vector<8x64xf32>,
    %78 = vector.shape_cast %62 : vector<8x16xf32> to vector<8x16x1xf32>
    %c0_34 = arith.constant 0 : index
    %c0_35 = arith.constant 0 : index
    %c0_36 = arith.constant 0 : index
    %79 = vector.load %arg14[%c0_34, %c0_35, %c0_36] : memref<8x16x1xf32, #tpu.memory_space<vmem>>, vector<8x16x1xf32>
    tpu.vector_store %arg14[%c0_34, %c0_35, %c0_36], %78 {strides = array<i32>} : memref<8x16x1xf32, #tpu.memory_space<vmem>>, vector<8x16x1xf32>,
    %80 = vector.shape_cast %63 : vector<8x16xf32> to vector<8x16x1xf32>
    %c0_37 = arith.constant 0 : index
    %c0_38 = arith.constant 0 : index
    %c0_39 = arith.constant 0 : index
    %81 = vector.load %arg15[%c0_37, %c0_38, %c0_39] : memref<8x16x1xf32, #tpu.memory_space<vmem>>, vector<8x16x1xf32>
    tpu.vector_store %arg15[%c0_37, %c0_38, %c0_39], %80 {strides = array<i32>} : memref<8x16x1xf32, #tpu.memory_space<vmem>>, vector<8x16x1xf32>,
    %c0_40 = arith.constant 0 : index
    %c0_41 = arith.constant 0 : index
    %82 = vector.load %arg17[%c0_40, %c0_41] : memref<16x64xf32, #tpu.memory_space<vmem>>, vector<16x64xf32>
    %c0_i32_42 = arith.constant 0 : i32
    %c8_i32 = arith.constant 8 : i32
    %83 = arith.muli %c0_i32_42, %c8_i32 : i32
    %84 = tpu.assume_multiple %83, 8 : i32
    %c0_i32_43 = arith.constant 0 : i32
    %85 = arith.addi %84, %c0_i32_43 : i32
    %86 = arith.index_cast %85 : i32 to index
    %c0_44 = arith.constant 0 : index
    %c0_45 = arith.constant 0 : index
    %87 = vector.load %arg12[%86, %c0_44, %c0_45] : memref<8x16x64xbf16, #tpu.memory_space<vmem>>, vector<1x16x64xbf16>
    %88 = vector.shape_cast %87 : vector<1x16x64xbf16> to vector<16x64xbf16>
    %89 = arith.extf %88 : vector<16x64xbf16> to vector<16x64xf32>
    %90 = arith.mulf %82, %89 : vector<16x64xf32>
    %91 = arith.index_cast %85 : i32 to index
    %c0_46 = arith.constant 0 : index
    %92 = vector.load %arg13[%91, %c0_46] : memref<8x64xf32, #tpu.memory_space<vmem>>, vector<1x64xf32>
    %93 = arith.index_cast %85 : i32 to index
    %c0_47 = arith.constant 0 : index
    %c0_48 = arith.constant 0 : index
    %94 = vector.load %arg14[%93, %c0_47, %c0_48] : memref<8x16x1xf32, #tpu.memory_space<vmem>>, vector<1x16x1xf32>
    %95 = vector.shape_cast %94 : vector<1x16x1xf32> to vector<16x1xf32>
    %96 = vector.broadcast %92 : vector<1x64xf32> to vector<16x64xf32>
    %97 = vector.broadcast %95 : vector<16x1xf32> to vector<16x64xf32>
    %98 = arith.mulf %96, %97 : vector<16x64xf32>
    %99 = arith.addf %90, %98 : vector<16x64xf32>
    %100 = arith.index_cast %85 : i32 to index
    %c0_49 = arith.constant 0 : index
    %c0_50 = arith.constant 0 : index
    %101 = vector.load %arg15[%100, %c0_49, %c0_50] : memref<8x16x1xf32, #tpu.memory_space<vmem>>, vector<1x16x1xf32>
    %102 = vector.shape_cast %101 : vector<1x16x1xf32> to vector<16x1xf32>
    %103 = vector.broadcast %102 : vector<16x1xf32> to vector<16x64xf32>
    %104 = arith.mulf %99, %103 : vector<16x64xf32>
    %cst_51 = arith.constant dense<0.000000e+00> : vector<64xf32>
    %105 = vector.multi_reduction <add>, %104, %cst_51 [0] : vector<16x64xf32> to vector<64xf32>
    %106 = vector.shape_cast %105 : vector<64xf32> to vector<1x64xf32>
    %c1_i32 = arith.constant 1 : i32
    %107 = arith.addi %84, %c1_i32 : i32
    %108 = arith.index_cast %107 : i32 to index
    %c0_52 = arith.constant 0 : index
    %c0_53 = arith.constant 0 : index
    %109 = vector.load %arg12[%108, %c0_52, %c0_53] : memref<8x16x64xbf16, #tpu.memory_space<vmem>>, vector<1x16x64xbf16>
    %110 = vector.shape_cast %109 : vector<1x16x64xbf16> to vector<16x64xbf16>
    %111 = arith.extf %110 : vector<16x64xbf16> to vector<16x64xf32>
    %112 = arith.mulf %99, %111 : vector<16x64xf32>
    %113 = arith.index_cast %107 : i32 to index
    %c0_54 = arith.constant 0 : index
    %114 = vector.load %arg13[%113, %c0_54] : memref<8x64xf32, #tpu.memory_space<vmem>>, vector<1x64xf32>
    %115 = arith.index_cast %107 : i32 to index
    %c0_55 = arith.constant 0 : index
    %c0_56 = arith.constant 0 : index
    %116 = vector.load %arg14[%115, %c0_55, %c0_56] : memref<8x16x1xf32, #tpu.memory_space<vmem>>, vector<1x16x1xf32>
    %117 = vector.shape_cast %116 : vector<1x16x1xf32> to vector<16x1xf32>
    %118 = vector.broadcast %114 : vector<1x64xf32> to vector<16x64xf32>
    %119 = vector.broadcast %117 : vector<16x1xf32> to vector<16x64xf32>
    %120 = arith.mulf %118, %119 : vector<16x64xf32>
    %121 = arith.addf %112, %120 : vector<16x64xf32>
    %122 = arith.index_cast %107 : i32 to index
    %c0_57 = arith.constant 0 : index
    %c0_58 = arith.constant 0 : index
    %123 = vector.load %arg15[%122, %c0_57, %c0_58] : memref<8x16x1xf32, #tpu.memory_space<vmem>>, vector<1x16x1xf32>
    %124 = vector.shape_cast %123 : vector<1x16x1xf32> to vector<16x1xf32>
    %125 = vector.broadcast %124 : vector<16x1xf32> to vector<16x64xf32>
    %126 = arith.mulf %121, %125 : vector<16x64xf32>
    %cst_59 = arith.constant dense<0.000000e+00> : vector<64xf32>
    %127 = vector.multi_reduction <add>, %126, %cst_59 [0] : vector<16x64xf32> to vector<64xf32>
    %128 = vector.shape_cast %127 : vector<64xf32> to vector<1x64xf32>
    %c2_i32 = arith.constant 2 : i32
    %129 = arith.addi %84, %c2_i32 : i32
    %130 = arith.index_cast %129 : i32 to index
    %c0_60 = arith.constant 0 : index
    %c0_61 = arith.constant 0 : index
    %131 = vector.load %arg12[%130, %c0_60, %c0_61] : memref<8x16x64xbf16, #tpu.memory_space<vmem>>, vector<1x16x64xbf16>
    %132 = vector.shape_cast %131 : vector<1x16x64xbf16> to vector<16x64xbf16>
    %133 = arith.extf %132 : vector<16x64xbf16> to vector<16x64xf32>
    %134 = arith.mulf %121, %133 : vector<16x64xf32>
    %135 = arith.index_cast %129 : i32 to index
    %c0_62 = arith.constant 0 : index
    %136 = vector.load %arg13[%135, %c0_62] : memref<8x64xf32, #tpu.memory_space<vmem>>, vector<1x64xf32>
    %137 = arith.index_cast %129 : i32 to index
    %c0_63 = arith.constant 0 : index
    %c0_64 = arith.constant 0 : index
    %138 = vector.load %arg14[%137, %c0_63, %c0_64] : memref<8x16x1xf32, #tpu.memory_space<vmem>>, vector<1x16x1xf32>
    %139 = vector.shape_cast %138 : vector<1x16x1xf32> to vector<16x1xf32>
    %140 = vector.broadcast %136 : vector<1x64xf32> to vector<16x64xf32>
    %141 = vector.broadcast %139 : vector<16x1xf32> to vector<16x64xf32>
    %142 = arith.mulf %140, %141 : vector<16x64xf32>
    %143 = arith.addf %134, %142 : vector<16x64xf32>
    %144 = arith.index_cast %129 : i32 to index
    %c0_65 = arith.constant 0 : index
    %c0_66 = arith.constant 0 : index
    %145 = vector.load %arg15[%144, %c0_65, %c0_66] : memref<8x16x1xf32, #tpu.memory_space<vmem>>, vector<1x16x1xf32>
    %146 = vector.shape_cast %145 : vector<1x16x1xf32> to vector<16x1xf32>
    %147 = vector.broadcast %146 : vector<16x1xf32> to vector<16x64xf32>
    %148 = arith.mulf %143, %147 : vector<16x64xf32>
    %cst_67 = arith.constant dense<0.000000e+00> : vector<64xf32>
    %149 = vector.multi_reduction <add>, %148, %cst_67 [0] : vector<16x64xf32> to vector<64xf32>
    %150 = vector.shape_cast %149 : vector<64xf32> to vector<1x64xf32>
    %c3_i32 = arith.constant 3 : i32
    %151 = arith.addi %84, %c3_i32 : i32
    %152 = arith.index_cast %151 : i32 to index
    %c0_68 = arith.constant 0 : index
    %c0_69 = arith.constant 0 : index
    %153 = vector.load %arg12[%152, %c0_68, %c0_69] : memref<8x16x64xbf16, #tpu.memory_space<vmem>>, vector<1x16x64xbf16>
    %154 = vector.shape_cast %153 : vector<1x16x64xbf16> to vector<16x64xbf16>
    %155 = arith.extf %154 : vector<16x64xbf16> to vector<16x64xf32>
    %156 = arith.mulf %143, %155 : vector<16x64xf32>
    %157 = arith.index_cast %151 : i32 to index
    %c0_70 = arith.constant 0 : index
    %158 = vector.load %arg13[%157, %c0_70] : memref<8x64xf32, #tpu.memory_space<vmem>>, vector<1x64xf32>
    %159 = arith.index_cast %151 : i32 to index
    %c0_71 = arith.constant 0 : index
    %c0_72 = arith.constant 0 : index
    %160 = vector.load %arg14[%159, %c0_71, %c0_72] : memref<8x16x1xf32, #tpu.memory_space<vmem>>, vector<1x16x1xf32>
    %161 = vector.shape_cast %160 : vector<1x16x1xf32> to vector<16x1xf32>
    %162 = vector.broadcast %158 : vector<1x64xf32> to vector<16x64xf32>
    %163 = vector.broadcast %161 : vector<16x1xf32> to vector<16x64xf32>
    %164 = arith.mulf %162, %163 : vector<16x64xf32>
    %165 = arith.addf %156, %164 : vector<16x64xf32>
    %166 = arith.index_cast %151 : i32 to index
    %c0_73 = arith.constant 0 : index
    %c0_74 = arith.constant 0 : index
    %167 = vector.load %arg15[%166, %c0_73, %c0_74] : memref<8x16x1xf32, #tpu.memory_space<vmem>>, vector<1x16x1xf32>
    %168 = vector.shape_cast %167 : vector<1x16x1xf32> to vector<16x1xf32>
    %169 = vector.broadcast %168 : vector<16x1xf32> to vector<16x64xf32>
    %170 = arith.mulf %165, %169 : vector<16x64xf32>
    %cst_75 = arith.constant dense<0.000000e+00> : vector<64xf32>
    %171 = vector.multi_reduction <add>, %170, %cst_75 [0] : vector<16x64xf32> to vector<64xf32>
    %172 = vector.shape_cast %171 : vector<64xf32> to vector<1x64xf32>
    %c4_i32 = arith.constant 4 : i32
    %173 = arith.addi %84, %c4_i32 : i32
    %174 = arith.index_cast %173 : i32 to index
    %c0_76 = arith.constant 0 : index
    %c0_77 = arith.constant 0 : index
    %175 = vector.load %arg12[%174, %c0_76, %c0_77] : memref<8x16x64xbf16, #tpu.memory_space<vmem>>, vector<1x16x64xbf16>
    %176 = vector.shape_cast %175 : vector<1x16x64xbf16> to vector<16x64xbf16>
    %177 = arith.extf %176 : vector<16x64xbf16> to vector<16x64xf32>
    %178 = arith.mulf %165, %177 : vector<16x64xf32>
    %179 = arith.index_cast %173 : i32 to index
    %c0_78 = arith.constant 0 : index
    %180 = vector.load %arg13[%179, %c0_78] : memref<8x64xf32, #tpu.memory_space<vmem>>, vector<1x64xf32>
    %181 = arith.index_cast %173 : i32 to index
    %c0_79 = arith.constant 0 : index
    %c0_80 = arith.constant 0 : index
    %182 = vector.load %arg14[%181, %c0_79, %c0_80] : memref<8x16x1xf32, #tpu.memory_space<vmem>>, vector<1x16x1xf32>
    %183 = vector.shape_cast %182 : vector<1x16x1xf32> to vector<16x1xf32>
    %184 = vector.broadcast %180 : vector<1x64xf32> to vector<16x64xf32>
    %185 = vector.broadcast %183 : vector<16x1xf32> to vector<16x64xf32>
    %186 = arith.mulf %184, %185 : vector<16x64xf32>
    %187 = arith.addf %178, %186 : vector<16x64xf32>
    %188 = arith.index_cast %173 : i32 to index
    %c0_81 = arith.constant 0 : index
    %c0_82 = arith.constant 0 : index
    %189 = vector.load %arg15[%188, %c0_81, %c0_82] : memref<8x16x1xf32, #tpu.memory_space<vmem>>, vector<1x16x1xf32>
    %190 = vector.shape_cast %189 : vector<1x16x1xf32> to vector<16x1xf32>
    %191 = vector.broadcast %190 : vector<16x1xf32> to vector<16x64xf32>
    %192 = arith.mulf %187, %191 : vector<16x64xf32>
    %cst_83 = arith.constant dense<0.000000e+00> : vector<64xf32>
    %193 = vector.multi_reduction <add>, %192, %cst_83 [0] : vector<16x64xf32> to vector<64xf32>
    %194 = vector.shape_cast %193 : vector<64xf32> to vector<1x64xf32>
    %c5_i32 = arith.constant 5 : i32
    %195 = arith.addi %84, %c5_i32 : i32
    %196 = arith.index_cast %195 : i32 to index
    %c0_84 = arith.constant 0 : index
    %c0_85 = arith.constant 0 : index
    %197 = vector.load %arg12[%196, %c0_84, %c0_85] : memref<8x16x64xbf16, #tpu.memory_space<vmem>>, vector<1x16x64xbf16>
    %198 = vector.shape_cast %197 : vector<1x16x64xbf16> to vector<16x64xbf16>
    %199 = arith.extf %198 : vector<16x64xbf16> to vector<16x64xf32>
    %200 = arith.mulf %187, %199 : vector<16x64xf32>
    %201 = arith.index_cast %195 : i32 to index
    %c0_86 = arith.constant 0 : index
    %202 = vector.load %arg13[%201, %c0_86] : memref<8x64xf32, #tpu.memory_space<vmem>>, vector<1x64xf32>
    %203 = arith.index_cast %195 : i32 to index
    %c0_87 = arith.constant 0 : index
    %c0_88 = arith.constant 0 : index
    %204 = vector.load %arg14[%203, %c0_87, %c0_88] : memref<8x16x1xf32, #tpu.memory_space<vmem>>, vector<1x16x1xf32>
    %205 = vector.shape_cast %204 : vector<1x16x1xf32> to vector<16x1xf32>
    %206 = vector.broadcast %202 : vector<1x64xf32> to vector<16x64xf32>
    %207 = vector.broadcast %205 : vector<16x1xf32> to vector<16x64xf32>
    %208 = arith.mulf %206, %207 : vector<16x64xf32>
    %209 = arith.addf %200, %208 : vector<16x64xf32>
    %210 = arith.index_cast %195 : i32 to index
    %c0_89 = arith.constant 0 : index
    %c0_90 = arith.constant 0 : index
    %211 = vector.load %arg15[%210, %c0_89, %c0_90] : memref<8x16x1xf32, #tpu.memory_space<vmem>>, vector<1x16x1xf32>
    %212 = vector.shape_cast %211 : vector<1x16x1xf32> to vector<16x1xf32>
    %213 = vector.broadcast %212 : vector<16x1xf32> to vector<16x64xf32>
    %214 = arith.mulf %209, %213 : vector<16x64xf32>
    %cst_91 = arith.constant dense<0.000000e+00> : vector<64xf32>
    %215 = vector.multi_reduction <add>, %214, %cst_91 [0] : vector<16x64xf32> to vector<64xf32>
    %216 = vector.shape_cast %215 : vector<64xf32> to vector<1x64xf32>
    %c6_i32 = arith.constant 6 : i32
    %217 = arith.addi %84, %c6_i32 : i32
    %218 = arith.index_cast %217 : i32 to index
    %c0_92 = arith.constant 0 : index
    %c0_93 = arith.constant 0 : index
    %219 = vector.load %arg12[%218, %c0_92, %c0_93] : memref<8x16x64xbf16, #tpu.memory_space<vmem>>, vector<1x16x64xbf16>
    %220 = vector.shape_cast %219 : vector<1x16x64xbf16> to vector<16x64xbf16>
    %221 = arith.extf %220 : vector<16x64xbf16> to vector<16x64xf32>
    %222 = arith.mulf %209, %221 : vector<16x64xf32>
    %223 = arith.index_cast %217 : i32 to index
    %c0_94 = arith.constant 0 : index
    %224 = vector.load %arg13[%223, %c0_94] : memref<8x64xf32, #tpu.memory_space<vmem>>, vector<1x64xf32>
    %225 = arith.index_cast %217 : i32 to index
    %c0_95 = arith.constant 0 : index
    %c0_96 = arith.constant 0 : index
    %226 = vector.load %arg14[%225, %c0_95, %c0_96] : memref<8x16x1xf32, #tpu.memory_space<vmem>>, vector<1x16x1xf32>
    %227 = vector.shape_cast %226 : vector<1x16x1xf32> to vector<16x1xf32>
    %228 = vector.broadcast %224 : vector<1x64xf32> to vector<16x64xf32>
    %229 = vector.broadcast %227 : vector<16x1xf32> to vector<16x64xf32>
    %230 = arith.mulf %228, %229 : vector<16x64xf32>
    %231 = arith.addf %222, %230 : vector<16x64xf32>
    %232 = arith.index_cast %217 : i32 to index
    %c0_97 = arith.constant 0 : index
    %c0_98 = arith.constant 0 : index
    %233 = vector.load %arg15[%232, %c0_97, %c0_98] : memref<8x16x1xf32, #tpu.memory_space<vmem>>, vector<1x16x1xf32>
    %234 = vector.shape_cast %233 : vector<1x16x1xf32> to vector<16x1xf32>
    %235 = vector.broadcast %234 : vector<16x1xf32> to vector<16x64xf32>
    %236 = arith.mulf %231, %235 : vector<16x64xf32>
    %cst_99 = arith.constant dense<0.000000e+00> : vector<64xf32>
    %237 = vector.multi_reduction <add>, %236, %cst_99 [0] : vector<16x64xf32> to vector<64xf32>
    %238 = vector.shape_cast %237 : vector<64xf32> to vector<1x64xf32>
    %c7_i32 = arith.constant 7 : i32
    %239 = arith.addi %84, %c7_i32 : i32
    %240 = arith.index_cast %239 : i32 to index
    %c0_100 = arith.constant 0 : index
    %c0_101 = arith.constant 0 : index
    %241 = vector.load %arg12[%240, %c0_100, %c0_101] : memref<8x16x64xbf16, #tpu.memory_space<vmem>>, vector<1x16x64xbf16>
    %242 = vector.shape_cast %241 : vector<1x16x64xbf16> to vector<16x64xbf16>
    %243 = arith.extf %242 : vector<16x64xbf16> to vector<16x64xf32>
    %244 = arith.mulf %231, %243 : vector<16x64xf32>
    %245 = arith.index_cast %239 : i32 to index
    %c0_102 = arith.constant 0 : index
    %246 = vector.load %arg13[%245, %c0_102] : memref<8x64xf32, #tpu.memory_space<vmem>>, vector<1x64xf32>
    %247 = arith.index_cast %239 : i32 to index
    %c0_103 = arith.constant 0 : index
    %c0_104 = arith.constant 0 : index
    %248 = vector.load %arg14[%247, %c0_103, %c0_104] : memref<8x16x1xf32, #tpu.memory_space<vmem>>, vector<1x16x1xf32>
    %249 = vector.shape_cast %248 : vector<1x16x1xf32> to vector<16x1xf32>
    %250 = vector.broadcast %246 : vector<1x64xf32> to vector<16x64xf32>
    %251 = vector.broadcast %249 : vector<16x1xf32> to vector<16x64xf32>
    %252 = arith.mulf %250, %251 : vector<16x64xf32>
    %253 = arith.addf %244, %252 : vector<16x64xf32>
    %254 = arith.index_cast %239 : i32 to index
    %c0_105 = arith.constant 0 : index
    %c0_106 = arith.constant 0 : index
    %255 = vector.load %arg15[%254, %c0_105, %c0_106] : memref<8x16x1xf32, #tpu.memory_space<vmem>>, vector<1x16x1xf32>
    %256 = vector.shape_cast %255 : vector<1x16x1xf32> to vector<16x1xf32>
    %257 = vector.broadcast %256 : vector<16x1xf32> to vector<16x64xf32>
    %258 = arith.mulf %253, %257 : vector<16x64xf32>
    %cst_107 = arith.constant dense<0.000000e+00> : vector<64xf32>
    %259 = vector.multi_reduction <add>, %258, %cst_107 [0] : vector<16x64xf32> to vector<64xf32>
    %260 = vector.shape_cast %259 : vector<64xf32> to vector<1x64xf32>
    %261 = tpu.concatenate %106, %128, %150, %172, %194, %216, %238, %260 in 0 : vector<1x64xf32>, vector<1x64xf32>, vector<1x64xf32>, vector<1x64xf32>, vector<1x64xf32>, vector<1x64xf32>, vector<1x64xf32>, vector<1x64xf32> -> vector<8x64xf32>
    %262 = arith.index_cast %84 : i32 to index
    %c0_108 = arith.constant 0 : index
    %263 = vector.load %arg16[%262, %c0_108] : memref<8x64xf32, #tpu.memory_space<vmem>>, vector<8x64xf32>
    tpu.vector_store %arg16[%262, %c0_108], %261 {strides = array<i32>} : memref<8x64xf32, #tpu.memory_space<vmem>>, vector<8x64xf32>,
    %c1_i32_109 = arith.constant 1 : i32
    %c0_110 = arith.constant 0 : index
    %c0_111 = arith.constant 0 : index
    %264 = vector.load %arg17[%c0_110, %c0_111] : memref<16x64xf32, #tpu.memory_space<vmem>>, vector<16x64xf32>
    tpu.vector_store %arg17[%c0_110, %c0_111], %253 {strides = array<i32>} : memref<16x64xf32, #tpu.memory_space<vmem>>, vector<16x64xf32>,
    %c0_112 = arith.constant 0 : index
    %c0_113 = arith.constant 0 : index
    %265 = vector.load %arg16[%c0_112, %c0_113] : memref<8x64xf32, #tpu.memory_space<vmem>>, vector<8x64xf32>
    %c0_114 = arith.constant 0 : index
    %c0_115 = arith.constant 0 : index
    %266 = vector.load %arg9[%c0_114, %c0_115] : memref<1x64xf32, #tpu.memory_space<vmem>>, vector<1x64xf32>
    %267 = vector.broadcast %266 : vector<1x64xf32> to vector<8x64xf32>
    %268 = arith.mulf %44, %267 : vector<8x64xf32>
    %269 = arith.addf %265, %268 : vector<8x64xf32>
    %270 = arith.negf %12 : vector<8x64xf32>
    %271 = math.exp %270 : vector<8x64xf32>
    %cst_116 = arith.constant 1.000000e+00 : f32
    %272 = vector.broadcast %cst_116 : f32 to vector<8x64xf32>
    %273 = arith.addf %272, %271 : vector<8x64xf32>
    %274 = arith.divf %272, %273 : vector<8x64xf32>
    %275 = arith.mulf %12, %274 : vector<8x64xf32>
    %276 = arith.mulf %269, %275 : vector<8x64xf32>
    %277 = arith.truncf %276 : vector<8x64xf32> to vector<8x64xbf16>
    %c0_117 = arith.constant 0 : index
    %c0_118 = arith.constant 0 : index
    %278 = vector.load %arg10[%c0_117, %c0_118] : memref<64x128xbf16, #tpu.memory_space<vmem>>, vector<64x128xbf16>
    %cst_119 = arith.constant dense<0.000000e+00> : vector<8x128xf32>
    %279 = tpu.matmul %277, %278, %cst_119 {dimension_numbers = #tpu.dot_dimension_numbers<[1], [0], [0], [1], [0, 0, 1, 1], [], []>} : vector<8x64xbf16>, vector<64x128xbf16>, vector<8x128xf32> -> vector<8x128xf32>
    %c0_120 = arith.constant 0 : index
    %c0_121 = arith.constant 0 : index
    %c0_122 = arith.constant 0 : index
    %280 = vector.load %arg11[%c0_120, %c0_121, %c0_122] : memref<1x8x128xf32, #tpu.memory_space<vmem>>, vector<1x8x128xf32>
    %281 = vector.shape_cast %280 : vector<1x8x128xf32> to vector<8x128xf32>
    %282 = vector.shape_cast %279 : vector<8x128xf32> to vector<1x8x128xf32>
    tpu.vector_store %arg11[%c0_120, %c0_121, %c0_122], %282 {strides = array<i32>} : memref<1x8x128xf32, #tpu.memory_space<vmem>>, vector<1x8x128xf32>,
    return
  }
  func.func @transform_0(%arg0: i32, %arg1: i32) -> (i32, i32, i32) {
    %c0_i32 = arith.constant 0 : i32
    %c0_i32_0 = arith.constant 0 : i32
    return %arg0, %arg1, %c0_i32 : i32, i32, i32
  }
  func.func @transform_1(%arg0: i32, %arg1: i32) -> (i32, i32) {
    %c0_i32 = arith.constant 0 : i32
    %c0_i32_0 = arith.constant 0 : i32
    %c0_i32_1 = arith.constant 0 : i32
    return %c0_i32, %c0_i32_0 : i32, i32
  }
  func.func @transform_2(%arg0: i32, %arg1: i32) -> (i32, i32) {
    %c0_i32 = arith.constant 0 : i32
    %c0_i32_0 = arith.constant 0 : i32
    %c0_i32_1 = arith.constant 0 : i32
    return %c0_i32, %c0_i32_0 : i32, i32
  }
  func.func @transform_3(%arg0: i32, %arg1: i32) -> (i32, i32) {
    %c0_i32 = arith.constant 0 : i32
    %c0_i32_0 = arith.constant 0 : i32
    %c0_i32_1 = arith.constant 0 : i32
    return %c0_i32, %c0_i32_0 : i32, i32
  }
  func.func @transform_4(%arg0: i32, %arg1: i32) -> (i32, i32) {
    %c0_i32 = arith.constant 0 : i32
    %c0_i32_0 = arith.constant 0 : i32
    %c0_i32_1 = arith.constant 0 : i32
    return %c0_i32, %c0_i32_0 : i32, i32
  }
  func.func @transform_5(%arg0: i32, %arg1: i32) -> (i32, i32) {
    %c0_i32 = arith.constant 0 : i32
    %c0_i32_0 = arith.constant 0 : i32
    %c0_i32_1 = arith.constant 0 : i32
    return %c0_i32, %c0_i32_0 : i32, i32
  }
  func.func @transform_6(%arg0: i32, %arg1: i32) -> (i32, i32) {
    %c0_i32 = arith.constant 0 : i32
    %c0_i32_0 = arith.constant 0 : i32
    %c0_i32_1 = arith.constant 0 : i32
    return %c0_i32, %c0_i32_0 : i32, i32
  }
  func.func @transform_7(%arg0: i32, %arg1: i32) -> (i32, i32) {
    %c0_i32 = arith.constant 0 : i32
    %c0_i32_0 = arith.constant 0 : i32
    %c0_i32_1 = arith.constant 0 : i32
    return %c0_i32, %c0_i32_0 : i32, i32
  }
  func.func @transform_8(%arg0: i32, %arg1: i32) -> (i32, i32) {
    %c0_i32 = arith.constant 0 : i32
    %c0_i32_0 = arith.constant 0 : i32
    %c0_i32_1 = arith.constant 0 : i32
    return %c0_i32, %c0_i32_0 : i32, i32
  }
  func.func @transform_9(%arg0: i32, %arg1: i32) -> (i32, i32, i32) {
    %c0_i32 = arith.constant 0 : i32
    %c0_i32_0 = arith.constant 0 : i32
    return %arg0, %arg1, %c0_i32 : i32, i32, i32
  }
}

module attributes {stable_mosaic.version = 11 : i64} {
  func.func @mamba_kernel(%arg0: i32, %arg1: i32, %arg2: memref<1x8x128xf32, #tpu.memory_space<vmem>>, %arg3: memref<128x128xbf16, #tpu.memory_space<vmem>>, %arg4: memref<4x64xf32, #tpu.memory_space<vmem>>, %arg5: memref<1x64xf32, #tpu.memory_space<vmem>>, %arg6: memref<64x96xbf16, #tpu.memory_space<vmem>>, %arg7: memref<1x64xf32, #tpu.memory_space<vmem>>, %arg8: memref<16x64xf32, #tpu.memory_space<vmem>>, %arg9: memref<1x64xf32, #tpu.memory_space<vmem>>, %arg10: memref<64x128xbf16, #tpu.memory_space<vmem>>, %arg11: memref<1x8x128xf32, #tpu.memory_space<vmem>>, %arg12: memref<8x16x64xbf16, #tpu.memory_space<vmem>>, %arg13: memref<8x64xf32, #tpu.memory_space<vmem>>, %arg14: memref<8x16x1xf32, #tpu.memory_space<vmem>>, %arg15: memref<8x16x1xf32, #tpu.memory_space<vmem>>, %arg16: memref<8x64xf32, #tpu.memory_space<vmem>>, %arg17: memref<16x64xf32, #tpu.memory_space<vmem>>, %arg18: memref<16x64xf32, #tpu.memory_space<vmem>>) attributes {dimension_semantics = [#tpu.dimension_semantics<parallel>, #tpu.dimension_semantics<arbitrary>], iteration_bounds = array<i64: 2, 2>, scalar_prefetch = 0 : i64, scratch_operands = 7 : i64, tpu.core_type = #tpu.core_type<tc>, window_params = [{transform_indices = @transform_0, window_bounds = array<i64: 1, 8, 128>}, {pipeline_mode = #tpu.pipeline_mode<synchronous>, transform_indices = @transform_1, window_bounds = array<i64: 128, 128>}, {pipeline_mode = #tpu.pipeline_mode<synchronous>, transform_indices = @transform_2, window_bounds = array<i64: 4, 64>}, {pipeline_mode = #tpu.pipeline_mode<synchronous>, transform_indices = @transform_3, window_bounds = array<i64: 1, 64>}, {pipeline_mode = #tpu.pipeline_mode<synchronous>, transform_indices = @transform_4, window_bounds = array<i64: 64, 96>}, {pipeline_mode = #tpu.pipeline_mode<synchronous>, transform_indices = @transform_5, window_bounds = array<i64: 1, 64>}, {pipeline_mode = #tpu.pipeline_mode<synchronous>, transform_indices = @transform_6, window_bounds = array<i64: 16, 64>}, {pipeline_mode = #tpu.pipeline_mode<synchronous>, transform_indices = @transform_7, window_bounds = array<i64: 1, 64>}, {pipeline_mode = #tpu.pipeline_mode<synchronous>, transform_indices = @transform_8, window_bounds = array<i64: 64, 128>}, {transform_indices = @transform_9, window_bounds = array<i64: 1, 8, 128>}]} {
    %c0_i32 = arith.constant 0 : i32
    %0 = arith.cmpi eq, %arg1, %c0_i32 : i32
    %1 = arith.extui %0 : i1 to i32
    %c0_i32_0 = arith.constant 0 : i32
    %2 = arith.cmpi ne, %1, %c0_i32_0 : i32
    scf.if %2 {
      %cst_126 = arith.constant 0.000000e+00 : f32
      %280 = vector.broadcast %cst_126 : f32 to vector<16x64xf32>
      %c0_127 = arith.constant 0 : index
      %c0_128 = arith.constant 0 : index
      %281 = vector.load %arg17[%c0_127, %c0_128] : memref<16x64xf32, #tpu.memory_space<vmem>>, vector<16x64xf32>
      tpu.vector_store %arg17[%c0_127, %c0_128], %280 {strides = array<i32>} : memref<16x64xf32, #tpu.memory_space<vmem>>, vector<16x64xf32>,
      %cst_129 = arith.constant 0.000000e+00 : f32
      %282 = vector.broadcast %cst_129 : f32 to vector<8x64xf32>
      %c0_130 = arith.constant 0 : index
      %c0_131 = arith.constant 0 : index
      %283 = vector.load %arg18[%c0_130, %c0_131] : memref<16x64xf32, #tpu.memory_space<vmem>>, vector<8x64xf32>
      tpu.vector_store %arg18[%c0_130, %c0_131], %282 {strides = array<i32>} : memref<16x64xf32, #tpu.memory_space<vmem>>, vector<8x64xf32>,
    } else {
    }
    %c0_i32_1 = arith.constant 0 : i32
    %3 = arith.cmpi sgt, %arg1, %c0_i32_1 : i32
    %4 = arith.extui %3 : i1 to i32
    %c0_i32_2 = arith.constant 0 : i32
    %5 = arith.cmpi ne, %4, %c0_i32_2 : i32
    scf.if %5 {
      %c13 = arith.constant 13 : index
      %c0_126 = arith.constant 0 : index
      %280 = vector.load %arg18[%c13, %c0_126] : memref<16x64xf32, #tpu.memory_space<vmem>>, vector<3x64xf32>
      %c5_127 = arith.constant 5 : index
      %c0_128 = arith.constant 0 : index
      %281 = vector.load %arg18[%c5_127, %c0_128] : memref<16x64xf32, #tpu.memory_space<vmem>>, vector<3x64xf32>
      tpu.vector_store %arg18[%c5_127, %c0_128], %280 {strides = array<i32>} : memref<16x64xf32, #tpu.memory_space<vmem>>, vector<3x64xf32>,
    } else {
    }
    %c0 = arith.constant 0 : index
    %c0_3 = arith.constant 0 : index
    %c0_4 = arith.constant 0 : index
    %6 = vector.load %arg2[%c0, %c0_3, %c0_4] : memref<1x8x128xf32, #tpu.memory_space<vmem>>, vector<1x8x128xf32>
    %7 = vector.shape_cast %6 : vector<1x8x128xf32> to vector<8x128xf32>
    %8 = arith.truncf %7 : vector<8x128xf32> to vector<8x128xbf16>
    %c0_5 = arith.constant 0 : index
    %c0_6 = arith.constant 0 : index
    %9 = vector.load %arg3[%c0_5, %c0_6] : memref<128x128xbf16, #tpu.memory_space<vmem>>, vector<128x128xbf16>
    %cst = arith.constant dense<0.000000e+00> : vector<8x128xf32>
    %10 = tpu.matmul %8, %9, %cst {dimension_numbers = #tpu.dot_dimension_numbers<[1], [0], [0], [1], [0, 0, 1, 1], [], []>} : vector<8x128xbf16>, vector<128x128xbf16>, vector<8x128xf32> -> vector<8x128xf32>
    %11 = vector.extract_strided_slice %10 {offsets = [0, 0], sizes = [8, 64], strides = [1, 1]} : vector<8x128xf32> to vector<8x64xf32>
    %12 = vector.extract_strided_slice %10 {offsets = [0, 64], sizes = [8, 64], strides = [1, 1]} : vector<8x128xf32> to vector<8x64xf32>
    %c8 = arith.constant 8 : index
    %c0_7 = arith.constant 0 : index
    %13 = vector.load %arg18[%c8, %c0_7] : memref<16x64xf32, #tpu.memory_space<vmem>>, vector<8x64xf32>
    tpu.vector_store %arg18[%c8, %c0_7], %11 {strides = array<i32>} : memref<16x64xf32, #tpu.memory_space<vmem>>, vector<8x64xf32>,
    %c5 = arith.constant 5 : index
    %c0_8 = arith.constant 0 : index
    %14 = vector.load %arg18[%c5, %c0_8] : memref<16x64xf32, #tpu.memory_space<vmem>>, vector<8x64xf32>
    %c0_9 = arith.constant 0 : index
    %c0_10 = arith.constant 0 : index
    %15 = vector.load %arg4[%c0_9, %c0_10] : memref<4x64xf32, #tpu.memory_space<vmem>>, vector<1x64xf32>
    %16 = vector.broadcast %15 : vector<1x64xf32> to vector<8x64xf32>
    %17 = arith.mulf %14, %16 : vector<8x64xf32>
    %c6 = arith.constant 6 : index
    %c0_11 = arith.constant 0 : index
    %18 = vector.load %arg18[%c6, %c0_11] : memref<16x64xf32, #tpu.memory_space<vmem>>, vector<8x64xf32>
    %c1 = arith.constant 1 : index
    %c0_12 = arith.constant 0 : index
    %19 = vector.load %arg4[%c1, %c0_12] : memref<4x64xf32, #tpu.memory_space<vmem>>, vector<1x64xf32>
    %20 = vector.broadcast %19 : vector<1x64xf32> to vector<8x64xf32>
    %21 = arith.mulf %18, %20 : vector<8x64xf32>
    %22 = arith.addf %17, %21 : vector<8x64xf32>
    %c7 = arith.constant 7 : index
    %c0_13 = arith.constant 0 : index
    %23 = vector.load %arg18[%c7, %c0_13] : memref<16x64xf32, #tpu.memory_space<vmem>>, vector<8x64xf32>
    %c2 = arith.constant 2 : index
    %c0_14 = arith.constant 0 : index
    %24 = vector.load %arg4[%c2, %c0_14] : memref<4x64xf32, #tpu.memory_space<vmem>>, vector<1x64xf32>
    %25 = vector.broadcast %24 : vector<1x64xf32> to vector<8x64xf32>
    %26 = arith.mulf %23, %25 : vector<8x64xf32>
    %27 = arith.addf %22, %26 : vector<8x64xf32>
    %c8_15 = arith.constant 8 : index
    %c0_16 = arith.constant 0 : index
    %28 = vector.load %arg18[%c8_15, %c0_16] : memref<16x64xf32, #tpu.memory_space<vmem>>, vector<8x64xf32>
    %c3 = arith.constant 3 : index
    %c0_17 = arith.constant 0 : index
    %29 = vector.load %arg4[%c3, %c0_17] : memref<4x64xf32, #tpu.memory_space<vmem>>, vector<1x64xf32>
    %30 = vector.broadcast %29 : vector<1x64xf32> to vector<8x64xf32>
    %31 = arith.mulf %28, %30 : vector<8x64xf32>
    %32 = arith.addf %27, %31 : vector<8x64xf32>
    %c0_18 = arith.constant 0 : index
    %c0_19 = arith.constant 0 : index
    %33 = vector.load %arg5[%c0_18, %c0_19] : memref<1x64xf32, #tpu.memory_space<vmem>>, vector<1x64xf32>
    %34 = vector.broadcast %33 : vector<1x64xf32> to vector<8x64xf32>
    %35 = arith.addf %32, %34 : vector<8x64xf32>
    %36 = arith.negf %35 : vector<8x64xf32>
    %37 = math.exp %36 : vector<8x64xf32>
    %cst_20 = arith.constant 1.000000e+00 : f32
    %38 = vector.broadcast %cst_20 : f32 to vector<8x64xf32>
    %39 = arith.addf %38, %37 : vector<8x64xf32>
    %40 = arith.divf %38, %39 : vector<8x64xf32>
    %41 = arith.mulf %35, %40 : vector<8x64xf32>
    %42 = arith.truncf %41 : vector<8x64xf32> to vector<8x64xbf16>
    %c0_21 = arith.constant 0 : index
    %c0_22 = arith.constant 0 : index
    %43 = vector.load %arg6[%c0_21, %c0_22] : memref<64x96xbf16, #tpu.memory_space<vmem>>, vector<64x96xbf16>
    %cst_23 = arith.constant dense<0.000000e+00> : vector<8x96xf32>
    %44 = tpu.matmul %42, %43, %cst_23 {dimension_numbers = #tpu.dot_dimension_numbers<[1], [0], [0], [1], [0, 0, 1, 1], [], []>} : vector<8x64xbf16>, vector<64x96xbf16>, vector<8x96xf32> -> vector<8x96xf32>
    %45 = vector.extract_strided_slice %44 {offsets = [0, 0], sizes = [8, 64], strides = [1, 1]} : vector<8x96xf32> to vector<8x64xf32>
    %c0_24 = arith.constant 0 : index
    %c0_25 = arith.constant 0 : index
    %46 = vector.load %arg7[%c0_24, %c0_25] : memref<1x64xf32, #tpu.memory_space<vmem>>, vector<1x64xf32>
    %47 = vector.broadcast %46 : vector<1x64xf32> to vector<8x64xf32>
    %48 = arith.addf %45, %47 : vector<8x64xf32>
    %cst_26 = arith.constant 0.000000e+00 : f32
    %49 = vector.broadcast %cst_26 : f32 to vector<8x64xf32>
    %50 = arith.maximumf %48, %49 : vector<8x64xf32>
    %51 = math.absf %48 : vector<8x64xf32>
    %cst_27 = arith.constant 0.000000e+00 : f32
    %52 = vector.broadcast %cst_27 : f32 to vector<8x64xf32>
    %53 = arith.subf %52, %51 : vector<8x64xf32>
    %54 = math.exp %53 : vector<8x64xf32>
    %cst_28 = arith.constant 1.000000e+00 : f32
    %55 = vector.broadcast %cst_28 : f32 to vector<8x64xf32>
    %56 = arith.addf %55, %54 : vector<8x64xf32>
    %57 = math.log %56 : vector<8x64xf32>
    %58 = arith.addf %50, %57 : vector<8x64xf32>
    %59 = vector.extract_strided_slice %44 {offsets = [0, 64], sizes = [8, 16], strides = [1, 1]} : vector<8x96xf32> to vector<8x16xf32>
    %60 = vector.extract_strided_slice %44 {offsets = [0, 80], sizes = [8, 16], strides = [1, 1]} : vector<8x96xf32> to vector<8x16xf32>
    %c0_29 = arith.constant 0 : index
    %c0_30 = arith.constant 0 : index
    %61 = vector.load %arg8[%c0_29, %c0_30] : memref<16x64xf32, #tpu.memory_space<vmem>>, vector<16x64xf32>
    %62 = math.exp %61 : vector<16x64xf32>
    %cst_31 = arith.constant 0.000000e+00 : f32
    %63 = vector.broadcast %cst_31 : f32 to vector<16x64xf32>
    %64 = arith.subf %63, %62 : vector<16x64xf32>
    %65 = vector.shape_cast %58 : vector<8x64xf32> to vector<8x1x64xf32>
    %66 = vector.shape_cast %64 : vector<16x64xf32> to vector<1x16x64xf32>
    %67 = vector.broadcast %65 : vector<8x1x64xf32> to vector<8x16x64xf32>
    %68 = vector.broadcast %66 : vector<1x16x64xf32> to vector<8x16x64xf32>
    %69 = arith.mulf %67, %68 : vector<8x16x64xf32>
    %70 = math.exp %69 : vector<8x16x64xf32>
    %71 = arith.truncf %70 : vector<8x16x64xf32> to vector<8x16x64xbf16>
    %c0_32 = arith.constant 0 : index
    %c0_33 = arith.constant 0 : index
    %c0_34 = arith.constant 0 : index
    %72 = vector.load %arg12[%c0_32, %c0_33, %c0_34] : memref<8x16x64xbf16, #tpu.memory_space<vmem>>, vector<8x16x64xbf16>
    tpu.vector_store %arg12[%c0_32, %c0_33, %c0_34], %71 {strides = array<i32>} : memref<8x16x64xbf16, #tpu.memory_space<vmem>>, vector<8x16x64xbf16>,
    %73 = arith.mulf %58, %41 : vector<8x64xf32>
    %c0_35 = arith.constant 0 : index
    %c0_36 = arith.constant 0 : index
    %74 = vector.load %arg13[%c0_35, %c0_36] : memref<8x64xf32, #tpu.memory_space<vmem>>, vector<8x64xf32>
    tpu.vector_store %arg13[%c0_35, %c0_36], %73 {strides = array<i32>} : memref<8x64xf32, #tpu.memory_space<vmem>>, vector<8x64xf32>,
    %75 = vector.shape_cast %59 : vector<8x16xf32> to vector<8x16x1xf32>
    %c0_37 = arith.constant 0 : index
    %c0_38 = arith.constant 0 : index
    %c0_39 = arith.constant 0 : index
    %76 = vector.load %arg14[%c0_37, %c0_38, %c0_39] : memref<8x16x1xf32, #tpu.memory_space<vmem>>, vector<8x16x1xf32>
    tpu.vector_store %arg14[%c0_37, %c0_38, %c0_39], %75 {strides = array<i32>} : memref<8x16x1xf32, #tpu.memory_space<vmem>>, vector<8x16x1xf32>,
    %77 = vector.shape_cast %60 : vector<8x16xf32> to vector<8x16x1xf32>
    %c0_40 = arith.constant 0 : index
    %c0_41 = arith.constant 0 : index
    %c0_42 = arith.constant 0 : index
    %78 = vector.load %arg15[%c0_40, %c0_41, %c0_42] : memref<8x16x1xf32, #tpu.memory_space<vmem>>, vector<8x16x1xf32>
    tpu.vector_store %arg15[%c0_40, %c0_41, %c0_42], %77 {strides = array<i32>} : memref<8x16x1xf32, #tpu.memory_space<vmem>>, vector<8x16x1xf32>,
    %c0_43 = arith.constant 0 : index
    %c0_44 = arith.constant 0 : index
    %79 = vector.load %arg17[%c0_43, %c0_44] : memref<16x64xf32, #tpu.memory_space<vmem>>, vector<16x64xf32>
    %c0_i32_45 = arith.constant 0 : i32
    %c8_i32 = arith.constant 8 : i32
    %80 = arith.muli %c0_i32_45, %c8_i32 : i32
    %81 = tpu.assume_multiple %80, 8 : i32
    %c0_i32_46 = arith.constant 0 : i32
    %82 = arith.addi %81, %c0_i32_46 : i32
    %83 = arith.index_cast %82 : i32 to index
    %c0_47 = arith.constant 0 : index
    %c0_48 = arith.constant 0 : index
    %84 = vector.load %arg12[%83, %c0_47, %c0_48] : memref<8x16x64xbf16, #tpu.memory_space<vmem>>, vector<1x16x64xbf16>
    %85 = vector.shape_cast %84 : vector<1x16x64xbf16> to vector<16x64xbf16>
    %86 = arith.extf %85 : vector<16x64xbf16> to vector<16x64xf32>
    %87 = arith.mulf %79, %86 : vector<16x64xf32>
    %88 = arith.index_cast %82 : i32 to index
    %c0_49 = arith.constant 0 : index
    %89 = vector.load %arg13[%88, %c0_49] : memref<8x64xf32, #tpu.memory_space<vmem>>, vector<1x64xf32>
    %90 = arith.index_cast %82 : i32 to index
    %c0_50 = arith.constant 0 : index
    %c0_51 = arith.constant 0 : index
    %91 = vector.load %arg14[%90, %c0_50, %c0_51] : memref<8x16x1xf32, #tpu.memory_space<vmem>>, vector<1x16x1xf32>
    %92 = vector.shape_cast %91 : vector<1x16x1xf32> to vector<16x1xf32>
    %93 = vector.broadcast %89 : vector<1x64xf32> to vector<16x64xf32>
    %94 = vector.broadcast %92 : vector<16x1xf32> to vector<16x64xf32>
    %95 = arith.mulf %93, %94 : vector<16x64xf32>
    %96 = arith.addf %87, %95 : vector<16x64xf32>
    %97 = arith.index_cast %82 : i32 to index
    %c0_52 = arith.constant 0 : index
    %c0_53 = arith.constant 0 : index
    %98 = vector.load %arg15[%97, %c0_52, %c0_53] : memref<8x16x1xf32, #tpu.memory_space<vmem>>, vector<1x16x1xf32>
    %99 = vector.shape_cast %98 : vector<1x16x1xf32> to vector<16x1xf32>
    %100 = vector.broadcast %99 : vector<16x1xf32> to vector<16x64xf32>
    %101 = arith.mulf %96, %100 : vector<16x64xf32>
    %cst_54 = arith.constant dense<0.000000e+00> : vector<64xf32>
    %102 = vector.multi_reduction <add>, %101, %cst_54 [0] : vector<16x64xf32> to vector<64xf32>
    %103 = vector.shape_cast %102 : vector<64xf32> to vector<1x64xf32>
    %c1_i32 = arith.constant 1 : i32
    %104 = arith.addi %81, %c1_i32 : i32
    %105 = arith.index_cast %104 : i32 to index
    %c0_55 = arith.constant 0 : index
    %c0_56 = arith.constant 0 : index
    %106 = vector.load %arg12[%105, %c0_55, %c0_56] : memref<8x16x64xbf16, #tpu.memory_space<vmem>>, vector<1x16x64xbf16>
    %107 = vector.shape_cast %106 : vector<1x16x64xbf16> to vector<16x64xbf16>
    %108 = arith.extf %107 : vector<16x64xbf16> to vector<16x64xf32>
    %109 = arith.mulf %96, %108 : vector<16x64xf32>
    %110 = arith.index_cast %104 : i32 to index
    %c0_57 = arith.constant 0 : index
    %111 = vector.load %arg13[%110, %c0_57] : memref<8x64xf32, #tpu.memory_space<vmem>>, vector<1x64xf32>
    %112 = arith.index_cast %104 : i32 to index
    %c0_58 = arith.constant 0 : index
    %c0_59 = arith.constant 0 : index
    %113 = vector.load %arg14[%112, %c0_58, %c0_59] : memref<8x16x1xf32, #tpu.memory_space<vmem>>, vector<1x16x1xf32>
    %114 = vector.shape_cast %113 : vector<1x16x1xf32> to vector<16x1xf32>
    %115 = vector.broadcast %111 : vector<1x64xf32> to vector<16x64xf32>
    %116 = vector.broadcast %114 : vector<16x1xf32> to vector<16x64xf32>
    %117 = arith.mulf %115, %116 : vector<16x64xf32>
    %118 = arith.addf %109, %117 : vector<16x64xf32>
    %119 = arith.index_cast %104 : i32 to index
    %c0_60 = arith.constant 0 : index
    %c0_61 = arith.constant 0 : index
    %120 = vector.load %arg15[%119, %c0_60, %c0_61] : memref<8x16x1xf32, #tpu.memory_space<vmem>>, vector<1x16x1xf32>
    %121 = vector.shape_cast %120 : vector<1x16x1xf32> to vector<16x1xf32>
    %122 = vector.broadcast %121 : vector<16x1xf32> to vector<16x64xf32>
    %123 = arith.mulf %118, %122 : vector<16x64xf32>
    %cst_62 = arith.constant dense<0.000000e+00> : vector<64xf32>
    %124 = vector.multi_reduction <add>, %123, %cst_62 [0] : vector<16x64xf32> to vector<64xf32>
    %125 = vector.shape_cast %124 : vector<64xf32> to vector<1x64xf32>
    %c2_i32 = arith.constant 2 : i32
    %126 = arith.addi %81, %c2_i32 : i32
    %127 = arith.index_cast %126 : i32 to index
    %c0_63 = arith.constant 0 : index
    %c0_64 = arith.constant 0 : index
    %128 = vector.load %arg12[%127, %c0_63, %c0_64] : memref<8x16x64xbf16, #tpu.memory_space<vmem>>, vector<1x16x64xbf16>
    %129 = vector.shape_cast %128 : vector<1x16x64xbf16> to vector<16x64xbf16>
    %130 = arith.extf %129 : vector<16x64xbf16> to vector<16x64xf32>
    %131 = arith.mulf %118, %130 : vector<16x64xf32>
    %132 = arith.index_cast %126 : i32 to index
    %c0_65 = arith.constant 0 : index
    %133 = vector.load %arg13[%132, %c0_65] : memref<8x64xf32, #tpu.memory_space<vmem>>, vector<1x64xf32>
    %134 = arith.index_cast %126 : i32 to index
    %c0_66 = arith.constant 0 : index
    %c0_67 = arith.constant 0 : index
    %135 = vector.load %arg14[%134, %c0_66, %c0_67] : memref<8x16x1xf32, #tpu.memory_space<vmem>>, vector<1x16x1xf32>
    %136 = vector.shape_cast %135 : vector<1x16x1xf32> to vector<16x1xf32>
    %137 = vector.broadcast %133 : vector<1x64xf32> to vector<16x64xf32>
    %138 = vector.broadcast %136 : vector<16x1xf32> to vector<16x64xf32>
    %139 = arith.mulf %137, %138 : vector<16x64xf32>
    %140 = arith.addf %131, %139 : vector<16x64xf32>
    %141 = arith.index_cast %126 : i32 to index
    %c0_68 = arith.constant 0 : index
    %c0_69 = arith.constant 0 : index
    %142 = vector.load %arg15[%141, %c0_68, %c0_69] : memref<8x16x1xf32, #tpu.memory_space<vmem>>, vector<1x16x1xf32>
    %143 = vector.shape_cast %142 : vector<1x16x1xf32> to vector<16x1xf32>
    %144 = vector.broadcast %143 : vector<16x1xf32> to vector<16x64xf32>
    %145 = arith.mulf %140, %144 : vector<16x64xf32>
    %cst_70 = arith.constant dense<0.000000e+00> : vector<64xf32>
    %146 = vector.multi_reduction <add>, %145, %cst_70 [0] : vector<16x64xf32> to vector<64xf32>
    %147 = vector.shape_cast %146 : vector<64xf32> to vector<1x64xf32>
    %c3_i32 = arith.constant 3 : i32
    %148 = arith.addi %81, %c3_i32 : i32
    %149 = arith.index_cast %148 : i32 to index
    %c0_71 = arith.constant 0 : index
    %c0_72 = arith.constant 0 : index
    %150 = vector.load %arg12[%149, %c0_71, %c0_72] : memref<8x16x64xbf16, #tpu.memory_space<vmem>>, vector<1x16x64xbf16>
    %151 = vector.shape_cast %150 : vector<1x16x64xbf16> to vector<16x64xbf16>
    %152 = arith.extf %151 : vector<16x64xbf16> to vector<16x64xf32>
    %153 = arith.mulf %140, %152 : vector<16x64xf32>
    %154 = arith.index_cast %148 : i32 to index
    %c0_73 = arith.constant 0 : index
    %155 = vector.load %arg13[%154, %c0_73] : memref<8x64xf32, #tpu.memory_space<vmem>>, vector<1x64xf32>
    %156 = arith.index_cast %148 : i32 to index
    %c0_74 = arith.constant 0 : index
    %c0_75 = arith.constant 0 : index
    %157 = vector.load %arg14[%156, %c0_74, %c0_75] : memref<8x16x1xf32, #tpu.memory_space<vmem>>, vector<1x16x1xf32>
    %158 = vector.shape_cast %157 : vector<1x16x1xf32> to vector<16x1xf32>
    %159 = vector.broadcast %155 : vector<1x64xf32> to vector<16x64xf32>
    %160 = vector.broadcast %158 : vector<16x1xf32> to vector<16x64xf32>
    %161 = arith.mulf %159, %160 : vector<16x64xf32>
    %162 = arith.addf %153, %161 : vector<16x64xf32>
    %163 = arith.index_cast %148 : i32 to index
    %c0_76 = arith.constant 0 : index
    %c0_77 = arith.constant 0 : index
    %164 = vector.load %arg15[%163, %c0_76, %c0_77] : memref<8x16x1xf32, #tpu.memory_space<vmem>>, vector<1x16x1xf32>
    %165 = vector.shape_cast %164 : vector<1x16x1xf32> to vector<16x1xf32>
    %166 = vector.broadcast %165 : vector<16x1xf32> to vector<16x64xf32>
    %167 = arith.mulf %162, %166 : vector<16x64xf32>
    %cst_78 = arith.constant dense<0.000000e+00> : vector<64xf32>
    %168 = vector.multi_reduction <add>, %167, %cst_78 [0] : vector<16x64xf32> to vector<64xf32>
    %169 = vector.shape_cast %168 : vector<64xf32> to vector<1x64xf32>
    %c4_i32 = arith.constant 4 : i32
    %170 = arith.addi %81, %c4_i32 : i32
    %171 = arith.index_cast %170 : i32 to index
    %c0_79 = arith.constant 0 : index
    %c0_80 = arith.constant 0 : index
    %172 = vector.load %arg12[%171, %c0_79, %c0_80] : memref<8x16x64xbf16, #tpu.memory_space<vmem>>, vector<1x16x64xbf16>
    %173 = vector.shape_cast %172 : vector<1x16x64xbf16> to vector<16x64xbf16>
    %174 = arith.extf %173 : vector<16x64xbf16> to vector<16x64xf32>
    %175 = arith.mulf %162, %174 : vector<16x64xf32>
    %176 = arith.index_cast %170 : i32 to index
    %c0_81 = arith.constant 0 : index
    %177 = vector.load %arg13[%176, %c0_81] : memref<8x64xf32, #tpu.memory_space<vmem>>, vector<1x64xf32>
    %178 = arith.index_cast %170 : i32 to index
    %c0_82 = arith.constant 0 : index
    %c0_83 = arith.constant 0 : index
    %179 = vector.load %arg14[%178, %c0_82, %c0_83] : memref<8x16x1xf32, #tpu.memory_space<vmem>>, vector<1x16x1xf32>
    %180 = vector.shape_cast %179 : vector<1x16x1xf32> to vector<16x1xf32>
    %181 = vector.broadcast %177 : vector<1x64xf32> to vector<16x64xf32>
    %182 = vector.broadcast %180 : vector<16x1xf32> to vector<16x64xf32>
    %183 = arith.mulf %181, %182 : vector<16x64xf32>
    %184 = arith.addf %175, %183 : vector<16x64xf32>
    %185 = arith.index_cast %170 : i32 to index
    %c0_84 = arith.constant 0 : index
    %c0_85 = arith.constant 0 : index
    %186 = vector.load %arg15[%185, %c0_84, %c0_85] : memref<8x16x1xf32, #tpu.memory_space<vmem>>, vector<1x16x1xf32>
    %187 = vector.shape_cast %186 : vector<1x16x1xf32> to vector<16x1xf32>
    %188 = vector.broadcast %187 : vector<16x1xf32> to vector<16x64xf32>
    %189 = arith.mulf %184, %188 : vector<16x64xf32>
    %cst_86 = arith.constant dense<0.000000e+00> : vector<64xf32>
    %190 = vector.multi_reduction <add>, %189, %cst_86 [0] : vector<16x64xf32> to vector<64xf32>
    %191 = vector.shape_cast %190 : vector<64xf32> to vector<1x64xf32>
    %c5_i32 = arith.constant 5 : i32
    %192 = arith.addi %81, %c5_i32 : i32
    %193 = arith.index_cast %192 : i32 to index
    %c0_87 = arith.constant 0 : index
    %c0_88 = arith.constant 0 : index
    %194 = vector.load %arg12[%193, %c0_87, %c0_88] : memref<8x16x64xbf16, #tpu.memory_space<vmem>>, vector<1x16x64xbf16>
    %195 = vector.shape_cast %194 : vector<1x16x64xbf16> to vector<16x64xbf16>
    %196 = arith.extf %195 : vector<16x64xbf16> to vector<16x64xf32>
    %197 = arith.mulf %184, %196 : vector<16x64xf32>
    %198 = arith.index_cast %192 : i32 to index
    %c0_89 = arith.constant 0 : index
    %199 = vector.load %arg13[%198, %c0_89] : memref<8x64xf32, #tpu.memory_space<vmem>>, vector<1x64xf32>
    %200 = arith.index_cast %192 : i32 to index
    %c0_90 = arith.constant 0 : index
    %c0_91 = arith.constant 0 : index
    %201 = vector.load %arg14[%200, %c0_90, %c0_91] : memref<8x16x1xf32, #tpu.memory_space<vmem>>, vector<1x16x1xf32>
    %202 = vector.shape_cast %201 : vector<1x16x1xf32> to vector<16x1xf32>
    %203 = vector.broadcast %199 : vector<1x64xf32> to vector<16x64xf32>
    %204 = vector.broadcast %202 : vector<16x1xf32> to vector<16x64xf32>
    %205 = arith.mulf %203, %204 : vector<16x64xf32>
    %206 = arith.addf %197, %205 : vector<16x64xf32>
    %207 = arith.index_cast %192 : i32 to index
    %c0_92 = arith.constant 0 : index
    %c0_93 = arith.constant 0 : index
    %208 = vector.load %arg15[%207, %c0_92, %c0_93] : memref<8x16x1xf32, #tpu.memory_space<vmem>>, vector<1x16x1xf32>
    %209 = vector.shape_cast %208 : vector<1x16x1xf32> to vector<16x1xf32>
    %210 = vector.broadcast %209 : vector<16x1xf32> to vector<16x64xf32>
    %211 = arith.mulf %206, %210 : vector<16x64xf32>
    %cst_94 = arith.constant dense<0.000000e+00> : vector<64xf32>
    %212 = vector.multi_reduction <add>, %211, %cst_94 [0] : vector<16x64xf32> to vector<64xf32>
    %213 = vector.shape_cast %212 : vector<64xf32> to vector<1x64xf32>
    %c6_i32 = arith.constant 6 : i32
    %214 = arith.addi %81, %c6_i32 : i32
    %215 = arith.index_cast %214 : i32 to index
    %c0_95 = arith.constant 0 : index
    %c0_96 = arith.constant 0 : index
    %216 = vector.load %arg12[%215, %c0_95, %c0_96] : memref<8x16x64xbf16, #tpu.memory_space<vmem>>, vector<1x16x64xbf16>
    %217 = vector.shape_cast %216 : vector<1x16x64xbf16> to vector<16x64xbf16>
    %218 = arith.extf %217 : vector<16x64xbf16> to vector<16x64xf32>
    %219 = arith.mulf %206, %218 : vector<16x64xf32>
    %220 = arith.index_cast %214 : i32 to index
    %c0_97 = arith.constant 0 : index
    %221 = vector.load %arg13[%220, %c0_97] : memref<8x64xf32, #tpu.memory_space<vmem>>, vector<1x64xf32>
    %222 = arith.index_cast %214 : i32 to index
    %c0_98 = arith.constant 0 : index
    %c0_99 = arith.constant 0 : index
    %223 = vector.load %arg14[%222, %c0_98, %c0_99] : memref<8x16x1xf32, #tpu.memory_space<vmem>>, vector<1x16x1xf32>
    %224 = vector.shape_cast %223 : vector<1x16x1xf32> to vector<16x1xf32>
    %225 = vector.broadcast %221 : vector<1x64xf32> to vector<16x64xf32>
    %226 = vector.broadcast %224 : vector<16x1xf32> to vector<16x64xf32>
    %227 = arith.mulf %225, %226 : vector<16x64xf32>
    %228 = arith.addf %219, %227 : vector<16x64xf32>
    %229 = arith.index_cast %214 : i32 to index
    %c0_100 = arith.constant 0 : index
    %c0_101 = arith.constant 0 : index
    %230 = vector.load %arg15[%229, %c0_100, %c0_101] : memref<8x16x1xf32, #tpu.memory_space<vmem>>, vector<1x16x1xf32>
    %231 = vector.shape_cast %230 : vector<1x16x1xf32> to vector<16x1xf32>
    %232 = vector.broadcast %231 : vector<16x1xf32> to vector<16x64xf32>
    %233 = arith.mulf %228, %232 : vector<16x64xf32>
    %cst_102 = arith.constant dense<0.000000e+00> : vector<64xf32>
    %234 = vector.multi_reduction <add>, %233, %cst_102 [0] : vector<16x64xf32> to vector<64xf32>
    %235 = vector.shape_cast %234 : vector<64xf32> to vector<1x64xf32>
    %c7_i32 = arith.constant 7 : i32
    %236 = arith.addi %81, %c7_i32 : i32
    %237 = arith.index_cast %236 : i32 to index
    %c0_103 = arith.constant 0 : index
    %c0_104 = arith.constant 0 : index
    %238 = vector.load %arg12[%237, %c0_103, %c0_104] : memref<8x16x64xbf16, #tpu.memory_space<vmem>>, vector<1x16x64xbf16>
    %239 = vector.shape_cast %238 : vector<1x16x64xbf16> to vector<16x64xbf16>
    %240 = arith.extf %239 : vector<16x64xbf16> to vector<16x64xf32>
    %241 = arith.mulf %228, %240 : vector<16x64xf32>
    %242 = arith.index_cast %236 : i32 to index
    %c0_105 = arith.constant 0 : index
    %243 = vector.load %arg13[%242, %c0_105] : memref<8x64xf32, #tpu.memory_space<vmem>>, vector<1x64xf32>
    %244 = arith.index_cast %236 : i32 to index
    %c0_106 = arith.constant 0 : index
    %c0_107 = arith.constant 0 : index
    %245 = vector.load %arg14[%244, %c0_106, %c0_107] : memref<8x16x1xf32, #tpu.memory_space<vmem>>, vector<1x16x1xf32>
    %246 = vector.shape_cast %245 : vector<1x16x1xf32> to vector<16x1xf32>
    %247 = vector.broadcast %243 : vector<1x64xf32> to vector<16x64xf32>
    %248 = vector.broadcast %246 : vector<16x1xf32> to vector<16x64xf32>
    %249 = arith.mulf %247, %248 : vector<16x64xf32>
    %250 = arith.addf %241, %249 : vector<16x64xf32>
    %251 = arith.index_cast %236 : i32 to index
    %c0_108 = arith.constant 0 : index
    %c0_109 = arith.constant 0 : index
    %252 = vector.load %arg15[%251, %c0_108, %c0_109] : memref<8x16x1xf32, #tpu.memory_space<vmem>>, vector<1x16x1xf32>
    %253 = vector.shape_cast %252 : vector<1x16x1xf32> to vector<16x1xf32>
    %254 = vector.broadcast %253 : vector<16x1xf32> to vector<16x64xf32>
    %255 = arith.mulf %250, %254 : vector<16x64xf32>
    %cst_110 = arith.constant dense<0.000000e+00> : vector<64xf32>
    %256 = vector.multi_reduction <add>, %255, %cst_110 [0] : vector<16x64xf32> to vector<64xf32>
    %257 = vector.shape_cast %256 : vector<64xf32> to vector<1x64xf32>
    %258 = tpu.concatenate %103, %125, %147, %169, %191, %213, %235, %257 in 0 : vector<1x64xf32>, vector<1x64xf32>, vector<1x64xf32>, vector<1x64xf32>, vector<1x64xf32>, vector<1x64xf32>, vector<1x64xf32>, vector<1x64xf32> -> vector<8x64xf32>
    %259 = arith.index_cast %81 : i32 to index
    %c0_111 = arith.constant 0 : index
    %260 = vector.load %arg16[%259, %c0_111] : memref<8x64xf32, #tpu.memory_space<vmem>>, vector<8x64xf32>
    tpu.vector_store %arg16[%259, %c0_111], %258 {strides = array<i32>} : memref<8x64xf32, #tpu.memory_space<vmem>>, vector<8x64xf32>,
    %c1_i32_112 = arith.constant 1 : i32
    %c0_113 = arith.constant 0 : index
    %c0_114 = arith.constant 0 : index
    %261 = vector.load %arg17[%c0_113, %c0_114] : memref<16x64xf32, #tpu.memory_space<vmem>>, vector<16x64xf32>
    tpu.vector_store %arg17[%c0_113, %c0_114], %250 {strides = array<i32>} : memref<16x64xf32, #tpu.memory_space<vmem>>, vector<16x64xf32>,
    %c0_115 = arith.constant 0 : index
    %c0_116 = arith.constant 0 : index
    %262 = vector.load %arg16[%c0_115, %c0_116] : memref<8x64xf32, #tpu.memory_space<vmem>>, vector<8x64xf32>
    %c0_117 = arith.constant 0 : index
    %c0_118 = arith.constant 0 : index
    %263 = vector.load %arg9[%c0_117, %c0_118] : memref<1x64xf32, #tpu.memory_space<vmem>>, vector<1x64xf32>
    %264 = vector.broadcast %263 : vector<1x64xf32> to vector<8x64xf32>
    %265 = arith.mulf %41, %264 : vector<8x64xf32>
    %266 = arith.addf %262, %265 : vector<8x64xf32>
    %267 = arith.negf %12 : vector<8x64xf32>
    %268 = math.exp %267 : vector<8x64xf32>
    %cst_119 = arith.constant 1.000000e+00 : f32
    %269 = vector.broadcast %cst_119 : f32 to vector<8x64xf32>
    %270 = arith.addf %269, %268 : vector<8x64xf32>
    %271 = arith.divf %269, %270 : vector<8x64xf32>
    %272 = arith.mulf %12, %271 : vector<8x64xf32>
    %273 = arith.mulf %266, %272 : vector<8x64xf32>
    %274 = arith.truncf %273 : vector<8x64xf32> to vector<8x64xbf16>
    %c0_120 = arith.constant 0 : index
    %c0_121 = arith.constant 0 : index
    %275 = vector.load %arg10[%c0_120, %c0_121] : memref<64x128xbf16, #tpu.memory_space<vmem>>, vector<64x128xbf16>
    %cst_122 = arith.constant dense<0.000000e+00> : vector<8x128xf32>
    %276 = tpu.matmul %274, %275, %cst_122 {dimension_numbers = #tpu.dot_dimension_numbers<[1], [0], [0], [1], [0, 0, 1, 1], [], []>} : vector<8x64xbf16>, vector<64x128xbf16>, vector<8x128xf32> -> vector<8x128xf32>
    %c0_123 = arith.constant 0 : index
    %c0_124 = arith.constant 0 : index
    %c0_125 = arith.constant 0 : index
    %277 = vector.load %arg11[%c0_123, %c0_124, %c0_125] : memref<1x8x128xf32, #tpu.memory_space<vmem>>, vector<1x8x128xf32>
    %278 = vector.shape_cast %277 : vector<1x8x128xf32> to vector<8x128xf32>
    %279 = vector.shape_cast %276 : vector<8x128xf32> to vector<1x8x128xf32>
    tpu.vector_store %arg11[%c0_123, %c0_124, %c0_125], %279 {strides = array<i32>} : memref<1x8x128xf32, #tpu.memory_space<vmem>>, vector<1x8x128xf32>,
    return
  }
  func.func @transform_0(%arg0: i32, %arg1: i32) -> (i32, i32, i32) {
    %c0_i32 = arith.constant 0 : i32
    %c0_i32_0 = arith.constant 0 : i32
    return %arg0, %arg1, %c0_i32 : i32, i32, i32
  }
  func.func @transform_1(%arg0: i32, %arg1: i32) -> (i32, i32) {
    %c0_i32 = arith.constant 0 : i32
    %c0_i32_0 = arith.constant 0 : i32
    %c0_i32_1 = arith.constant 0 : i32
    return %c0_i32, %c0_i32_0 : i32, i32
  }
  func.func @transform_2(%arg0: i32, %arg1: i32) -> (i32, i32) {
    %c0_i32 = arith.constant 0 : i32
    %c0_i32_0 = arith.constant 0 : i32
    %c0_i32_1 = arith.constant 0 : i32
    return %c0_i32, %c0_i32_0 : i32, i32
  }
  func.func @transform_3(%arg0: i32, %arg1: i32) -> (i32, i32) {
    %c0_i32 = arith.constant 0 : i32
    %c0_i32_0 = arith.constant 0 : i32
    %c0_i32_1 = arith.constant 0 : i32
    return %c0_i32, %c0_i32_0 : i32, i32
  }
  func.func @transform_4(%arg0: i32, %arg1: i32) -> (i32, i32) {
    %c0_i32 = arith.constant 0 : i32
    %c0_i32_0 = arith.constant 0 : i32
    %c0_i32_1 = arith.constant 0 : i32
    return %c0_i32, %c0_i32_0 : i32, i32
  }
  func.func @transform_5(%arg0: i32, %arg1: i32) -> (i32, i32) {
    %c0_i32 = arith.constant 0 : i32
    %c0_i32_0 = arith.constant 0 : i32
    %c0_i32_1 = arith.constant 0 : i32
    return %c0_i32, %c0_i32_0 : i32, i32
  }
  func.func @transform_6(%arg0: i32, %arg1: i32) -> (i32, i32) {
    %c0_i32 = arith.constant 0 : i32
    %c0_i32_0 = arith.constant 0 : i32
    %c0_i32_1 = arith.constant 0 : i32
    return %c0_i32, %c0_i32_0 : i32, i32
  }
  func.func @transform_7(%arg0: i32, %arg1: i32) -> (i32, i32) {
    %c0_i32 = arith.constant 0 : i32
    %c0_i32_0 = arith.constant 0 : i32
    %c0_i32_1 = arith.constant 0 : i32
    return %c0_i32, %c0_i32_0 : i32, i32
  }
  func.func @transform_8(%arg0: i32, %arg1: i32) -> (i32, i32) {
    %c0_i32 = arith.constant 0 : i32
    %c0_i32_0 = arith.constant 0 : i32
    %c0_i32_1 = arith.constant 0 : i32
    return %c0_i32, %c0_i32_0 : i32, i32
  }
  func.func @transform_9(%arg0: i32, %arg1: i32) -> (i32, i32, i32) {
    %c0_i32 = arith.constant 0 : i32
    %c0_i32_0 = arith.constant 0 : i32
    return %arg0, %arg1, %c0_i32 : i32, i32, i32
  }
}

</mosaic_0001>

<bundles_post_ra>
// kernel: tpu_custom_call.1
= control target key start
LH: loop header
LB: loop body
LE: loop exit
PB: predicated region body
PF: predicated region fallthrough
CT: control target
= control target key end

     0   :  { %s2890_s0 = inlined_call_operand.hbm [shape: f32[2,16,128], index: 0, kind: input, shape index: {}]   ;;  %s2891_s1 = inlined_call_operand.hbm [shape: bf16[128,128], index: 1, kind: input, shape index: {}]   ;;  %s2892_s2 = inlined_call_operand.vmem [shape: f32[4,64], index: 2, kind: input, shape index: {}]   ;;  %s2893_s3 = inlined_call_operand.vmem [shape: f32[1,64], index: 3, kind: input, shape index: {}]   ;;  %s2894_s4 = inlined_call_operand.hbm [shape: bf16[64,96], index: 4, kind: input, shape index: {}]   ;;  %s2895_s5 = inlined_call_operand.vmem [shape: f32[1,64], index: 5, kind: input, shape index: {}]   ;;  %s2896_s6 = inlined_call_operand.vmem [shape: f32[16,64], index: 6, kind: input, shape index: {}]   ;;  %s2897_s7 = inlined_call_operand.vmem [shape: f32[1,64], index: 7, kind: input, shape index: {}]   ;;  %s2898_s8 = inlined_call_operand.hbm [shape: bf16[64,128], index: 8, kind: input, shape index: {}]   ;;  %s2899_s9 = inlined_call_operand.hbm [shape: f32[2,16,128], index: 9, kind: output, shape index: {}]  }
   0x1   :  { %2908 = sst [smem:[#allocation25_spill]] %s2891_s1 }
   0x2   :  { %2909 = sst [smem:[#allocation26_spill]] %s2893_s3 }
   0x3   :  { %2910 = sst [smem:[#allocation27_spill]] %s2894_s4 }
   0x4   :  { %2911 = sst [smem:[#allocation28_spill]] %s2895_s5 }
   0x5   :  { %2912 = sst [smem:[#allocation29_spill]] %s2896_s6 }
   0x6   :  { %2913 = sst [smem:[#allocation30_spill]] %s2897_s7 }
   0x7   :  { %2914 = sst [smem:[#allocation31_spill]] %s2899_s9 }
   0x8   :  { %14 = vsyncpa [#allocation10], 0 }
   0x9   :  { %16 = vsyncpa [#allocation10 + $0x1], 0 }
   0xa   :  { %17 = vsyncpa [#allocation13], 0 }
   0xb   :  { %18 = vsyncpa [#allocation16], 0 }
   0xc   :  { %19 = vsyncpa [#allocation11], 0 }
   0xd   :  { %21 = vsyncpa [#allocation11 + $0x1], 0  ;;  %s2351_s30 = smov 0   ;;  %s2353_s10 = smov 0  }
   0xe   :  { %s2355_s11 = smov 0   ;;  %s2357_s12 = smov 0  }
   0xf   :  { %s2359_s13 = smov 0   ;;  %s2361_s14 = smov 0  }
  0x10   :  { %s2363_s15 = smov 0   ;;  %s2365_s16 = smov 0  }
  0x11 LB: > { %2915 = sst [smem:[#allocation22_spill]] %s2258_s30  ;;  %s1762_s17 = sadd.s32 4294967295, %s2286_s16   ;;  %s2286_s16 = sphi %s2365_s16, %s27_s16   ;;  %s2282_s15 = sphi %s2363_s15, %s2949_s15   ;;  %s2278_s14 = sphi %s2361_s14, %s2948_s14   ;;  %s2274_s13 = sphi %s2359_s13, %s2947_s13   ;;  %s2270_s12 = sphi %s2357_s12, %s2946_s12   ;;  %s2266_s11 = sphi %s2355_s11, %s2945_s11   ;;  %s2262_s10 = sphi %s2353_s10, %s2944_s10   ;;  %s2258_s30 = sphi %s2351_s30, %s2943_s30  }
  0x12   : > { %2916 = sst [smem:[#allocation23_spill]] %s2274_s13  ;;  %s1763_s18 = sadd.s32 4294967294, %s2286_s16  }
  0x13   : > { %p61_p0 = scmp.ne.s32.totalorder %s2262_s10, %s2258_s30  ;;  %p2395_p1 = scmp.eq.s32.totalorder %s1762_s17, 0 }
  0x14   : > { %p2399_p2 = scmp.eq.s32.totalorder %s1762_s17, 3  ;;  %p261_p3 = scmp.eq.s32.totalorder %s1763_s18, 3 }
  0x15   : > { %s2917_s19 = scalar_select %p2395_p1, 1, 0 }
  0x16   : > { %s2918_s20 = scalar_select %p2399_p2, 1, 0 }
  0x17   : > { %p2405_p4 = por %p2395_p1, %p61_p0  ;;  %p1764_p5 = scmp.ge.s32.totalorder %s2286_s16, 1 }
  0x18   : > { %p2410_p6 = por %p261_p3, %p61_p0  ;;  %p268_p7 = scmp.lt.s32.totalorder %s2286_s16, 5 }
  0x19   : > { %s2919_s21 = scalar_select %p2405_p4, 1, 0 }
  0x1a   : > { %s2920_s22 = scalar_select %p2410_p6, 1, 0 }
  0x1b   : > { %p2415_p8 = pnand %p1764_p5, %p268_p7  ;;  %s2288_s24 = smov [#allocation12]  }
  0x1c   : > { %2921 = sst [smem:[#allocation24_spill]] %s2920_s22  ;;  %s280_s25 = sshll.u32 %s2288_s24, 4  ;;  %s2419_s25 = int_to_ptr.vmem [resolvable:$true] %s280_s25 }
  0x1d   : > { %s2922_s23 = scalar_select %p2415_p8, 1, 0 }
  0x1e   : > { %p1899_p9 = pneg %p2415_p8  ;;  %s2289_s27 = smov [#allocation14]  }
  0x1f   : > { %s299_s28 = sshll.u32 %s2289_s27, 4  ;;  %s2290_s29 = smov [#allocation15]   ;;  %s2429_s28 = int_to_ptr.vmem [resolvable:$true] %s299_s28 }
  0x20   : > { %p2425_p10 = pnand %p1899_p9, %p2395_p1  ;;  %s2431_s17 = sshll.u32 %s2290_s29, 4  ;;  %s322_s17 = int_to_ptr.vmem [resolvable:$true] %s2431_s17 }
  0x21   : > { %s2924_s1 = sld [smem:[#allocation25_spill]] }
  0x22   : > { %p2441_p12 = pneg %p2425_p10 }
  0x27   : > { %s2066_s24 = scalar_lea.hbm %s2924_s1, 1024 }
  0x28   : > { %p2067_p11 = scmp.ne.s32.totalorder %s2924_s1, %s2066_s24  ;;  %p2073_p3 = scmp.lt.u32.totalorder %s2066_s24, %s2924_s1 }
  0x2a   : > { %p2069_p13 = pnand %p2441_p12, %p2067_p11 }
  0x2c   : > { %p2070_p0 = pneg %p2069_p13 }
  0x2e   : > { %p2075_p5 = pnand %p2073_p3, %p2070_p0 }
  0x30   : > { %2078 = shalt.err (!%p2075_p5)
}
  0x31   : > { %s2079_s9 = scalar_lea.vmem %s2419_s25, 1024  ;;  %p2087_p1 = scmp.lt.s32.totalorder %s2419_s25, %s2419_s25 }
  0x32   : > { %p2080_p7 = scmp.ne.s32.totalorder %s2419_s25, %s2079_s9  ;;  %p2088_p4 = scmp.lt.s32.totalorder %s2079_s9, %s2079_s9 }
  0x34   : > { %p2082_p9 = pnand %p2080_p7, %p2441_p12  ;;  %p2089_p11 = por %p2088_p4, %p2087_p1 }
  0x36   : > { %p2083_p6 = pneg %p2082_p9 }
  0x38   : > { %p2090_p13 = pnand %p2089_p11, %p2083_p6 }
  0x3a   : > { %2093 = shalt.err (!%p2090_p13)
}
  0x3b   : > { %s2291_s30 = smov 64   ;;  %s2292_s22 = smov 4  }
  0x3c   : > { %1902 = dma.hbm_to_vmem [thread:$0]  (!%p2425_p10), %s2924_s1, 1024, %s2419_s25, [#allocation13], %s2291_s30, %s2291_s30, %s2292_s22  }
  0x3d   : > { %s2926_s4 = sld [smem:[#allocation27_spill]] }
  0x43   : > { %s2094_s9 = scalar_lea.hbm %s2926_s4, 512 }
  0x44   : > { %p2095_p1 = scmp.ne.s32.totalorder %s2926_s4, %s2094_s9  ;;  %p2101_p0 = scmp.lt.u32.totalorder %s2094_s9, %s2926_s4 }
  0x46   : > { %p2097_p4 = pnand %p2095_p1, %p2441_p12 }
  0x48   : > { %p2098_p6 = pneg %p2097_p4 }
  0x4a   : > { %p2103_p3 = pnand %p2101_p0, %p2098_p6 }
  0x4c   : > { %2106 = shalt.err (!%p2103_p3)
}
  0x4d   : > { %s2107_s25 = scalar_lea.vmem %s2429_s28, 512  ;;  %p2115_p11 = scmp.lt.s32.totalorder %s2429_s28, %s2429_s28 }
  0x4e   : > { %p2108_p5 = scmp.ne.s32.totalorder %s2429_s28, %s2107_s25  ;;  %p2116_p13 = scmp.lt.s32.totalorder %s2107_s25, %s2107_s25 }
  0x50   : > { %p2110_p7 = pnand %p2108_p5, %p2441_p12  ;;  %p2117_p1 = por %p2116_p13, %p2115_p11 }
  0x52   : > { %p2111_p9 = pneg %p2110_p7 }
  0x54   : > { %p2118_p4 = pnand %p2117_p1, %p2111_p9 }
  0x56   : > { %2121 = shalt.err (!%p2118_p4)
}
  0x57   : > { %1905 = dma.hbm_to_vmem [thread:$0]  (!%p2425_p10), %s2926_s4, 512, %s2429_s28, [#allocation13], %s2291_s30, %s2291_s30, %s2292_s22  }
  0x58   : > { %s2122_s18 = scalar_lea.hbm %s2898_s8, 512 }
  0x59   : > { %p2123_p6 = scmp.ne.s32.totalorder %s2898_s8, %s2122_s18  ;;  %p2129_p5 = scmp.lt.u32.totalorder %s2122_s18, %s2898_s8 }
  0x5b   : > { %p2125_p0 = pnand %p2123_p6, %p2441_p12 }
  0x5d   : > { %p2126_p3 = pneg %p2125_p0 }
  0x5f   : > { %p2131_p7 = pnand %p2129_p5, %p2126_p3 }
  0x61   : > { %2134 = shalt.err (!%p2131_p7)
}
  0x62   : > { %s2135_s25 = scalar_lea.vmem %s322_s17, 512  ;;  %p2143_p1 = scmp.lt.s32.totalorder %s322_s17, %s322_s17 }
  0x63   : > { %p2136_p9 = scmp.ne.s32.totalorder %s322_s17, %s2135_s25  ;;  %p2144_p4 = scmp.lt.s32.totalorder %s2135_s25, %s2135_s25 }
  0x65   : > { %p2138_p11 = pnand %p2136_p9, %p2441_p12  ;;  %p2145_p8 = por %p2144_p4, %p2143_p1 }
  0x67   : > { %p2139_p13 = pneg %p2138_p11 }
  0x69   : > { %p2146_p2 = pnand %p2145_p8, %p2139_p13 }
  0x6b   : > { %2149 = shalt.err (!%p2146_p2)
}
  0x6c   : > { %1908 = dma.hbm_to_vmem [thread:$0]  (!%p2425_p10), %s2898_s8, 512, %s322_s17, [#allocation16], %s2291_s30, %s2291_s30, %s2292_s22  }
  0x6d   : > { %s36_s7 = sadd.s32 1, %s2278_s14  ;;  %s39_s26 = sadd.s32 1, %s2282_s15 }
  0x6e   : > { %p37_p2 = scmp.ge.s32.totalorder %s36_s7, 2  ;;  %s48_s5 = sadd.s32 1, %s2266_s11 }
  0x6f   : > { %p55_p8 = scmp.ne.s32.totalorder %s2266_s11, %s2262_s10  ;;  %p56_p12 = scmp.eq.s32.totalorder %s2286_s16, 0 }
  0x70   : > { %s2951_s7 = smov (%p37_p2, %s36_s7), 0  ;;  %s2953_s26 = smov (!%p37_p2, %s39_s26), %s2282_s15 }
  0x71   : > { %s44_s6 = ssub.s32 %s2278_s14, %s2951_s7  ;;  %p41_p6 = scmp.ge.s32.totalorder %s2953_s26, 2 }
  0x72   : > { %p2927_p0 = scmp.ne.s32.totalorder %s2918_s20, 0  ;;  %p2530_p10 = por %p56_p12, %p55_p8 }
  0x73   : > { %p1920_p5 = scmp.lt.s32.totalorder %s2286_s16, 4  ;;  %s2955_s26 = smov (%p41_p6, %s2953_s26), 0 }
  0x74   : > { %p2526_p3 = por %p2927_p0, %p55_p8  ;;  %s335_s30 = sand.u32 1, %s2266_s11  }
  0x75   : > { %s1770_s22 = sshll.u32 %s2282_s15, 1  ;;  %s43_s18 = ssub.s32 %s2282_s15, %s2955_s26 }
  0x76   : > { %s45_s24 = sor.u32 %s44_s6, %s43_s18  ;;  %s1769_s27 = sshll.u32 %s335_s30, 3 }
  0x77   : > { %p46_p7 = scmp.eq.s32.totalorder %s45_s24, 0  ;;  %s344_s20 = sadd.s32 %s2278_s14, %s1770_s22 }
  0x78   : > { %s339_s29 = scalar_lea.vmem [#allocation9], %s1769_s27  ;;  %s1771_s28 = sshll.u32 %s344_s20, 7 }
  0x79   : > { %s348_s9 = sshll.u32 %s339_s29, 4  ;;  %s2550_s4 = scalar_lea.hbm %s2890_s0, %s1771_s28  ;;  %s2545_s9 = int_to_ptr.vmem [resolvable:$true] %s348_s9 }
  0x7a   : > { %s2543_s25 = scalar_select %p46_p7, %s2266_s11, %s48_s5  }
  0x7b   : > { %p2556_p9 = pnand %p1920_p5, %p2530_p10  ;;  %s336_s5 = scalar_lea.sflag [#allocation10], %s335_s30 }
  0x7c   : > { %s2150_s22 = scalar_lea.hbm %s2550_s4, 128  ;;  %s2155_s18 = scalar_lea.hbm %s2890_s0, 512 }
  0x7d   : > { %p2151_p11 = scmp.ne.s32.totalorder %s2550_s4, %s2150_s22  ;;  %p2152_p13 = pneg %p2556_p9 }
  0x7e   : > { %p2156_p2 = scmp.lt.u32.totalorder %s2550_s4, %s2890_s0  ;;  %p2157_p8 = scmp.lt.u32.totalorder %s2155_s18, %s2150_s22 }
  0x7f   : > { %p2153_p1 = pnand %p2152_p13, %p2151_p11  ;;  %p2159_p6 = scmp.lt.u32.totalorder %s2150_s22, %s2550_s4 }
  0x80   : > { %p2158_p12 = por %p2157_p8, %p2156_p2 }
  0x81   : > { %p2154_p4 = pneg %p2153_p1 }
  0x82   : > { %p2160_p0 = por %p2159_p6, %p2158_p12 }
  0x84   : > { %p2161_p10 = pnand %p2160_p0, %p2154_p4 }
  0x86   : > { %2164 = shalt.err (!%p2161_p10)
}
  0x87   : > { %s2165_s30 = scalar_lea.vmem %s2545_s9, 128  ;;  %s2293_s20 = smov [#allocation9]  }
  0x88   : > { %p2166_p5 = scmp.ne.s32.totalorder %s2545_s9, %s2165_s30  ;;  %s2170_s29 = sshll.u32 %s2293_s20, 4  ;;  %s2171_s29 = int_to_ptr.vmem [resolvable:$false] %s2170_s29 }
  0x89   : > { %s2172_s28 = scalar_lea.vmem %s2171_s29, 256  ;;  %p2173_p1 = scmp.lt.s32.totalorder %s2545_s9, %s2171_s29 }
  0x8a   : > { %p2168_p7 = pnand %p2166_p5, %p2152_p13  ;;  %p2174_p2 = scmp.lt.s32.totalorder %s2172_s28, %s2165_s30 }
  0x8c   : > { %p2169_p11 = pneg %p2168_p7  ;;  %p2175_p8 = por %p2174_p2, %p2173_p1 }
  0x8e   : > { %p2176_p12 = pnand %p2175_p8, %p2169_p11 }
  0x90   : > { %2179 = shalt.err (!%p2176_p12)
}
  0x91   : > { %1912 = dma.hbm_to_vmem [thread:$0]  (!%p2556_p9), %s2550_s4, 128, %s2545_s9, %s336_s5  }
  0x92   : > { %p2931_p4 = scmp.ne.s32.totalorder %s2922_s23, 0 }
  0x93   : > { %s2588_s3 = sand.u32 (!%p2931_p4), 1, %s2262_s10   ;;  %p2932_p13 = scmp.ne.s32.totalorder (!%p2931_p4), %s2919_s21, 0 }
  0x94   : > { %357 = sbr.rel (%p2931_p4) target bundleno = 1264 (0x4f0), region = 56  ;;  %s1773_s22 = sshll.u32 (!%p2931_p4), %s2588_s3, 3 }
  0x95   : > { %s360_s1 = scalar_lea.sflag (!%p2931_p4), [#allocation10], %s2588_s3  ;;  %s2592_s17 = scalar_lea.vmem (!%p2931_p4), [#allocation9], %s1773_s22 }
  0x9b   : > { %2241 = dma.done.wait (%p2932_p13), %s360_s1, 128  }
  0x9c   : > { %2243 = vsyncadd (%p2932_p13), %s360_s1, 4294967168  ;;  %p2933_p9 = scmp.ne.s32.totalorder %s2917_s19, 0 }
  0x9e   : > { %2245 = dma.done.wait (%p2933_p9), [#allocation13], 1536  }
  0x9f   : > { %2247 = vsyncadd (%p2933_p9), [#allocation13], 4294965760 }
  0xa0   : > { %2249 = dma.done.wait (%p2933_p9), [#allocation16], 512  }
  0xa1   : > { %2251 = vsyncadd (%p2933_p9), [#allocation16], 4294966784  ;;  %s2606_s4 = scalar_lea.vmem [#allocation17], %s1773_s22  ;;  %p1778_p6 = scmp.ne.s32.totalorder %s2270_s12, 0 }
  0xa2   : > { %vm415_vm0 = vcmask (!%p1778_p6), 523264   ;;  %v2294_v0 = vmov (!%p1778_p6), 0.0  }
  0xa3   : > { %414 = sbr.rel (%p1778_p6) target bundleno = 170 (0xaa), region = 76  ;;  %416 = vst.msk [vmem:[#allocation7] sm:$0xff] (!%p1778_p6), %vm415_vm0, %v2294_v0  ;;  %417 = vst.msk [vmem:[#allocation7 + $0x8] sm:$0xff] (!%p1778_p6), %vm415_vm0, %v2294_v0 }
  0xa4   : > { %418 = vst.msk [vmem:[#allocation8] sm:$0xff] (!%p1778_p6), %vm415_vm0, %v2294_v0 }
  0xaa PF: > { %p1779_p0 = scmp.le.s32.totalorder %s2270_s12, 0 }
  0xab   : > { %v423_v1 = vld [vmem:[#allocation8 + $0xd] sm:$0x7] (!%p1779_p0)  ;;  %vm424_vm1 = vcmask (!%p1779_p0), 518144  }
  0xac   : > { %422 = sbr.rel (%p1779_p0) target bundleno = 179 (0xb3), region = 80  ;;  %425 = vst.msk [vmem:[#allocation8 + $0x5] sm:$0x7] (!%p1779_p0), %vm424_vm1, %v423_v1 }
  0xb3 PF: > { %v2002_v2 = vld [vmem:[#allocation12] sm:$0xff]   ;;  %v2295_v3 = vmov 0.0   ;;  %v2003_v4 = vld [vmem:[#allocation12 + $0x8] sm:$0xff]   ;;  %vm2296_vm2 = vmmov 0   ;;  %v2004_v5 = vld [vmem:[#allocation12 + $0x10] sm:$0xff]   ;;  %vm532_vm3 = vcmask 523264   ;;  %v544_v18 = vlaneseq }
  0xb4   : > { %1839 = vmatprep.subr.bf16.mxu0 %v2295_v3  ;;  %1859 = vmatprep.subr.bf16.mxu1 %v2295_v3  ;;  %v2005_v6 = vld [vmem:[#allocation12 + $0x18] sm:$0xff]   ;;  %v2006_v7 = vld [vmem:[#allocation12 + $0x20] sm:$0xff]   ;;  %v2007_v8 = vld [vmem:[#allocation12 + $0x28] sm:$0xff]   ;;  %s2934_s20 = sld [smem:[#allocation26_spill]]  ;;  %v2297_v53 = vmov 0   ;;  %s2935_s22 = sld [smem:[#allocation28_spill]] }
  0xb5   : > { %1840 = vmatpush3.bf16.msra.mxu0 %v2002_v2  ;;  %1855 = vmatprep.mubr.msk.bf16.mxu0 %vm2296_vm2, %v2295_v3  ;;  %v2008_v9 = vld [vmem:[#allocation12 + $0x30] sm:$0xff]   ;;  %v2009_v10 = vld [vmem:[#allocation12 + $0x38] sm:$0xff]   ;;  %v2010_v13 = vld [vmem:[#allocation14] sm:$0xff]   ;;  %v2632_v23 = vshrl.u32 %v544_v18, 7  ;;  %s2936_s19 = sld [smem:[#allocation29_spill]]  ;;  %vm945_vm7 = vcmask 7168  }
  0xb6   : > { %1841 = vmatprep.subr.bf16.mxu0 %v2295_v3  ;;  %1867 = vmatprep.mubr.msk.bf16.mxu1 %vm2296_vm2, %v2295_v3  ;;  %v426_v11 = vld [vmem:[%s2592_s17] sm:$0xff]  ;;  %v2011_v14 = vld [vmem:[#allocation14 + $0x8] sm:$0xff]   ;;  %v534_v22 = vld [vmem:[#allocation8] sm:$0xff]  ;;  %s2299_s9 = smov 64   ;;  %vm1488_vm8 = vcmask 1040384   ;;  %vm1490_vm9 = vcmask 1041408  }
  0xb7   : > { %v427_v12 = vpack.c.bf16 %v426_v11, %v426_v11  ;;  %1860 = vmatpush3.bf16.msra.mxu1 %v2010_v13  ;;  %v2012_v15 = vld [vmem:[#allocation14 + $0x10] sm:$0xff]   ;;  %v2013_v16 = vld [vmem:[#allocation14 + $0x18] sm:$0xff]   ;;  %v542_v24 = vrot.slane %v534_v22, 5  ;;  %v555_v25 = vrot.slane %v534_v22, 6  ;;  %v1788_v27 = vld [vmem:[%s2892_s2 + $0x3] ss:$0 sm:$0xff]  ;;  %2000 = vset.pattern.permute.xlu0 %v2297_v53 }
  0xb8   : > { %1861 = vmatprep.subr.bf16.mxu1 %v2295_v3  ;;  %vm546_vm4 = vcmp.lt.s32.totalorder %v2632_v23, 3  ;;  %vm557_vm5 = vcmp.lt.s32.totalorder %v2632_v23, 2  ;;  %v1789_v29 = vld [vmem:[%s2892_s2] ss:$0 sm:$0xff]  ;;  %v566_v31 = vrot.slane %v534_v22, 7  ;;  %vm568_vm6 = vcmp.lt.s32.totalorder %v2632_v23, 1  ;;  %2001 = vset.pattern.permute.xlu1 %v2297_v53 }
  0xb9   : > { %1842 = vmatpush3.bf16.msra.mxu0 %v2003_v4  ;;  %v1790_v35 = vld [vmem:[%s2892_s2 + $0x1] ss:$0 sm:$0xff]  ;;  %v1791_v39 = vld [vmem:[%s2892_s2 + $0x2] ss:$0 sm:$0xff]  ;;  %v2661_v54 = vsub.s32 0, %v2632_v23  ;;  %v863_v55 = vsub.s32 1, %v2632_v23 }
  0xba   : > { %1843 = vmatprep.subr.bf16.mxu0 %v2295_v3  ;;  %v1792_v44 = vld [vmem:[%s2934_s20] ss:$0 sm:$0xff]  ;;  %v875_v2 = vsub.s32 2, %v2632_v23  ;;  %vm1492_vm10 = vcmask 1042432   ;;  %vm1494_vm11 = vcmask 1043456   ;;  %vm1496_vm12 = vcmask 1044480  }
  0xbb   : > { %1862 = vmatpush3.bf16.msra.mxu1 %v2011_v14  ;;  %v1799_v56 = vld [vmem:[%s2935_s22] ss:$0 sm:$0xff]  ;;  %vm1498_vm13 = vcmask 1045504   ;;  %s2937_s6 = sld [smem:[#allocation23_spill]]  ;;  %vm1500_vm14 = vcmask 1046528   ;;  %s2938_s24 = sld [smem:[#allocation30_spill]] }
  0xbc   : > { %1863 = vmatprep.subr.bf16.mxu1 %v2295_v3  ;;  %v685_v13 = vld [vmem:[%s2936_s19] sm:$0xff]  ;;  %s1620_s29 = sshll.u32 %s2606_s4, 4  ;;  %s2939_s1 = sld [smem:[#allocation31_spill]]  ;;  %s2837_s29 = int_to_ptr.vmem [resolvable:$true] %s1620_s29 }
  0xbd   : > { %1844 = vmatpush3.bf16.msra.mxu0 %v2004_v5  ;;  %v687_v18 = vmul.f32 1.442695, %v685_v13  ;;  %s1605_s21 = scalar_lea.sflag [#allocation11], %s2588_s3  ;;  %s2180_s23 = scalar_lea.vmem %s2837_s29, 128 }
  0xbe   : > { %1845 = vmatprep.subr.bf16.mxu0 %v2295_v3  ;;  %p2181_p10 = scmp.ne.s32.totalorder %s2837_s29, %s2180_s23 }
  0xbf   : > { %1864 = vmatpush3.bf16.msra.mxu1 %v2012_v15  ;;  %v923_v15 = vsub.s32 6, %v2632_v23 }
  0xc0   : > { %1865 = vmatprep.subr.bf16.mxu1 %v2295_v3  ;;  %p2182_p5 = pnand %p2181_p10, %p2526_p3 }
  0xc1   : > { %1846 = vmatpush3.bf16.msra.mxu0 %v2005_v6  ;;  %v887_v6 = vsub.s32 3, %v2632_v23  ;;  %s1816_s27 = sshll.u32 %s2937_s6, 1 }
  0xc2   : > { %1847 = vmatprep.subr.bf16.mxu0 %v2295_v3  ;;  %s1616_s30 = sadd.s32 %s2270_s12, %s1816_s27  ;;  %p2183_p7 = pneg %p2182_p5 }
  0xc3   : > { %1866 = vmatpush3.bf16.msra.mxu1 %v2013_v16  ;;  %v686_v16 = vld [vmem:[%s2936_s19 + $0x8] sm:$0xff]  ;;  %s1817_s20 = sshll.u32 %s1616_s30, 7  ;;  %s2300_s12 = smov [#allocation17]  }
  0xc4   : > { %1871 = vmatprep.subr.bf16.mxu1 %v2295_v3  ;;  %s2835_s17 = scalar_lea.hbm %s2939_s1, %s1817_s20 }
  0xc5   : > { %1848 = vmatpush3.bf16.msra.mxu0 %v2006_v7 }
  0xc6   : > { %1849 = vmatprep.subr.bf16.mxu0 %v2295_v3 }
  0xc9   : > { %1850 = vmatpush3.bf16.msra.mxu0 %v2007_v8  ;;  %v899_v8 = vsub.s32 4, %v2632_v23 }
  0xca   : > { %1851 = vmatprep.subr.bf16.mxu0 %v2295_v3 }
  0xcd   : > { %1852 = vmatpush3.bf16.msra.mxu0 %v2008_v9 }
  0xce   : > { %1853 = vmatprep.subr.bf16.mxu0 %v2295_v3 }
  0xd1   : > { %1854 = vmatpush3.bf16.msra.mxu0 %v2009_v10  ;;  %v911_v10 = vsub.s32 5, %v2632_v23 }
  0xd4   : > { %1856 = vmatmul.mubr.bf16.vlgmr.msra.gmra.mrb[0].mxu0 %v427_v12 }
 0x1a7   : > { %v2628_v17 = vpop.f32.mrb[0].mxu0 }
 0x1a8   : > { %533 = vst.msk [vmem:[#allocation8 + $0x8] sm:$0xff] %vm532_vm3, %v2628_v17  ;;  %v1857_v19 = vpop.f32.mrb[1].mxu0  ;;  %v541_v36 = vmul.f32 %v1788_v27, %v2628_v17 }
 0x1a9   : > { %v529_v20 = vpop.f32.mrb[2].mxu0  ;;  %v689_v19 = vmul.f32 1.442695, %v686_v16 }
 0x1aa   : > { %v1858_v21 = vpop.f32.mrb[3].mxu0  ;;  %v2298_v20 = vmov 1966171168  }
 0x1ab   : > { %v696_v21 = vunpack.c.l.s4 %v2298_v20 }
 0x1af   : > { %v535_v26 = vld [vmem:[#allocation8 + $0x8] sm:$0xff] }
 0x1b0   : > { %v543_v28 = vrot.slane %v535_v26, 5  ;;  %v556_v30 = vrot.slane %v535_v26, 6  ;;  %v567_v32 = vrot.slane %v535_v26, 7 }
 0x1b2   : > { %v547_v33 = vsel %vm546_vm4, %v542_v24, %v543_v28  ;;  %v558_v34 = vsel %vm557_vm5, %v555_v25, %v556_v30  ;;  %v569_v38 = vsel %vm568_vm6, %v566_v31, %v567_v32  ;;  %v697_v24 = vunpack.c.0.s8 %v696_v21 }
 0x1b3   : > { %v553_v37 = vmul.f32 %v1789_v29, %v547_v33  ;;  %v564_v41 = vmul.f32 %v1790_v35, %v558_v34  ;;  %v575_v43 = vmul.f32 %v1791_v39, %v569_v38  ;;  %v935_v34 = vsub.s32 7, %v2632_v23 }
 0x1b4   : > { %v700_v28 = vsub.s32 %v697_v24, %v2632_v23 }
 0x1b5   : > { %v554_v40 = vadd.f32 %v553_v37, %v541_v36 }
 0x1b7   : > { %v565_v42 = vadd.f32 %v564_v41, %v554_v40 }
 0x1b9   : > { %v576_v45 = vadd.f32 %v575_v43, %v565_v42 }
 0x1bb   : > { %v584_v46 = vadd.f32 %v1792_v44, %v576_v45 }
 0x1bd   : > { %v1793_v47 = vmul.f32 -1.442695, %v584_v46 }
 0x1bf   : > { %2018 = vpow2.f32 %v1793_v47 }
 0x1c9   : > { %v2019_v48 = vpop.eup %2018 }
 0x1ca   : > { %v588_v49 = vadd.f32 1.0, %v2019_v48 }
 0x1cc   : > { %2020 = vrcp.f32 %v588_v49 }
 0x1d6   : > { %v2021_v50 = vpop.eup %2020 }
 0x1d7   : > { %v2653_v51 = vmul.f32 %v2021_v50, %v584_v46 }
 0x1d9   : > { %v592_v52 = vpack.c.bf16 %v2653_v51, %v2653_v51 }
 0x1db   : > { %1868 = vmatmul.mubr.msk.bf16.vlgmr.msra.gmra.mrb[0].mxu1 %vm532_vm3, %v592_v52 }
 0x1dc   : > { %1879 = vmatprep.mubr.msk.bf16.mxu1 %vm2296_vm2, %v2295_v3 }
 0x2ae   : > { %v2667_v57 = vpop.f32.mrb[0].mxu1 }
 0x2af   : > { %v675_v58 = vadd.f32 %v1799_v56, %v2667_v57  ;;  %v1869_v59 = vpop.f32.mrb[1].mxu1  ;;  %v864_v60 = vrot.slane %v2667_v57, %v863_v55  ;;  %v852_v61 = vrot.slane %v2667_v57, %v2661_v54  ;;  %v876_v5 = vrot.slane %v2667_v57, %v875_v2 }
 0x2b0   : > { %v665_v62 = vpop.f32.mrb[2].mxu1  ;;  %v2677_v7 = vrot.slane %v2667_v57, %v887_v6  ;;  %v2683_v9 = vrot.slane %v2667_v57, %v899_v8  ;;  %v2692_v14 = vrot.slane %v2667_v57, %v911_v10  ;;  %v2701_v22 = vrot.slane %v2667_v57, %v923_v15 }
 0x2b1   : > { %v677_v63 = vand.u32 2147483647, %v675_v58  ;;  %867 = vbcast.lane.b32.xlu1 %v864_v60, 320  ;;  %855 = vbcast.lane.b32.xlu0 %v852_v61, 320  ;;  %v1870_v0 = vpop.f32.mrb[3].mxu1  ;;  %v676_v26 = vmax.f32 %v675_v58, 0.0  ;;  %v2710_v43 = vrot.slane %v2667_v57, %v935_v34 }
 0x2b3   : > { %v678_v1 = vsub.f32 0.0, %v677_v63 }
 0x2b5   : > { %v679_v4 = vmul.f32 1.442695, %v678_v1  ;;  %871 = vbcast.lane.b32.xlu1 %v864_v60, 328  ;;  %859 = vbcast.lane.b32.xlu0 %v852_v61, 328 }
 0x2b7   : > { %2022 = vpow2.f32 %v679_v4 }
 0x2b9   : > { %883 = vbcast.lane.b32.xlu1 %v876_v5, 328  ;;  %879 = vbcast.lane.b32.xlu0 %v876_v5, 320 }
 0x2bd   : > { %895 = vbcast.lane.b32.xlu1 %v2677_v7, 328  ;;  %891 = vbcast.lane.b32.xlu0 %v2677_v7, 320 }
 0x2c1   : > { %v2023_v11 = vpop.eup %2022  ;;  %907 = vbcast.lane.b32.xlu1 %v2683_v9, 328  ;;  %903 = vbcast.lane.b32.xlu0 %v2683_v9, 320 }
 0x2c2   : > { %v681_v12 = vadd.f32 1.0, %v2023_v11 }
 0x2c4   : > { %2024 = vlog2.f32 %v681_v12 }
 0x2c5   : > { %919 = vbcast.lane.b32.xlu1 %v2692_v14, 328  ;;  %915 = vbcast.lane.b32.xlu0 %v2692_v14, 320  ;;  %2026 = vpow2.f32 %v687_v18 }
 0x2c6   : > { %2028 = vpow2.f32 %v689_v19 }
 0x2c9   : > { %931 = vbcast.lane.b32.xlu1 %v2701_v22, 328  ;;  %927 = vbcast.lane.b32.xlu0 %v2701_v22, 320 }
 0x2cd   : > { %968 = vbcast.lane.b32.xlu1 %v852_v61, 344  ;;  %964 = vbcast.lane.b32.xlu0 %v852_v61, 336 }
 0x2ce   : > { %v2025_v25 = vpop.eup %2024 }
 0x2cf   : > { %v683_v27 = vmul.f32 0.6931472, %v2025_v25  ;;  %v2027_v30 = vpop.eup %2026 }
 0x2d0   : > { %v2029_v35 = vpop.eup %2028  ;;  %v691_v39 = vsub.f32 0.0, %v2027_v30 }
 0x2d1   : > { %v684_v29 = vadd.f32 %v683_v27, %v676_v26  ;;  %976 = vbcast.lane.b32.xlu1 %v864_v60, 344  ;;  %972 = vbcast.lane.b32.xlu0 %v864_v60, 336  ;;  %v692_v44 = vsub.f32 0.0, %v2029_v35 }
 0x2d3   : > { %v694_v31 = vcombine.high %v684_v29, %v684_v29  ;;  %v701_v32 = vrot.slane %v684_v29, %v700_v28  ;;  %v847_v33 = vmul.f32 %v684_v29, %v2653_v51 }
 0x2d5   : > { %v708_v36 = vrot.slane %v694_v31, %v700_v28  ;;  %v709_v37 = vcombine.high %v701_v32, %v701_v32  ;;  %v717_v38 = vrot.slane %v701_v32, %v700_v28  ;;  %848 = vst.msk [vmem:[#allocation3] sm:$0xff] %vm532_vm3, %v847_v33  ;;  %984 = vbcast.lane.b32.xlu1 %v876_v5, 344 }
 0x2d6   : > { %980 = vbcast.lane.b32.xlu0 %v876_v5, 336 }
 0x2d7   : > { %v710_v40 = vcombine.high %v708_v36, %v708_v36  ;;  %v731_v41 = vrot.slane %v709_v37, %v700_v28  ;;  %v739_v42 = vcombine.high %v717_v38, %v717_v38  ;;  %v746_v45 = vrot.slane %v717_v38, %v2661_v54 }
 0x2d8   : > { %v724_v46 = vrot.slane %v708_v36, %v700_v28 }
 0x2d9   : > { %v741_v23 = vcombine.high %v731_v41, %v731_v41  ;;  %v750_v47 = vrot.slane %v731_v41, %v2661_v54  ;;  %943 = vbcast.lane.b32.xlu1 %v2710_v43, 328  ;;  %v754_v48 = vrot.slane %v739_v42, %v2661_v54  ;;  %v738_v49 = vrot.slane %v710_v40, %v700_v28 }
 0x2da   : > { %939 = vbcast.lane.b32.xlu0 %v2710_v43, 320  ;;  %v783_v52 = vmul.f32 %v746_v45, %v691_v39  ;;  %v784_v53 = vmul.f32 %v746_v45, %v692_v44  ;;  %v740_v57 = vcombine.high %v724_v46, %v724_v46  ;;  %v762_v58 = vrot.slane %v724_v46, %v2661_v54 }
 0x2db   : > { %v758_v50 = vrot.slane %v741_v23, %v2661_v54  ;;  %v785_v55 = vmul.f32 %v750_v47, %v691_v39  ;;  %v786_v56 = vmul.f32 %v750_v47, %v692_v44  ;;  %v787_v59 = vmul.f32 %v754_v48, %v691_v39 }
 0x2dc   : > { %v788_v60 = vmul.f32 %v754_v48, %v692_v44  ;;  %v742_v61 = vcombine.high %v738_v49, %v738_v49  ;;  %v766_v62 = vrot.slane %v738_v49, %v2661_v54  ;;  %v799_v0 = vmul.f32 1.442695, %v783_v52 }
 0x2dd   : > { %992 = vbcast.lane.b32.xlu1 %v2677_v7, 344  ;;  %v789_v63 = vmul.f32 %v758_v50, %v691_v39  ;;  %v790_v1 = vmul.f32 %v758_v50, %v692_v44  ;;  %v801_v2 = vmul.f32 1.442695, %v784_v53  ;;  %v803_v4 = vmul.f32 1.442695, %v785_v55 }
 0x2de   : > { %988 = vbcast.lane.b32.xlu0 %v2677_v7, 336  ;;  %v805_v5 = vmul.f32 1.442695, %v786_v56  ;;  %v770_v6 = vrot.slane %v740_v57, %v2661_v54  ;;  %v791_v8 = vmul.f32 %v762_v58, %v691_v39  ;;  %2030 = vpow2.f32 %v799_v0 }
 0x2df   : > { %v807_v10 = vmul.f32 1.442695, %v787_v59  ;;  %v792_v11 = vmul.f32 %v762_v58, %v692_v44  ;;  %2032 = vpow2.f32 %v801_v2  ;;  %v809_v12 = vmul.f32 1.442695, %v788_v60 }
 0x2e0   : > { %v774_v13 = vrot.slane %v742_v61, %v2661_v54  ;;  %v793_v7 = vmul.f32 %v766_v62, %v691_v39  ;;  %2034 = vpow2.f32 %v803_v4  ;;  %v811_v15 = vmul.f32 1.442695, %v789_v63 }
 0x2e1   : > { %v794_v16 = vmul.f32 %v766_v62, %v692_v44  ;;  %2036 = vpow2.f32 %v805_v5  ;;  %v813_v18 = vmul.f32 1.442695, %v790_v1  ;;  %v795_v19 = vmul.f32 %v770_v6, %v691_v39  ;;  %1000 = vbcast.lane.b32.xlu1 %v2683_v9, 344 }
 0x2e2   : > { %2038 = vpow2.f32 %v807_v10  ;;  %v815_v20 = vmul.f32 1.442695, %v791_v8  ;;  %996 = vbcast.lane.b32.xlu0 %v2683_v9, 336  ;;  %v796_v21 = vmul.f32 %v770_v6, %v692_v44  ;;  %v817_v24 = vmul.f32 1.442695, %v792_v11 }
 0x2e3   : > { %2040 = vpow2.f32 %v809_v12  ;;  %v797_v25 = vmul.f32 %v774_v13, %v691_v39  ;;  %v819_v26 = vmul.f32 1.442695, %v793_v7  ;;  %v798_v54 = vmul.f32 %v774_v13, %v692_v44 }
 0x2e4   : > { %2042 = vpow2.f32 %v811_v15  ;;  %v821_v27 = vmul.f32 1.442695, %v794_v16  ;;  %v823_v28 = vmul.f32 1.442695, %v795_v19  ;;  %v825_v29 = vmul.f32 1.442695, %v796_v21 }
 0x2e5   : > { %2044 = vpow2.f32 %v813_v18  ;;  %1008 = vbcast.lane.b32.xlu1 %v2692_v14, 344  ;;  %v827_v9 = vmul.f32 1.442695, %v797_v25  ;;  %v829_v32 = vmul.f32 1.442695, %v798_v54 }
 0x2e6   : > { %2046 = vpow2.f32 %v815_v20  ;;  %1004 = vbcast.lane.b32.xlu0 %v2692_v14, 336 }
 0x2e7   : > { %2048 = vpow2.f32 %v817_v24 }
 0x2e8   : > { %v2031_v30 = vpop.eup %2030  ;;  %2050 = vpow2.f32 %v819_v26 }
 0x2e9   : > { %v2033_v31 = vpop.eup %2032  ;;  %2052 = vpow2.f32 %v821_v27  ;;  %1016 = vbcast.lane.b32.xlu1 %v2701_v22, 344 }
 0x2ea   : > { %v2035_v33 = vpop.eup %2034  ;;  %2054 = vpow2.f32 %v823_v28  ;;  %1012 = vbcast.lane.b32.xlu0 %v2701_v22, 336  ;;  %v831_v34 = vpack.c.bf16 %v2033_v31, %v2031_v30 }
 0x2eb   : > { %v2037_v35 = vpop.eup %2036  ;;  %2056 = vpow2.f32 %v825_v29 }
 0x2ec   : > { %v2039_v36 = vpop.eup %2038  ;;  %2058 = vpow2.f32 %v827_v9  ;;  %839 = vst.msk [vmem:[#allocation2] sm:$0xff] %vm532_vm3, %v831_v34  ;;  %v832_v14 = vpack.c.bf16 %v2037_v35, %v2035_v33  ;;  %v1809_v33 = vmul.f32 -1.442695, %v2628_v17 }
 0x2ed   : > { %v2041_v37 = vpop.eup %2040  ;;  %2060 = vpow2.f32 %v829_v32  ;;  %1024 = vbcast.lane.b32.xlu1 %v2710_v43, 344 }
 0x2ee   : > { %v2043_v38 = vpop.eup %2042  ;;  %1020 = vbcast.lane.b32.xlu0 %v2710_v43, 336  ;;  %840 = vst.msk [vmem:[#allocation2 + $0x8] sm:$0xff] %vm532_vm3, %v832_v14  ;;  %v833_v39 = vpack.c.bf16 %v2041_v37, %v2039_v36  ;;  %2062 = vpow2.f32 %v1809_v33 }
 0x2ef   : > { %v2045_v40 = vpop.eup %2044 }
 0x2f0   : > { %v2047_v22 = vpop.eup %2046  ;;  %841 = vst.msk [vmem:[#allocation2 + $0x10] sm:$0xff] %vm532_vm3, %v833_v39  ;;  %v834_v41 = vpack.c.bf16 %v2045_v40, %v2043_v38 }
 0x2f1   : > { %v2049_v42 = vpop.eup %2048 }
 0x2f2   : > { %v2051_v44 = vpop.eup %2050  ;;  %842 = vst.msk [vmem:[#allocation2 + $0x18] sm:$0xff] %vm532_vm3, %v834_v41  ;;  %v835_v45 = vpack.c.bf16 %v2049_v42, %v2047_v22 }
 0x2f3   : > { %v2053_v46 = vpop.eup %2052 }
 0x2f4   : > { %v2055_v23 = vpop.eup %2054  ;;  %843 = vst.msk [vmem:[#allocation2 + $0x20] sm:$0xff] %vm532_vm3, %v835_v45  ;;  %v836_v47 = vpack.c.bf16 %v2053_v46, %v2051_v44 }
 0x2f5   : > { %v2057_v48 = vpop.eup %2056 }
 0x2f6   : > { %v2059_v43 = vpop.eup %2058  ;;  %844 = vst.msk [vmem:[#allocation2 + $0x28] sm:$0xff] %vm532_vm3, %v836_v47  ;;  %v837_v50 = vpack.c.bf16 %v2057_v48, %v2055_v23 }
 0x2f7   : > { %v2061_v49 = vpop.eup %2060 }
 0x2f8   : > { %v838_v52 = vpack.c.bf16 %v2061_v49, %v2059_v43  ;;  %845 = vst.msk [vmem:[#allocation2 + $0x30] sm:$0xff] %vm532_vm3, %v837_v50  ;;  %v2063_v41 = vpop.eup %2062 }
 0x2f9   : > { %v1518_v23 = vadd.f32 1.0, %v2063_v41 }
 0x2fa   : > { %846 = vst.msk [vmem:[#allocation2 + $0x38] sm:$0xff] %vm532_vm3, %v838_v52 }
 0x2fb   : > { %2064 = vrcp.f32 %v1518_v23  ;;  %v1803_v23 = vld [vmem:[#allocation3 + $0x3] ss:$0 sm:$0xff] }
 0x323   : > { %v868_v53 = vpop.permute.xlu1 %867  ;;  %v856_v55 = vpop.permute.xlu0 %855 }
 0x324   : > { %948 = vst.msk [vmem:[#allocation4 + $0x10] sm:$0xff] %vm945_vm7, %v868_v53  ;;  %946 = vst.msk [vmem:[#allocation4] sm:$0xff] %vm945_vm7, %v856_v55 }
 0x327   : > { %v872_v56 = vpop.permute.xlu1 %871  ;;  %v860_v57 = vpop.permute.xlu0 %859 }
 0x328   : > { %949 = vst.msk [vmem:[#allocation4 + $0x18] sm:$0xff] %vm945_vm7, %v872_v56  ;;  %947 = vst.msk [vmem:[#allocation4 + $0x8] sm:$0xff] %vm945_vm7, %v860_v57 }
 0x32b   : > { %v884_v58 = vpop.permute.xlu1 %883  ;;  %v880_v59 = vpop.permute.xlu0 %879  ;;  %v1052_v60 = vld [vmem:[#allocation4] sm:$0xff]  ;;  %v1108_v5 = vld [vmem:[#allocation4 + $0x10] sm:$0xff] }
 0x32c   : > { %951 = vst.msk [vmem:[#allocation4 + $0x28] sm:$0xff] %vm945_vm7, %v884_v58  ;;  %950 = vst.msk [vmem:[#allocation4 + $0x20] sm:$0xff] %vm945_vm7, %v880_v59  ;;  %1060 = vperm.xlu0 %2000, %v1052_v60   ;;  %v2065_v59 = vpop.eup %2064 }
 0x32f   : > { %v896_v61 = vpop.permute.xlu1 %895  ;;  %v892_v62 = vpop.permute.xlu0 %891  ;;  %v1109_v63 = vld [vmem:[#allocation4 + $0x18] sm:$0xff]  ;;  %v1053_v0 = vld [vmem:[#allocation4 + $0x8] sm:$0xff] }
 0x330   : > { %953 = vst.msk [vmem:[#allocation4 + $0x38] sm:$0xff] %vm945_vm7, %v896_v61  ;;  %952 = vst.msk [vmem:[#allocation4 + $0x30] sm:$0xff] %vm945_vm7, %v892_v62  ;;  %1121 = vperm.xlu0 %2000, %v1109_v63   ;;  %1065 = vperm.xlu1 %2001, %v1053_v0   ;;  %v1521_v61 = vmul.f32 %v2065_v59, %v2628_v17  ;;  %v2014_v62 = vld [vmem:[#allocation15] sm:$0xff]   ;;  %v2015_v63 = vld [vmem:[#allocation15 + $0x8] sm:$0xff]  }
 0x331   : > { %1872 = vmatpush3.bf16.msra.mxu1 %v2014_v62  ;;  %v2016_v0 = vld [vmem:[#allocation15 + $0x10] sm:$0xff]   ;;  %v1800_v17 = vld [vmem:[#allocation3] ss:$0 sm:$0xff] }
 0x332   : > { %1873 = vmatprep.subr.bf16.mxu1 %v2295_v3 }
 0x333   : > { %v908_v1 = vpop.permute.xlu1 %907  ;;  %v904_v2 = vpop.permute.xlu0 %903  ;;  %v1165_v4 = vld [vmem:[#allocation4 + $0x28] sm:$0xff]  ;;  %v1164_v11 = vld [vmem:[#allocation4 + $0x20] sm:$0xff] }
 0x334   : > { %955 = vst.msk [vmem:[#allocation4 + $0x48] sm:$0xff] %vm945_vm7, %v908_v1  ;;  %954 = vst.msk [vmem:[#allocation4 + $0x40] sm:$0xff] %vm945_vm7, %v904_v2  ;;  %1177 = vperm.xlu0 %2000, %v1165_v4   ;;  %1116 = vperm.xlu1 %2001, %v1108_v5   ;;  %v2017_v1 = vld [vmem:[#allocation15 + $0x18] sm:$0xff]   ;;  %v1044_v2 = vld [vmem:[#allocation2] sm:$0xff] }
 0x335   : > { %1874 = vmatpush3.bf16.msra.mxu1 %v2015_v63  ;;  %v1045_v4 = vunpack.c.l.bf16 %v1044_v2 }
 0x336   : > { %1875 = vmatprep.subr.bf16.mxu1 %v2295_v3 }
 0x337   : > { %v920_v6 = vpop.permute.xlu1 %919  ;;  %v916_v8 = vpop.permute.xlu0 %915  ;;  %v1221_v10 = vld [vmem:[#allocation4 + $0x38] sm:$0xff]  ;;  %v1220_v15 = vld [vmem:[#allocation4 + $0x30] sm:$0xff] }
 0x338   : > { %957 = vst.msk [vmem:[#allocation4 + $0x58] sm:$0xff] %vm945_vm7, %v920_v6  ;;  %956 = vst.msk [vmem:[#allocation4 + $0x50] sm:$0xff] %vm945_vm7, %v916_v8  ;;  %1233 = vperm.xlu0 %2000, %v1221_v10   ;;  %1172 = vperm.xlu1 %2001, %v1164_v11   ;;  %v1042_v6 = vld [vmem:[#allocation7] sm:$0xff]  ;;  %v1046_v10 = vunpack.c.h.bf16 %v1044_v2  ;;  %v1043_v11 = vld [vmem:[#allocation7 + $0x8] sm:$0xff] }
 0x339   : > { %1876 = vmatpush3.bf16.msra.mxu1 %v2016_v0 }
 0x33a   : > { %1877 = vmatprep.subr.bf16.mxu1 %v2295_v3 }
 0x33b   : > { %v932_v12 = vpop.permute.xlu1 %931  ;;  %v928_v13 = vpop.permute.xlu0 %927  ;;  %v1277_v7 = vld [vmem:[#allocation4 + $0x48] sm:$0xff]  ;;  %v1276_v20 = vld [vmem:[#allocation4 + $0x40] sm:$0xff] }
 0x33c   : > { %959 = vst.msk [vmem:[#allocation4 + $0x68] sm:$0xff] %vm945_vm7, %v932_v12  ;;  %958 = vst.msk [vmem:[#allocation4 + $0x60] sm:$0xff] %vm945_vm7, %v928_v13  ;;  %1289 = vperm.xlu0 %2000, %v1277_v7   ;;  %1228 = vperm.xlu1 %2001, %v1220_v15   ;;  %v1047_v12 = vmul.f32 %v1045_v4, %v1042_v6  ;;  %v1099_v15 = vld [vmem:[#allocation2 + $0x8] sm:$0xff] }
 0x33d   : > { %1878 = vmatpush3.bf16.msra.mxu1 %v2017_v1  ;;  %v1101_v3 = vunpack.c.h.bf16 %v1099_v15 }
 0x33f   : > { %v969_v16 = vpop.permute.xlu1 %968  ;;  %v965_v18 = vpop.permute.xlu0 %964  ;;  %v1333_v19 = vld [vmem:[#allocation4 + $0x58] sm:$0xff]  ;;  %v1332_v26 = vld [vmem:[#allocation4 + $0x50] sm:$0xff] }
 0x340   : > { %1027 = vst.msk [vmem:[#allocation5 + $0x8] sm:$0xff] %vm945_vm7, %v969_v16  ;;  %1026 = vst.msk [vmem:[#allocation5] sm:$0xff] %vm945_vm7, %v965_v18  ;;  %1345 = vperm.xlu0 %2000, %v1333_v19   ;;  %1284 = vperm.xlu1 %2001, %v1276_v20   ;;  %v1048_v18 = vmul.f32 %v1046_v10, %v1043_v11 }
 0x343   : > { %v977_v21 = vpop.permute.xlu1 %976  ;;  %v973_v24 = vpop.permute.xlu0 %972  ;;  %v1389_v25 = vld [vmem:[#allocation4 + $0x68] sm:$0xff]  ;;  %v1388_v29 = vld [vmem:[#allocation4 + $0x60] sm:$0xff] }
 0x344   : > { %1029 = vst.msk [vmem:[#allocation5 + $0x18] sm:$0xff] %vm945_vm7, %v977_v21  ;;  %1028 = vst.msk [vmem:[#allocation5 + $0x10] sm:$0xff] %vm945_vm7, %v973_v24  ;;  %1401 = vperm.xlu0 %2000, %v1389_v25   ;;  %1340 = vperm.xlu1 %2001, %v1332_v26   ;;  %v1100_v21 = vunpack.c.l.bf16 %v1099_v15  ;;  %v1801_v24 = vld [vmem:[#allocation3 + $0x1] ss:$0 sm:$0xff] }
 0x347   : > { %v985_v54 = vpop.permute.xlu1 %984  ;;  %v1074_v28 = vld [vmem:[#allocation5 + $0x8] sm:$0xff]  ;;  %v1073_v31 = vld [vmem:[#allocation5] sm:$0xff] }
 0x348   : > { %v981_v27 = vpop.permute.xlu0 %980  ;;  %1031 = vst.msk [vmem:[#allocation5 + $0x28] sm:$0xff] %vm945_vm7, %v985_v54  ;;  %1082 = vperm.xlu0 %2000, %v1074_v28   ;;  %1396 = vperm.xlu1 %2001, %v1388_v29   ;;  %v1155_v54 = vld [vmem:[#allocation2 + $0x10] sm:$0xff] }
 0x349   : > { %1030 = vst.msk [vmem:[#allocation5 + $0x20] sm:$0xff] %vm945_vm7, %v981_v27  ;;  %v1156_v33 = vunpack.c.l.bf16 %v1155_v54 }
 0x34b   : > { %v944_v30 = vpop.permute.xlu1 %943  ;;  %v1130_v9 = vld [vmem:[#allocation5 + $0x18] sm:$0xff]  ;;  %v1129_v36 = vld [vmem:[#allocation5 + $0x10] sm:$0xff] }
 0x34c   : > { %961 = vst.msk [vmem:[#allocation4 + $0x78] sm:$0xff] %vm945_vm7, %v944_v30  ;;  %v940_v32 = vpop.permute.xlu0 %939  ;;  %1138 = vperm.xlu0 %2000, %v1130_v9   ;;  %1077 = vperm.xlu1 %2001, %v1073_v31  }
 0x34d   : > { %960 = vst.msk [vmem:[#allocation4 + $0x70] sm:$0xff] %vm945_vm7, %v940_v32  ;;  %v1157_v32 = vunpack.c.h.bf16 %v1155_v54 }
 0x34f   : > { %v993_v34 = vpop.permute.xlu1 %992  ;;  %v1186_v35 = vld [vmem:[#allocation5 + $0x28] sm:$0xff] }
 0x350   : > { %1033 = vst.msk [vmem:[#allocation5 + $0x38] sm:$0xff] %vm945_vm7, %v993_v34  ;;  %v989_v14 = vpop.permute.xlu0 %988  ;;  %1194 = vperm.xlu0 %2000, %v1186_v35   ;;  %1133 = vperm.xlu1 %2001, %v1129_v36   ;;  %v1185_v37 = vld [vmem:[#allocation5 + $0x20] sm:$0xff]  ;;  %v1802_v34 = vld [vmem:[#allocation3 + $0x2] ss:$0 sm:$0xff] }
 0x351   : > { %1032 = vst.msk [vmem:[#allocation5 + $0x30] sm:$0xff] %vm945_vm7, %v989_v14  ;;  %v1211_v14 = vld [vmem:[#allocation2 + $0x18] sm:$0xff] }
 0x353   : > { %v1001_v38 = vpop.permute.xlu1 %1000  ;;  %v1445_v45 = vld [vmem:[#allocation4 + $0x78] sm:$0xff] }
 0x354   : > { %1189 = vperm.xlu1 %2001, %v1185_v37   ;;  %v997_v39 = vpop.permute.xlu0 %996  ;;  %1035 = vst.msk [vmem:[#allocation5 + $0x48] sm:$0xff] %vm945_vm7, %v1001_v38  ;;  %v1444_v46 = vld [vmem:[#allocation4 + $0x70] sm:$0xff] }
 0x355   : > { %1034 = vst.msk [vmem:[#allocation5 + $0x40] sm:$0xff] %vm945_vm7, %v997_v39 }
 0x357   : > { %v1242_v40 = vld [vmem:[#allocation5 + $0x38] sm:$0xff]  ;;  %v1009_v42 = vpop.permute.xlu1 %1008 }
 0x358   : > { %1250 = vperm.xlu0 %2000, %v1242_v40   ;;  %v1241_v22 = vld [vmem:[#allocation5 + $0x30] sm:$0xff]  ;;  %v1005_v44 = vpop.permute.xlu0 %1004  ;;  %1037 = vst.msk [vmem:[#allocation5 + $0x58] sm:$0xff] %vm945_vm7, %v1009_v42  ;;  %v1213_v42 = vunpack.c.h.bf16 %v1211_v14 }
 0x359   : > { %1245 = vperm.xlu1 %2001, %v1241_v22   ;;  %1036 = vst.msk [vmem:[#allocation5 + $0x50] sm:$0xff] %vm945_vm7, %v1005_v44 }
 0x35b   : > { %v1017_v47 = vpop.permute.xlu1 %1016  ;;  %v1298_v43 = vld [vmem:[#allocation5 + $0x48] sm:$0xff] }
 0x35c   : > { %1457 = vperm.xlu0 %2000, %v1445_v45   ;;  %v1013_v48 = vpop.permute.xlu0 %1012  ;;  %1039 = vst.msk [vmem:[#allocation5 + $0x68] sm:$0xff] %vm945_vm7, %v1017_v47  ;;  %v1297_v49 = vld [vmem:[#allocation5 + $0x40] sm:$0xff] }
 0x35d   : > { %1452 = vperm.xlu1 %2001, %v1444_v46   ;;  %1038 = vst.msk [vmem:[#allocation5 + $0x60] sm:$0xff] %vm945_vm7, %v1013_v48  ;;  %v1212_v46 = vunpack.c.l.bf16 %v1211_v14 }
 0x35f   : > { %v1025_v50 = vpop.permute.xlu1 %1024  ;;  %v1354_v53 = vld [vmem:[#allocation5 + $0x58] sm:$0xff] }
 0x360   : > { %1306 = vperm.xlu0 %2000, %v1298_v43   ;;  %v1021_v52 = vpop.permute.xlu0 %1020  ;;  %1041 = vst.msk [vmem:[#allocation5 + $0x78] sm:$0xff] %vm945_vm7, %v1025_v50  ;;  %v1353_v55 = vld [vmem:[#allocation5 + $0x50] sm:$0xff] }
 0x361   : > { %1301 = vperm.xlu1 %2001, %v1297_v49   ;;  %1040 = vst.msk [vmem:[#allocation5 + $0x70] sm:$0xff] %vm945_vm7, %v1021_v52 }
 0x363   : > { %v1410_v56 = vld [vmem:[#allocation5 + $0x68] sm:$0xff] }
 0x364   : > { %1362 = vperm.xlu0 %2000, %v1354_v53   ;;  %v1409_v57 = vld [vmem:[#allocation5 + $0x60] sm:$0xff]  ;;  %v1267_v53 = vld [vmem:[#allocation2 + $0x20] sm:$0xff] }
 0x365   : > { %1357 = vperm.xlu1 %2001, %v1353_v55  }
 0x367   : > { %v1466_v58 = vld [vmem:[#allocation5 + $0x78] sm:$0xff] }
 0x368   : > { %1418 = vperm.xlu0 %2000, %v1410_v56   ;;  %v1465_v60 = vld [vmem:[#allocation5 + $0x70] sm:$0xff] }
 0x369   : > { %1413 = vperm.xlu1 %2001, %v1409_v57   ;;  %v1269_v57 = vunpack.c.h.bf16 %v1267_v53 }
 0x36c   : > { %1474 = vperm.xlu0 %2000, %v1466_v58  }
 0x36d   : > { %1469 = vperm.xlu1 %2001, %v1465_v60   ;;  %v1268_v60 = vunpack.c.l.bf16 %v1267_v53 }
 0x371   : > { %1523 = vrot.lane.b32.xlu1 %v1521_v61, %s2299_s9  ;;  %v1804_v61 = vld [vmem:[#allocation3 + $0x4] ss:$0 sm:$0xff]  ;;  %s2184_s9 = sshll.u32 %s2300_s12, 4  ;;  %s2185_s9 = int_to_ptr.vmem [resolvable:$false] %s2184_s9 }
 0x372   : > { %s2186_s6 = scalar_lea.vmem %s2185_s9, 256  ;;  %p2187_p11 = scmp.lt.s32.totalorder %s2837_s29, %s2185_s9 }
 0x373   : > { %p2188_p1 = scmp.lt.s32.totalorder %s2186_s6, %s2180_s23 }
 0x375   : > { %p2189_p2 = por %p2188_p1, %p2187_p11 }
 0x377   : > { %p2190_p8 = pnand %p2189_p2, %p2183_p7 }
 0x3ab   : > { %v1061_v5 = vpop.permute.xlu0 %1060 }
 0x3ac   : > { %v1068_v8 = vmul.f32 %v1800_v17, %v1061_v5  ;;  %v1323_v5 = vld [vmem:[#allocation2 + $0x28] sm:$0xff] }
 0x3ad   : > { %v1324_v11 = vunpack.c.l.bf16 %v1323_v5 }
 0x3ae   : > { %v2777_v19 = vadd.f32 %v1068_v8, %v1047_v12  ;;  %v1325_v8 = vunpack.c.h.bf16 %v1323_v5  ;;  %v1805_v12 = vld [vmem:[#allocation3 + $0x5] ss:$0 sm:$0xff] }
 0x3af   : > { %v1066_v13 = vpop.permute.xlu1 %1065  ;;  %v1122_v7 = vpop.permute.xlu0 %1121 }
 0x3b0   : > { %v1069_v16 = vmul.f32 %v1800_v17, %v1066_v13  ;;  %v1125_v27 = vmul.f32 %v1801_v24, %v1122_v7  ;;  %v1102_v30 = vmul.f32 %v1100_v21, %v2777_v19  ;;  %v1379_v21 = vld [vmem:[#allocation2 + $0x30] sm:$0xff] }
 0x3b2   : > { %v2779_v20 = vadd.f32 %v1069_v16, %v1048_v18 }
 0x3b3   : > { %v1117_v25 = vpop.permute.xlu1 %1116  ;;  %v1178_v26 = vpop.permute.xlu0 %1177 }
 0x3b4   : > { %v1124_v28 = vmul.f32 %v1801_v24, %v1117_v25  ;;  %v1103_v29 = vmul.f32 %v1101_v3, %v2779_v20  ;;  %v1181_v37 = vmul.f32 %v1802_v34, %v1178_v26  ;;  %v1381_v26 = vunpack.c.h.bf16 %v1379_v21 }
 0x3b6   : > { %v2783_v9 = vadd.f32 %v1125_v27, %v1103_v29  ;;  %v1126_v31 = vadd.f32 %v1124_v28, %v1102_v30  ;;  %v1380_v28 = vunpack.c.l.bf16 %v1379_v21  ;;  %v1806_v29 = vld [vmem:[#allocation3 + $0x6] ss:$0 sm:$0xff] }
 0x3b7   : > { %v1173_v35 = vpop.permute.xlu1 %1172  ;;  %v1234_v36 = vpop.permute.xlu0 %1233 }
 0x3b8   : > { %v1180_v38 = vmul.f32 %v1802_v34, %v1173_v35  ;;  %v1159_v39 = vmul.f32 %v1157_v32, %v2783_v9  ;;  %v1158_v40 = vmul.f32 %v1156_v33, %v1126_v31  ;;  %v1237_v49 = vmul.f32 %v1803_v23, %v1234_v36 }
 0x3ba   : > { %v1183_v22 = vadd.f32 %v1181_v37, %v1159_v39  ;;  %v1182_v41 = vadd.f32 %v1180_v38, %v1158_v40  ;;  %v1435_v40 = vld [vmem:[#allocation2 + $0x38] sm:$0xff] }
 0x3bb   : > { %v1229_v44 = vpop.permute.xlu1 %1228  ;;  %v1290_v45 = vpop.permute.xlu0 %1289 }
 0x3bc   : > { %v1215_v47 = vmul.f32 %v1213_v42, %v1183_v22  ;;  %v1236_v48 = vmul.f32 %v1803_v23, %v1229_v44  ;;  %v1214_v43 = vmul.f32 %v1212_v46, %v1182_v41  ;;  %v1293_v1 = vmul.f32 %v1804_v61, %v1290_v45 }
 0x3be   : > { %v1239_v55 = vadd.f32 %v1237_v49, %v1215_v47  ;;  %v1238_v56 = vadd.f32 %v1236_v48, %v1214_v43 }
 0x3bf   : > { %v1285_v50 = vpop.permute.xlu1 %1284  ;;  %v1346_v52 = vpop.permute.xlu0 %1345 }
 0x3c0   : > { %v1271_v62 = vmul.f32 %v1269_v57, %v1239_v55  ;;  %v1292_v63 = vmul.f32 %v1804_v61, %v1285_v50  ;;  %v1270_v0 = vmul.f32 %v1268_v60, %v1238_v56  ;;  %v1349_v18 = vmul.f32 %v1805_v12, %v1346_v52  ;;  %v1807_v50 = vld [vmem:[#allocation3 + $0x7] ss:$0 sm:$0xff] }
 0x3c2   : > { %v2786_v17 = vadd.f32 %v1293_v1, %v1271_v62  ;;  %v2788_v6 = vadd.f32 %v1292_v63, %v1270_v0 }
 0x3c3   : > { %v1341_v58 = vpop.permute.xlu1 %1340  ;;  %v1402_v59 = vpop.permute.xlu0 %1401 }
 0x3c4   : > { %v1327_v13 = vmul.f32 %v1325_v8, %v2786_v17  ;;  %v1348_v7 = vmul.f32 %v1805_v12, %v1341_v58  ;;  %v1326_v16 = vmul.f32 %v1324_v11, %v2788_v6  ;;  %v1405_v35 = vmul.f32 %v1806_v29, %v1402_v59 }
 0x3c6   : > { %v2792_v24 = vadd.f32 %v1349_v18, %v1327_v13  ;;  %v2794_v25 = vadd.f32 %v1348_v7, %v1326_v16 }
 0x3c7   : > { %v1397_v2 = vpop.permute.xlu1 %1396  ;;  %v1083_v4 = vpop.permute.xlu0 %1082 }
 0x3c8   : > { %v1383_v30 = vmul.f32 %v1381_v26, %v2792_v24  ;;  %v1404_v32 = vmul.f32 %v1806_v29, %v1397_v2  ;;  %v1382_v34 = vmul.f32 %v1380_v28, %v2794_v25  ;;  %v1086_v37 = vmul.f32 %v1083_v4, %v2779_v20 }
 0x3ca   : > { %v1407_v46 = vadd.f32 %v1405_v35, %v1383_v30  ;;  %v1088_v20 = vsel %vm532_vm3, %v1086_v37, 0.0 }
 0x3cb   : > { %v1078_v10 = vpop.permute.xlu1 %1077  ;;  %v1139_v15 = vpop.permute.xlu0 %1138 }
 0x3cc   : > { %v1085_v36 = vmul.f32 %v1078_v10, %v2777_v19  ;;  %v1142_v38 = vmul.f32 %v1139_v15, %v2783_v9  ;;  %v1436_v19 = vunpack.c.l.bf16 %v1435_v40 }
 0x3ce   : > { %v1087_v48 = vsel %vm532_vm3, %v1085_v36, 0.0  ;;  %v1144_v9 = vsel %vm532_vm3, %v1142_v38, 0.0 }
 0x3cf   : > { %v1134_v3 = vpop.permute.xlu1 %1133  ;;  %v1195_v54 = vpop.permute.xlu0 %1194  ;;  %v1089_v59 = vadd.f32 %v1088_v20, %v1087_v48 }
 0x3d0   : > { %v1141_v33 = vmul.f32 %v1134_v3, %v1126_v31  ;;  %v1198_v42 = vmul.f32 %v1195_v54, %v1183_v22  ;;  %v1406_v31 = vadd.f32 %v1404_v32, %v1382_v34 }
 0x3d1   : > { %v1090_v10 = vrot.slane %v1089_v59, 4 }
 0x3d2   : > { %v1143_v23 = vsel %vm532_vm3, %v1141_v33, 0.0  ;;  %v1438_v62 = vmul.f32 %v1436_v19, %v1406_v31 }
 0x3d3   : > { %v1190_v27 = vpop.permute.xlu1 %1189  ;;  %v1145_v53 = vadd.f32 %v1144_v9, %v1143_v23 }
 0x3d4   : > { %v1197_v14 = vmul.f32 %v1190_v27, %v1182_v41  ;;  %v1437_v41 = vunpack.c.h.bf16 %v1435_v40 }
 0x3d5   : > { %v1146_v4 = vrot.slane %v1145_v53, 4 }
 0x3d6   : > { %v1199_v43 = vsel %vm532_vm3, %v1197_v14, 0.0  ;;  %v1439_v58 = vmul.f32 %v1437_v41, %v1407_v46 }
 0x3d7   : > { %v1251_v39 = vpop.permute.xlu0 %1250  ;;  %v1147_v18 = vadd.f32 %v1146_v4, %v1145_v53 }
 0x3d8   : > { %v1246_v44 = vpop.permute.xlu1 %1245  ;;  %v1254_v45 = vmul.f32 %v1251_v39, %v1239_v55  ;;  %v1200_v55 = vsel %vm532_vm3, %v1198_v42, 0.0 }
 0x3d9   : > { %v1253_v47 = vmul.f32 %v1246_v44, %v1238_v56  ;;  %v1201_v60 = vadd.f32 %v1200_v55, %v1199_v43  ;;  %v1148_v33 = vrot.slane %v1147_v18, 2 }
 0x3da   : > { %v1256_v22 = vsel %vm532_vm3, %v1254_v45, 0.0 }
 0x3db   : > { %v1255_v49 = vsel %vm532_vm3, %v1253_v47, 0.0  ;;  %v1458_v52 = vpop.permute.xlu0 %1457  ;;  %v1202_v11 = vrot.slane %v1201_v60, 4  ;;  %v1149_v23 = vadd.f32 %v1148_v33, %v1147_v18 }
 0x3dc   : > { %v1453_v56 = vpop.permute.xlu1 %1452  ;;  %v1461_v57 = vmul.f32 %v1807_v50, %v1458_v52  ;;  %v1257_v63 = vadd.f32 %v1256_v22, %v1255_v49 }
 0x3dd   : > { %v1460_v61 = vmul.f32 %v1807_v50, %v1453_v56  ;;  %v1203_v54 = vadd.f32 %v1202_v11, %v1201_v60  ;;  %v1150_v53 = vrot.slane %v1149_v23, 1 }
 0x3de   : > { %v1463_v0 = vadd.f32 %v1461_v57, %v1439_v58  ;;  %v1258_v13 = vrot.slane %v1257_v63, 4 }
 0x3df   : > { %v1307_v1 = vpop.permute.xlu0 %1306  ;;  %v1462_v2 = vadd.f32 %v1460_v61, %v1438_v62  ;;  %v1204_v38 = vrot.slane %v1203_v54, 2 }
 0x3e0   : > { %v1302_v5 = vpop.permute.xlu1 %1301  ;;  %v1310_v8 = vmul.f32 %v1307_v1, %v2786_v17  ;;  %1504 = vst.msk [vmem:[#allocation7 + $0x8] sm:$0xff] %vm532_vm3, %v1463_v0  ;;  %v1091_v17 = vadd.f32 %v1090_v10, %v1089_v59  ;;  %v1259_v28 = vadd.f32 %v1258_v13, %v1257_v63 }
 0x3e1   : > { %v1309_v12 = vmul.f32 %v1302_v5, %v2788_v6  ;;  %1503 = vst.msk [vmem:[#allocation7] sm:$0xff] %vm532_vm3, %v1462_v2  ;;  %v1205_v20 = vadd.f32 %v1204_v38, %v1203_v54 }
 0x3e2   : > { %v1312_v7 = vsel %vm532_vm3, %v1310_v8, 0.0  ;;  %v1092_v37 = vrot.slane %v1091_v17, 2 }
 0x3e3   : > { %v1311_v15 = vsel %vm532_vm3, %v1309_v12, 0.0  ;;  %v1363_v16 = vpop.permute.xlu0 %1362  ;;  %v1206_v58 = vrot.slane %v1205_v20, 1 }
 0x3e4   : > { %v1313_v3 = vadd.f32 %v1312_v7, %v1311_v15  ;;  %v1358_v21 = vpop.permute.xlu1 %1357  ;;  %v1366_v26 = vmul.f32 %v1363_v16, %v2792_v24  ;;  %v1260_v24 = vrot.slane %v1259_v28, 2  ;;  %v1093_v41 = vadd.f32 %v1092_v37, %v1091_v17 }
 0x3e5   : > { %v1365_v27 = vmul.f32 %v1358_v21, %v2794_v25  ;;  %v1207_v5 = vadd.f32 %v1206_v58, %v1205_v20 }
 0x3e6   : > { %v1314_v29 = vrot.slane %v1313_v3, 4  ;;  %v1368_v6 = vsel %vm532_vm3, %v1366_v26, 0.0  ;;  %v1094_v59 = vrot.slane %v1093_v41, 1 }
 0x3e7   : > { %v1367_v30 = vsel %vm532_vm3, %v1365_v27, 0.0  ;;  %v1419_v32 = vpop.permute.xlu0 %1418 }
 0x3e8   : > { %v1315_v34 = vadd.f32 %v1314_v29, %v1313_v3  ;;  %v1369_v35 = vadd.f32 %v1368_v6, %v1367_v30  ;;  %v1414_v36 = vpop.permute.xlu1 %1413  ;;  %v1422_v14 = vmul.f32 %v1419_v32, %v1407_v46  ;;  %v1261_v46 = vadd.f32 %v1260_v24, %v1259_v28  ;;  %v1808_v6 = vld [vmem:[%s2938_s24] ss:$0 sm:$0xff] }
 0x3e9   : > { %v1421_v39 = vmul.f32 %v1414_v36, %v1406_v31  ;;  %v1095_v8 = vadd.f32 %v1094_v59, %v1093_v41  ;;  %v1513_v30 = vmul.f32 %v1808_v6, %v2653_v51 }
 0x3ea   : > { %v1370_v40 = vrot.slane %v1369_v35, 4  ;;  %v1424_v42 = vsel %vm532_vm3, %v1422_v14, 0.0  ;;  %v1316_v25 = vrot.slane %v1315_v34, 2  ;;  %v1262_v60 = vrot.slane %v1261_v46, 1 }
 0x3eb   : > { %v1423_v44 = vsel %vm532_vm3, %v1421_v39, 0.0  ;;  %v1475_v45 = vpop.permute.xlu0 %1474 }
 0x3ec   : > { %v1371_v47 = vadd.f32 %v1370_v40, %v1369_v35  ;;  %v1425_v48 = vadd.f32 %v1424_v42, %v1423_v44  ;;  %v1470_v43 = vpop.permute.xlu1 %1469  ;;  %v1478_v19 = vmul.f32 %v1475_v45, %v1463_v0  ;;  %v1317_v50 = vadd.f32 %v1316_v25, %v1315_v34 }
 0x3ed   : > { %v1477_v9 = vmul.f32 %v1470_v43, %v1462_v2  ;;  %v1151_v0 = vadd.f32 %v1150_v53, %v1149_v23  ;;  %v1263_v10 = vadd.f32 %v1262_v60, %v1261_v46 }
 0x3ee   : > { %v1372_v49 = vrot.slane %v1371_v47, 2  ;;  %v1426_v22 = vrot.slane %v1425_v48, 4  ;;  %v1480_v31 = vsel %vm532_vm3, %v1478_v19, 0.0  ;;  %v1318_v63 = vrot.slane %v1317_v50, 1 }
 0x3ef   : > { %v1479_v52 = vsel %vm532_vm3, %v1477_v9, 0.0  ;;  %v1489_v7 = vsel %vm1488_vm8, %v1095_v8, %v1151_v0 }
 0x3f0   : > { %v1373_v55 = vadd.f32 %v1372_v49, %v1371_v47  ;;  %v1427_v56 = vadd.f32 %v1426_v22, %v1425_v48  ;;  %v1481_v57 = vadd.f32 %v1480_v31, %v1479_v52  ;;  %v1319_v13 = vadd.f32 %v1318_v63, %v1317_v50  ;;  %v1524_v34 = vpop.permute.xlu1 %1523 }
 0x3f1   : > { %v1491_v18 = vsel %vm1490_vm9, %v1489_v7, %v1207_v5 }
 0x3f2   : > { %v1428_v61 = vrot.slane %v1427_v56, 2  ;;  %v1482_v62 = vrot.slane %v1481_v57, 4  ;;  %v1374_v1 = vrot.slane %v1373_v55, 1  ;;  %v1493_v21 = vsel %vm1492_vm10, %v1491_v18, %v1263_v10 }
 0x3f3   : > { %v1495_v17 = vsel %vm1494_vm11, %v1493_v21, %v1319_v13 }
 0x3f4   : > { %v1429_v2 = vadd.f32 %v1428_v61, %v1427_v56  ;;  %v1483_v4 = vadd.f32 %v1482_v62, %v1481_v57  ;;  %v1375_v15 = vadd.f32 %v1374_v1, %v1373_v55 }
 0x3f6   : > { %v1430_v11 = vrot.slane %v1429_v2, 1  ;;  %v1484_v12 = vrot.slane %v1483_v4, 2  ;;  %v1497_v54 = vsel %vm1496_vm12, %v1495_v17, %v1375_v15 }
 0x3f8   : > { %v1485_v16 = vadd.f32 %v1484_v12, %v1483_v4  ;;  %v1431_v3 = vadd.f32 %v1430_v11, %v1429_v2 }
 0x3fa   : > { %v1486_v26 = vrot.slane %v1485_v16, 1  ;;  %v1499_v28 = vsel %vm1498_vm13, %v1497_v54, %v1431_v3 }
 0x3fc   : > { %v1487_v27 = vadd.f32 %v1486_v26, %v1485_v16 }
 0x3fe   : > { %v1501_v29 = vsel %vm1500_vm14, %v1499_v28, %v1487_v27 }
 0x3ff   : > { %1502 = vst.msk [vmem:[#allocation6] sm:$0xff] %vm532_vm3, %v1501_v29 }
 0x406   : > { %v1505_v32 = vld [vmem:[#allocation6] sm:$0xff] }
 0x407   : > { %v1514_v33 = vadd.f32 %v1513_v30, %v1505_v32 }
 0x409   : > { %v1526_v35 = vmul.f32 %v1524_v34, %v1514_v33 }
 0x40b   : > { %v1527_v36 = vpack.c.bf16 %v1526_v35, %v1526_v35 }
 0x40d   : > { %1880 = vmatmul.mubr.msk.bf16.vlgmr.msra.gmra.mrb[4].mxu1 %vm532_vm3, %v1527_v36 }
 0x4e0   : > { %v1597_v51 = vpop.f32.mrb[4].mxu1 }
 0x4e1   : > { %1603 = vst [vmem:[%s2606_s4] sm:$0xff] %v1597_v51  ;;  %v1881_v14 = vpop.f32.mrb[5].mxu1 }
 0x4e2   : > { %v1600_v37 = vpop.f32.mrb[6].mxu1 }
 0x4e3   : > { %2193 = shalt.err (!%p2190_p8)
}
 0x4e4   : > { %s2194_s3 = scalar_lea.hbm %s2835_s17, 128  ;;  %s2198_s18 = scalar_lea.hbm %s2939_s1, 512 }
 0x4e5   : > { %p2195_p12 = scmp.ne.s32.totalorder %s2835_s17, %s2194_s3  ;;  %p2199_p9 = scmp.lt.u32.totalorder %s2835_s17, %s2939_s1 }
 0x4e6   : > { %p2200_p6 = scmp.lt.u32.totalorder %s2198_s18, %s2194_s3  ;;  %p2202_p10 = scmp.lt.u32.totalorder %s2194_s3, %s2835_s17 }
 0x4e7   : > { %p2196_p4 = pnand %p2195_p12, %p2526_p3 }
 0x4e8   : > { %p2201_p0 = por %p2200_p6, %p2199_p9 }
 0x4e9   : > { %p2197_p13 = pneg %p2196_p4 }
 0x4ea   : > { %p2203_p5 = por %p2202_p10, %p2201_p0 }
 0x4ec   : > { %p2204_p7 = pnand %p2203_p5, %p2197_p13 }
 0x4ee   : > { %2207 = shalt.err (!%p2204_p7)
}
 0x4ef   : > { %1897 = dma.vmem_to_hbm [thread:$0]  (%p2526_p3), %s2837_s29, 128, %s2835_s17, %s1605_s21   ;;  %v1882_v38 = vpop.f32.mrb[7].mxu1 }
 0x4f0 PF: > { %s2940_s30 = sld [smem:[#allocation22_spill]]  ;;  %s2941_s20 = sld [smem:[#allocation24_spill]] }
 0x4f1   : > { %p1924_p11 = scmp.ge.s32.totalorder %s2286_s16, 2 }
 0x4f6   : > { %s1632_s28 = sand.u32 1, %s2940_s30   ;;  %p2942_p1 = scmp.ne.s32.totalorder %s2941_s20, 0 }
 0x4f7   : > { %s1633_s22 = scalar_lea.sflag [#allocation11], %s1632_s28 }
 0x4f8   : > { %p1914_p2 = pnand %p1924_p11, %p2942_p1 }
 0x4fa   : > { %2253 = dma.done.wait (!%p1914_p2), %s1633_s22, 128  }
 0x4fb   : > { %2255 = vsyncadd (!%p1914_p2), %s1633_s22, 4294967168  ;;  %s27_s16 = sadd.s32 1, %s2286_s16   ;;  %s2943_s30 = smov %s2262_s10 }
 0x4fc   : > { %p24_p8 = scmp.ge.s32.totalorder %s27_s16, 6   ;;  %s2944_s10 = smov %s2266_s11 }
 0x4fd   : > { %s2945_s11 = smov %s2543_s25  ;;  %s2946_s12 = smov %s2278_s14 }
 0x4fe   : > { %s2947_s13 = smov %s2282_s15  ;;  %s2948_s14 = smov %s2951_s7 }
 0x4ff   : > { %s2949_s15 = smov %s2955_s26  ;;  %26 = sbr.rel (!%p24_p8) target bundleno = 17 (0x11), region = 151 }
 0x506   :  { %1638 = vsyncpa [#allocation10], 1 }
 0x507   :  { %1640 = vsyncpa [#allocation10 + $0x1], 1 }
 0x508   :  { %1641 = vsyncpa [#allocation13], 1 }
 0x509   :  { %1642 = vsyncpa [#allocation16], 1 }
 0x50a   :  { %1643 = vsyncpa [#allocation11], 1 }
 0x50b   :  { %1645 = vsyncpa [#allocation11 + $0x1], 1 }

// kernel: tpu_custom_call.1
= control target key start
LH: loop header
LB: loop body
LE: loop exit
PB: predicated region body
PF: predicated region fallthrough
CT: control target
= control target key end

     0   :  { %s2874_s0 = inlined_call_operand.hbm [shape: f32[2,16,128], index: 0, kind: input, shape index: {}]   ;;  %s2875_s1 = inlined_call_operand.hbm [shape: bf16[128,128], index: 1, kind: input, shape index: {}]   ;;  %s2876_s2 = inlined_call_operand.vmem [shape: f32[4,64], index: 2, kind: input, shape index: {}]   ;;  %s2877_s3 = inlined_call_operand.vmem [shape: f32[1,64], index: 3, kind: input, shape index: {}]   ;;  %s2878_s4 = inlined_call_operand.hbm [shape: bf16[64,96], index: 4, kind: input, shape index: {}]   ;;  %s2879_s5 = inlined_call_operand.vmem [shape: f32[1,64], index: 5, kind: input, shape index: {}]   ;;  %s2880_s6 = inlined_call_operand.vmem [shape: f32[16,64], index: 6, kind: input, shape index: {}]   ;;  %s2881_s7 = inlined_call_operand.vmem [shape: f32[1,64], index: 7, kind: input, shape index: {}]   ;;  %s2882_s8 = inlined_call_operand.hbm [shape: bf16[64,128], index: 8, kind: input, shape index: {}]   ;;  %s2883_s9 = inlined_call_operand.hbm [shape: f32[2,16,128], index: 9, kind: output, shape index: {}]  }
   0x1   :  { %2892 = sst [smem:[#allocation25_spill]] %s2875_s1 }
   0x2   :  { %2893 = sst [smem:[#allocation26_spill]] %s2877_s3 }
   0x3   :  { %2894 = sst [smem:[#allocation27_spill]] %s2878_s4 }
   0x4   :  { %2895 = sst [smem:[#allocation28_spill]] %s2879_s5 }
   0x5   :  { %2896 = sst [smem:[#allocation29_spill]] %s2880_s6 }
   0x6   :  { %2897 = sst [smem:[#allocation30_spill]] %s2881_s7 }
   0x7   :  { %2898 = sst [smem:[#allocation31_spill]] %s2883_s9 }
   0x8   :  { %14 = vsyncpa [#allocation10], 0 }
   0x9   :  { %16 = vsyncpa [#allocation10 + $0x1], 0 }
   0xa   :  { %17 = vsyncpa [#allocation13], 0 }
   0xb   :  { %18 = vsyncpa [#allocation16], 0 }
   0xc   :  { %19 = vsyncpa [#allocation11], 0 }
   0xd   :  { %21 = vsyncpa [#allocation11 + $0x1], 0  ;;  %s2339_s30 = smov 0   ;;  %s2341_s10 = smov 0  }
   0xe   :  { %s2343_s11 = smov 0   ;;  %s2345_s12 = smov 0  }
   0xf   :  { %s2347_s13 = smov 0   ;;  %s2349_s14 = smov 0  }
  0x10   :  { %s2351_s15 = smov 0   ;;  %s2353_s16 = smov 0  }
  0x11 LB: > { %2899 = sst [smem:[#allocation22_spill]] %s2246_s30  ;;  %s1750_s17 = sadd.s32 4294967295, %s2274_s16   ;;  %s2274_s16 = sphi %s2353_s16, %s27_s16   ;;  %s2270_s15 = sphi %s2351_s15, %s2933_s15   ;;  %s2266_s14 = sphi %s2349_s14, %s2932_s14   ;;  %s2262_s13 = sphi %s2347_s13, %s2931_s13   ;;  %s2258_s12 = sphi %s2345_s12, %s2930_s12   ;;  %s2254_s11 = sphi %s2343_s11, %s2929_s11   ;;  %s2250_s10 = sphi %s2341_s10, %s2928_s10   ;;  %s2246_s30 = sphi %s2339_s30, %s2927_s30  }
  0x12   : > { %2900 = sst [smem:[#allocation23_spill]] %s2262_s13  ;;  %s1751_s18 = sadd.s32 4294967294, %s2274_s16  }
  0x13   : > { %p61_p0 = scmp.ne.s32.totalorder %s2250_s10, %s2246_s30  ;;  %p2383_p1 = scmp.eq.s32.totalorder %s1750_s17, 0 }
  0x14   : > { %p2387_p2 = scmp.eq.s32.totalorder %s1750_s17, 3  ;;  %p261_p3 = scmp.eq.s32.totalorder %s1751_s18, 3 }
  0x15   : > { %s2901_s19 = scalar_select %p2383_p1, 1, 0 }
  0x16   : > { %s2902_s20 = scalar_select %p2387_p2, 1, 0 }
  0x17   : > { %p2393_p4 = por %p2383_p1, %p61_p0  ;;  %p1752_p5 = scmp.ge.s32.totalorder %s2274_s16, 1 }
  0x18   : > { %p2398_p6 = por %p261_p3, %p61_p0  ;;  %p268_p7 = scmp.lt.s32.totalorder %s2274_s16, 5 }
  0x19   : > { %s2903_s21 = scalar_select %p2393_p4, 1, 0 }
  0x1a   : > { %s2904_s22 = scalar_select %p2398_p6, 1, 0 }
  0x1b   : > { %p2403_p8 = pnand %p1752_p5, %p268_p7  ;;  %s2276_s24 = smov [#allocation12]  }
  0x1c   : > { %2905 = sst [smem:[#allocation24_spill]] %s2904_s22  ;;  %s280_s25 = sshll.u32 %s2276_s24, 4  ;;  %s2407_s25 = int_to_ptr.vmem [resolvable:$true] %s280_s25 }
  0x1d   : > { %s2906_s23 = scalar_select %p2403_p8, 1, 0 }
  0x1e   : > { %p1887_p9 = pneg %p2403_p8  ;;  %s2277_s27 = smov [#allocation14]  }
  0x1f   : > { %s299_s28 = sshll.u32 %s2277_s27, 4  ;;  %s2278_s29 = smov [#allocation15]   ;;  %s2417_s28 = int_to_ptr.vmem [resolvable:$true] %s299_s28 }
  0x20   : > { %p2413_p10 = pnand %p1887_p9, %p2383_p1  ;;  %s2419_s17 = sshll.u32 %s2278_s29, 4  ;;  %s322_s17 = int_to_ptr.vmem [resolvable:$true] %s2419_s17 }
  0x21   : > { %s2908_s1 = sld [smem:[#allocation25_spill]] }
  0x22   : > { %p2429_p12 = pneg %p2413_p10 }
  0x27   : > { %s2054_s24 = scalar_lea.hbm %s2908_s1, 1024 }
  0x28   : > { %p2055_p11 = scmp.ne.s32.totalorder %s2908_s1, %s2054_s24  ;;  %p2061_p3 = scmp.lt.u32.totalorder %s2054_s24, %s2908_s1 }
  0x2a   : > { %p2057_p13 = pnand %p2429_p12, %p2055_p11 }
  0x2c   : > { %p2058_p0 = pneg %p2057_p13 }
  0x2e   : > { %p2063_p5 = pnand %p2061_p3, %p2058_p0 }
  0x30   : > { %2066 = shalt.err (!%p2063_p5)
}
  0x31   : > { %s2067_s9 = scalar_lea.vmem %s2407_s25, 1024  ;;  %p2075_p1 = scmp.lt.s32.totalorder %s2407_s25, %s2407_s25 }
  0x32   : > { %p2068_p7 = scmp.ne.s32.totalorder %s2407_s25, %s2067_s9  ;;  %p2076_p4 = scmp.lt.s32.totalorder %s2067_s9, %s2067_s9 }
  0x34   : > { %p2070_p9 = pnand %p2068_p7, %p2429_p12  ;;  %p2077_p11 = por %p2076_p4, %p2075_p1 }
  0x36   : > { %p2071_p6 = pneg %p2070_p9 }
  0x38   : > { %p2078_p13 = pnand %p2077_p11, %p2071_p6 }
  0x3a   : > { %2081 = shalt.err (!%p2078_p13)
}
  0x3b   : > { %s2279_s30 = smov 64   ;;  %s2280_s22 = smov 4  }
  0x3c   : > { %1890 = dma.hbm_to_vmem [thread:$0]  (!%p2413_p10), %s2908_s1, 1024, %s2407_s25, [#allocation13], %s2279_s30, %s2279_s30, %s2280_s22  }
  0x3d   : > { %s2910_s4 = sld [smem:[#allocation27_spill]] }
  0x43   : > { %s2082_s9 = scalar_lea.hbm %s2910_s4, 512 }
  0x44   : > { %p2083_p1 = scmp.ne.s32.totalorder %s2910_s4, %s2082_s9  ;;  %p2089_p0 = scmp.lt.u32.totalorder %s2082_s9, %s2910_s4 }
  0x46   : > { %p2085_p4 = pnand %p2083_p1, %p2429_p12 }
  0x48   : > { %p2086_p6 = pneg %p2085_p4 }
  0x4a   : > { %p2091_p3 = pnand %p2089_p0, %p2086_p6 }
  0x4c   : > { %2094 = shalt.err (!%p2091_p3)
}
  0x4d   : > { %s2095_s25 = scalar_lea.vmem %s2417_s28, 512  ;;  %p2103_p11 = scmp.lt.s32.totalorder %s2417_s28, %s2417_s28 }
  0x4e   : > { %p2096_p5 = scmp.ne.s32.totalorder %s2417_s28, %s2095_s25  ;;  %p2104_p13 = scmp.lt.s32.totalorder %s2095_s25, %s2095_s25 }
  0x50   : > { %p2098_p7 = pnand %p2096_p5, %p2429_p12  ;;  %p2105_p1 = por %p2104_p13, %p2103_p11 }
  0x52   : > { %p2099_p9 = pneg %p2098_p7 }
  0x54   : > { %p2106_p4 = pnand %p2105_p1, %p2099_p9 }
  0x56   : > { %2109 = shalt.err (!%p2106_p4)
}
  0x57   : > { %1893 = dma.hbm_to_vmem [thread:$0]  (!%p2413_p10), %s2910_s4, 512, %s2417_s28, [#allocation13], %s2279_s30, %s2279_s30, %s2280_s22  }
  0x58   : > { %s2110_s18 = scalar_lea.hbm %s2882_s8, 512 }
  0x59   : > { %p2111_p6 = scmp.ne.s32.totalorder %s2882_s8, %s2110_s18  ;;  %p2117_p5 = scmp.lt.u32.totalorder %s2110_s18, %s2882_s8 }
  0x5b   : > { %p2113_p0 = pnand %p2111_p6, %p2429_p12 }
  0x5d   : > { %p2114_p3 = pneg %p2113_p0 }
  0x5f   : > { %p2119_p7 = pnand %p2117_p5, %p2114_p3 }
  0x61   : > { %2122 = shalt.err (!%p2119_p7)
}
  0x62   : > { %s2123_s25 = scalar_lea.vmem %s322_s17, 512  ;;  %p2131_p1 = scmp.lt.s32.totalorder %s322_s17, %s322_s17 }
  0x63   : > { %p2124_p9 = scmp.ne.s32.totalorder %s322_s17, %s2123_s25  ;;  %p2132_p4 = scmp.lt.s32.totalorder %s2123_s25, %s2123_s25 }
  0x65   : > { %p2126_p11 = pnand %p2124_p9, %p2429_p12  ;;  %p2133_p8 = por %p2132_p4, %p2131_p1 }
  0x67   : > { %p2127_p13 = pneg %p2126_p11 }
  0x69   : > { %p2134_p2 = pnand %p2133_p8, %p2127_p13 }
  0x6b   : > { %2137 = shalt.err (!%p2134_p2)
}
  0x6c   : > { %1896 = dma.hbm_to_vmem [thread:$0]  (!%p2413_p10), %s2882_s8, 512, %s322_s17, [#allocation16], %s2279_s30, %s2279_s30, %s2280_s22  }
  0x6d   : > { %s36_s7 = sadd.s32 1, %s2266_s14  ;;  %s39_s26 = sadd.s32 1, %s2270_s15 }
  0x6e   : > { %p37_p2 = scmp.ge.s32.totalorder %s36_s7, 2  ;;  %s48_s5 = sadd.s32 1, %s2254_s11 }
  0x6f   : > { %p55_p8 = scmp.ne.s32.totalorder %s2254_s11, %s2250_s10  ;;  %p56_p12 = scmp.eq.s32.totalorder %s2274_s16, 0 }
  0x70   : > { %s2935_s7 = smov (%p37_p2, %s36_s7), 0  ;;  %s2937_s26 = smov (!%p37_p2, %s39_s26), %s2270_s15 }
  0x71   : > { %s44_s6 = ssub.s32 %s2266_s14, %s2935_s7  ;;  %p41_p6 = scmp.ge.s32.totalorder %s2937_s26, 2 }
  0x72   : > { %p2911_p0 = scmp.ne.s32.totalorder %s2902_s20, 0  ;;  %p2518_p10 = por %p56_p12, %p55_p8 }
  0x73   : > { %p1908_p5 = scmp.lt.s32.totalorder %s2274_s16, 4  ;;  %s2939_s26 = smov (%p41_p6, %s2937_s26), 0 }
  0x74   : > { %p2514_p3 = por %p2911_p0, %p55_p8  ;;  %s335_s30 = sand.u32 1, %s2254_s11  }
  0x75   : > { %s1758_s22 = sshll.u32 %s2270_s15, 1  ;;  %s43_s18 = ssub.s32 %s2270_s15, %s2939_s26 }
  0x76   : > { %s45_s24 = sor.u32 %s44_s6, %s43_s18  ;;  %s1757_s27 = sshll.u32 %s335_s30, 3 }
  0x77   : > { %p46_p7 = scmp.eq.s32.totalorder %s45_s24, 0  ;;  %s344_s20 = sadd.s32 %s2266_s14, %s1758_s22 }
  0x78   : > { %s339_s29 = scalar_lea.vmem [#allocation9], %s1757_s27  ;;  %s1759_s28 = sshll.u32 %s344_s20, 7 }
  0x79   : > { %s348_s9 = sshll.u32 %s339_s29, 4  ;;  %s2538_s4 = scalar_lea.hbm %s2874_s0, %s1759_s28  ;;  %s2533_s9 = int_to_ptr.vmem [resolvable:$true] %s348_s9 }
  0x7a   : > { %s2531_s25 = scalar_select %p46_p7, %s2254_s11, %s48_s5  }
  0x7b   : > { %p2544_p9 = pnand %p1908_p5, %p2518_p10  ;;  %s336_s5 = scalar_lea.sflag [#allocation10], %s335_s30 }
  0x7c   : > { %s2138_s22 = scalar_lea.hbm %s2538_s4, 128  ;;  %s2143_s18 = scalar_lea.hbm %s2874_s0, 512 }
  0x7d   : > { %p2139_p11 = scmp.ne.s32.totalorder %s2538_s4, %s2138_s22  ;;  %p2140_p13 = pneg %p2544_p9 }
  0x7e   : > { %p2144_p2 = scmp.lt.u32.totalorder %s2538_s4, %s2874_s0  ;;  %p2145_p8 = scmp.lt.u32.totalorder %s2143_s18, %s2138_s22 }
  0x7f   : > { %p2141_p1 = pnand %p2140_p13, %p2139_p11  ;;  %p2147_p6 = scmp.lt.u32.totalorder %s2138_s22, %s2538_s4 }
  0x80   : > { %p2146_p12 = por %p2145_p8, %p2144_p2 }
  0x81   : > { %p2142_p4 = pneg %p2141_p1 }
  0x82   : > { %p2148_p0 = por %p2147_p6, %p2146_p12 }
  0x84   : > { %p2149_p10 = pnand %p2148_p0, %p2142_p4 }
  0x86   : > { %2152 = shalt.err (!%p2149_p10)
}
  0x87   : > { %s2153_s30 = scalar_lea.vmem %s2533_s9, 128  ;;  %s2281_s20 = smov [#allocation9]  }
  0x88   : > { %p2154_p5 = scmp.ne.s32.totalorder %s2533_s9, %s2153_s30  ;;  %s2158_s29 = sshll.u32 %s2281_s20, 4  ;;  %s2159_s29 = int_to_ptr.vmem [resolvable:$false] %s2158_s29 }
  0x89   : > { %s2160_s28 = scalar_lea.vmem %s2159_s29, 256  ;;  %p2161_p1 = scmp.lt.s32.totalorder %s2533_s9, %s2159_s29 }
  0x8a   : > { %p2156_p7 = pnand %p2154_p5, %p2140_p13  ;;  %p2162_p2 = scmp.lt.s32.totalorder %s2160_s28, %s2153_s30 }
  0x8c   : > { %p2157_p11 = pneg %p2156_p7  ;;  %p2163_p8 = por %p2162_p2, %p2161_p1 }
  0x8e   : > { %p2164_p12 = pnand %p2163_p8, %p2157_p11 }
  0x90   : > { %2167 = shalt.err (!%p2164_p12)
}
  0x91   : > { %1900 = dma.hbm_to_vmem [thread:$0]  (!%p2544_p9), %s2538_s4, 128, %s2533_s9, %s336_s5  }
  0x92   : > { %p2915_p4 = scmp.ne.s32.totalorder %s2906_s23, 0 }
  0x93   : > { %s2576_s3 = sand.u32 (!%p2915_p4), 1, %s2250_s10   ;;  %p2916_p13 = scmp.ne.s32.totalorder (!%p2915_p4), %s2903_s21, 0 }
  0x94   : > { %357 = sbr.rel (%p2915_p4) target bundleno = 1262 (0x4ee), region = 56  ;;  %s1761_s22 = sshll.u32 (!%p2915_p4), %s2576_s3, 3 }
  0x95   : > { %s360_s1 = scalar_lea.sflag (!%p2915_p4), [#allocation10], %s2576_s3  ;;  %s2580_s17 = scalar_lea.vmem (!%p2915_p4), [#allocation9], %s1761_s22 }
  0x9b   : > { %2229 = dma.done.wait (%p2916_p13), %s360_s1, 128  }
  0x9c   : > { %2231 = vsyncadd (%p2916_p13), %s360_s1, 4294967168  ;;  %p2917_p9 = scmp.ne.s32.totalorder %s2901_s19, 0 }
  0x9e   : > { %2233 = dma.done.wait (%p2917_p9), [#allocation13], 1536  }
  0x9f   : > { %2235 = vsyncadd (%p2917_p9), [#allocation13], 4294965760 }
  0xa0   : > { %2237 = dma.done.wait (%p2917_p9), [#allocation16], 512  }
  0xa1   : > { %2239 = vsyncadd (%p2917_p9), [#allocation16], 4294966784  ;;  %s2594_s4 = scalar_lea.vmem [#allocation17], %s1761_s22  ;;  %p1766_p6 = scmp.ne.s32.totalorder %s2258_s12, 0 }
  0xa2   : > { %vm415_vm0 = vcmask (!%p1766_p6), 523264   ;;  %v2282_v0 = vmov (!%p1766_p6), 0.0  }
  0xa3   : > { %414 = sbr.rel (%p1766_p6) target bundleno = 170 (0xaa), region = 76  ;;  %416 = vst.msk [vmem:[#allocation7] sm:$0xff] (!%p1766_p6), %vm415_vm0, %v2282_v0  ;;  %417 = vst.msk [vmem:[#allocation7 + $0x8] sm:$0xff] (!%p1766_p6), %vm415_vm0, %v2282_v0 }
  0xa4   : > { %418 = vst.msk [vmem:[#allocation8] sm:$0xff] (!%p1766_p6), %vm415_vm0, %v2282_v0 }
  0xaa PF: > { %p1767_p0 = scmp.le.s32.totalorder %s2258_s12, 0 }
  0xab   : > { %v423_v1 = vld [vmem:[#allocation8 + $0xd] sm:$0x7] (!%p1767_p0)  ;;  %vm424_vm1 = vcmask (!%p1767_p0), 518144  }
  0xac   : > { %422 = sbr.rel (%p1767_p0) target bundleno = 179 (0xb3), region = 80  ;;  %425 = vst.msk [vmem:[#allocation8 + $0x5] sm:$0x7] (!%p1767_p0), %vm424_vm1, %v423_v1 }
  0xb3 PF: > { %v1990_v2 = vld [vmem:[#allocation12] sm:$0xff]   ;;  %v2283_v3 = vmov 0.0   ;;  %v1991_v4 = vld [vmem:[#allocation12 + $0x8] sm:$0xff]   ;;  %vm2284_vm2 = vmmov 0   ;;  %v1992_v5 = vld [vmem:[#allocation12 + $0x10] sm:$0xff]   ;;  %vm532_vm3 = vcmask 523264   ;;  %v686_v44 = vlaneseq }
  0xb4   : > { %1827 = vmatprep.subr.bf16.mxu0 %v2283_v3  ;;  %1847 = vmatprep.subr.bf16.mxu1 %v2283_v3  ;;  %v1993_v6 = vld [vmem:[#allocation12 + $0x18] sm:$0xff]   ;;  %v1994_v7 = vld [vmem:[#allocation12 + $0x20] sm:$0xff]   ;;  %v1995_v8 = vld [vmem:[#allocation12 + $0x28] sm:$0xff]   ;;  %s2918_s20 = sld [smem:[#allocation26_spill]]  ;;  %v2285_v46 = vmov 0   ;;  %s2919_s22 = sld [smem:[#allocation28_spill]] }
  0xb5   : > { %1828 = vmatpush3.bf16.msra.mxu0 %v1990_v2  ;;  %1843 = vmatprep.mubr.msk.bf16.mxu0 %vm2284_vm2, %v2283_v3  ;;  %v1996_v9 = vld [vmem:[#allocation12 + $0x30] sm:$0xff]   ;;  %v1997_v10 = vld [vmem:[#allocation12 + $0x38] sm:$0xff]   ;;  %v1998_v13 = vld [vmem:[#allocation14] sm:$0xff]   ;;  %v2642_v45 = vshrl.u32 %v686_v44, 7  ;;  %s2920_s19 = sld [smem:[#allocation29_spill]]  ;;  %vm933_vm4 = vcmask 7168  }
  0xb6   : > { %1829 = vmatprep.subr.bf16.mxu0 %v2283_v3  ;;  %1855 = vmatprep.mubr.msk.bf16.mxu1 %vm2284_vm2, %v2283_v3  ;;  %v426_v11 = vld [vmem:[%s2580_s17] sm:$0xff]  ;;  %v1999_v14 = vld [vmem:[#allocation14 + $0x8] sm:$0xff]   ;;  %v1776_v21 = vld [vmem:[%s2876_s2] ss:$0 sm:$0xff]  ;;  %s2287_s9 = smov 64   ;;  %vm1476_vm5 = vcmask 1040384  }
  0xb7   : > { %v427_v12 = vpack.c.bf16 %v426_v11, %v426_v11  ;;  %1848 = vmatpush3.bf16.msra.mxu1 %v1998_v13  ;;  %v2000_v15 = vld [vmem:[#allocation14 + $0x10] sm:$0xff]   ;;  %v2001_v16 = vld [vmem:[#allocation14 + $0x18] sm:$0xff]   ;;  %v1777_v22 = vld [vmem:[%s2876_s2 + $0x1] ss:$0 sm:$0xff]  ;;  %1988 = vset.pattern.permute.xlu0 %v2285_v46  ;;  %v2645_v47 = vsub.s32 0, %v2642_v45  ;;  %v851_v48 = vsub.s32 1, %v2642_v45 }
  0xb8   : > { %1849 = vmatprep.subr.bf16.mxu1 %v2283_v3  ;;  %v1778_v23 = vld [vmem:[%s2876_s2 + $0x2] ss:$0 sm:$0xff]  ;;  %v1779_v30 = vld [vmem:[%s2876_s2 + $0x3] ss:$0 sm:$0xff]  ;;  %1989 = vset.pattern.permute.xlu1 %v2285_v46  ;;  %v863_v59 = vsub.s32 2, %v2642_v45  ;;  %v875_v62 = vsub.s32 3, %v2642_v45 }
  0xb9   : > { %1830 = vmatpush3.bf16.msra.mxu0 %v1991_v4  ;;  %v887_v0 = vsub.s32 4, %v2642_v45  ;;  %v899_v2 = vsub.s32 5, %v2642_v45  ;;  %vm1478_vm6 = vcmask 1041408   ;;  %vm1480_vm7 = vcmask 1042432   ;;  %s2921_s6 = sld [smem:[#allocation23_spill]]  ;;  %s2922_s24 = sld [smem:[#allocation30_spill]] }
  0xba   : > { %1831 = vmatprep.subr.bf16.mxu0 %v2283_v3  ;;  %v1780_v35 = vld [vmem:[%s2918_s20] ss:$0 sm:$0xff]  ;;  %vm1482_vm8 = vcmask 1043456   ;;  %vm1484_vm9 = vcmask 1044480   ;;  %vm1486_vm10 = vcmask 1045504   ;;  %vm1488_vm11 = vcmask 1046528  }
  0xbb   : > { %1850 = vmatpush3.bf16.msra.mxu1 %v1999_v14  ;;  %v1787_v49 = vld [vmem:[%s2919_s22] ss:$0 sm:$0xff]  ;;  %s1608_s29 = sshll.u32 %s2594_s4, 4  ;;  %s2923_s1 = sld [smem:[#allocation31_spill]]  ;;  %s2821_s29 = int_to_ptr.vmem [resolvable:$true] %s1608_s29 }
  0xbc   : > { %1851 = vmatprep.subr.bf16.mxu1 %v2283_v3  ;;  %s1593_s21 = scalar_lea.sflag [#allocation11], %s2576_s3  ;;  %s2168_s23 = scalar_lea.vmem %s2821_s29, 128 }
  0xbd   : > { %1832 = vmatpush3.bf16.msra.mxu0 %v1992_v5  ;;  %p2169_p10 = scmp.ne.s32.totalorder %s2821_s29, %s2168_s23 }
  0xbe   : > { %1833 = vmatprep.subr.bf16.mxu0 %v2283_v3 }
  0xbf   : > { %1852 = vmatpush3.bf16.msra.mxu1 %v2000_v15  ;;  %s1804_s27 = sshll.u32 %s2921_s6, 1  ;;  %p2170_p5 = pnand %p2169_p10, %p2514_p3 }
  0xc0   : > { %1853 = vmatprep.subr.bf16.mxu1 %v2283_v3  ;;  %s1604_s30 = sadd.s32 %s2258_s12, %s1804_s27  ;;  %s2288_s12 = smov [#allocation17]  }
  0xc1   : > { %1834 = vmatpush3.bf16.msra.mxu0 %v1993_v6  ;;  %v673_v6 = vld [vmem:[%s2920_s19] sm:$0xff]  ;;  %s1805_s20 = sshll.u32 %s1604_s30, 7  ;;  %p2171_p7 = pneg %p2170_p5 }
  0xc2   : > { %1835 = vmatprep.subr.bf16.mxu0 %v2283_v3  ;;  %s2819_s17 = scalar_lea.hbm %s2923_s1, %s1805_s20 }
  0xc3   : > { %1854 = vmatpush3.bf16.msra.mxu1 %v2001_v16 }
  0xc4   : > { %1859 = vmatprep.subr.bf16.mxu1 %v2283_v3 }
  0xc5   : > { %1836 = vmatpush3.bf16.msra.mxu0 %v1994_v7 }
  0xc6   : > { %1837 = vmatprep.subr.bf16.mxu0 %v2283_v3 }
  0xc9   : > { %1838 = vmatpush3.bf16.msra.mxu0 %v1995_v8  ;;  %v911_v8 = vsub.s32 6, %v2642_v45 }
  0xca   : > { %1839 = vmatprep.subr.bf16.mxu0 %v2283_v3 }
  0xcd   : > { %1840 = vmatpush3.bf16.msra.mxu0 %v1996_v9  ;;  %v674_v9 = vld [vmem:[%s2920_s19 + $0x8] sm:$0xff] }
  0xce   : > { %1841 = vmatprep.subr.bf16.mxu0 %v2283_v3  ;;  %v677_v11 = vmul.f32 1.442695, %v674_v9 }
  0xd1   : > { %1842 = vmatpush3.bf16.msra.mxu0 %v1997_v10  ;;  %v675_v10 = vmul.f32 1.442695, %v673_v6 }
  0xd4   : > { %1844 = vmatmul.mubr.bf16.vlgmr.msra.gmra.mrb[0].mxu0 %v427_v12  ;;  %v2286_v12 = vmov 1966171168  }
  0xd5   : > { %v684_v13 = vunpack.c.l.s4 %v2286_v12 }
  0xd7   : > { %v685_v15 = vunpack.c.0.s8 %v684_v13 }
 0x1a7   : > { %v2616_v17 = vpop.f32.mrb[0].mxu0 }
 0x1a8   : > { %533 = vst.msk [vmem:[#allocation8 + $0x8] sm:$0xff] %vm532_vm3, %v2616_v17  ;;  %v1845_v18 = vpop.f32.mrb[1].mxu0 }
 0x1a9   : > { %v529_v19 = vpop.f32.mrb[2].mxu0 }
 0x1aa   : > { %v1846_v20 = vpop.f32.mrb[3].mxu0 }
 0x1ab   : > { %v688_v20 = vsub.s32 %v685_v15, %v2642_v45 }
 0x1af   : > { %v534_v24 = vld [vmem:[#allocation8 + $0x5] sm:$0xff] }
 0x1b0   : > { %v541_v25 = vld [vmem:[#allocation8 + $0x6] sm:$0xff]  ;;  %v540_v27 = vmul.f32 %v1776_v21, %v534_v24 }
 0x1b1   : > { %v549_v26 = vld [vmem:[#allocation8 + $0x7] sm:$0xff]  ;;  %v547_v28 = vmul.f32 %v1777_v22, %v541_v25 }
 0x1b2   : > { %v557_v29 = vld [vmem:[#allocation8 + $0x8] sm:$0xff]  ;;  %v555_v32 = vmul.f32 %v1778_v23, %v549_v26  ;;  %v923_v26 = vsub.s32 7, %v2642_v45 }
 0x1b3   : > { %v548_v31 = vadd.f32 %v547_v28, %v540_v27  ;;  %v563_v34 = vmul.f32 %v1779_v30, %v557_v29 }
 0x1b5   : > { %v556_v33 = vadd.f32 %v555_v32, %v548_v31 }
 0x1b7   : > { %v564_v36 = vadd.f32 %v563_v34, %v556_v33 }
 0x1b9   : > { %v572_v37 = vadd.f32 %v1780_v35, %v564_v36 }
 0x1bb   : > { %v1781_v38 = vmul.f32 -1.442695, %v572_v37 }
 0x1bd   : > { %2006 = vpow2.f32 %v1781_v38 }
 0x1c7   : > { %v2007_v39 = vpop.eup %2006 }
 0x1c8   : > { %v576_v40 = vadd.f32 1.0, %v2007_v39 }
 0x1ca   : > { %2008 = vrcp.f32 %v576_v40 }
 0x1d4   : > { %v2009_v41 = vpop.eup %2008 }
 0x1d5   : > { %v2635_v42 = vmul.f32 %v2009_v41, %v572_v37 }
 0x1d7   : > { %v580_v43 = vpack.c.bf16 %v2635_v42, %v2635_v42 }
 0x1d9   : > { %1856 = vmatmul.mubr.msk.bf16.vlgmr.msra.gmra.mrb[0].mxu1 %vm532_vm3, %v580_v43 }
 0x1da   : > { %1867 = vmatprep.mubr.msk.bf16.mxu1 %vm2284_vm2, %v2283_v3 }
 0x2ac   : > { %v2651_v50 = vpop.f32.mrb[0].mxu1 }
 0x2ad   : > { %v663_v51 = vadd.f32 %v1787_v49, %v2651_v50  ;;  %v1857_v52 = vpop.f32.mrb[1].mxu1  ;;  %v852_v53 = vrot.slane %v2651_v50, %v851_v48  ;;  %v840_v54 = vrot.slane %v2651_v50, %v2645_v47  ;;  %v864_v61 = vrot.slane %v2651_v50, %v863_v59 }
 0x2ae   : > { %v653_v55 = vpop.f32.mrb[2].mxu1  ;;  %v2661_v63 = vrot.slane %v2651_v50, %v875_v62  ;;  %v2667_v1 = vrot.slane %v2651_v50, %v887_v0  ;;  %v2676_v7 = vrot.slane %v2651_v50, %v899_v2  ;;  %v2685_v14 = vrot.slane %v2651_v50, %v911_v8 }
 0x2af   : > { %v665_v56 = vand.u32 2147483647, %v663_v51  ;;  %855 = vbcast.lane.b32.xlu1 %v852_v53, 320  ;;  %843 = vbcast.lane.b32.xlu0 %v840_v54, 320  ;;  %v1858_v57 = vpop.f32.mrb[3].mxu1  ;;  %v664_v18 = vmax.f32 %v663_v51, 0.0  ;;  %v2694_v35 = vrot.slane %v2651_v50, %v923_v26 }
 0x2b1   : > { %v666_v58 = vsub.f32 0.0, %v665_v56 }
 0x2b3   : > { %v667_v60 = vmul.f32 1.442695, %v666_v58  ;;  %859 = vbcast.lane.b32.xlu1 %v852_v53, 328  ;;  %847 = vbcast.lane.b32.xlu0 %v840_v54, 328 }
 0x2b5   : > { %2010 = vpow2.f32 %v667_v60 }
 0x2b7   : > { %871 = vbcast.lane.b32.xlu1 %v864_v61, 328  ;;  %867 = vbcast.lane.b32.xlu0 %v864_v61, 320 }
 0x2bb   : > { %883 = vbcast.lane.b32.xlu1 %v2661_v63, 328  ;;  %879 = vbcast.lane.b32.xlu0 %v2661_v63, 320 }
 0x2bf   : > { %v2011_v4 = vpop.eup %2010  ;;  %895 = vbcast.lane.b32.xlu1 %v2667_v1, 328  ;;  %891 = vbcast.lane.b32.xlu0 %v2667_v1, 320 }
 0x2c0   : > { %v669_v5 = vadd.f32 1.0, %v2011_v4 }
 0x2c2   : > { %2012 = vlog2.f32 %v669_v5 }
 0x2c3   : > { %907 = vbcast.lane.b32.xlu1 %v2676_v7, 328  ;;  %903 = vbcast.lane.b32.xlu0 %v2676_v7, 320  ;;  %2014 = vpow2.f32 %v675_v10 }
 0x2c4   : > { %2016 = vpow2.f32 %v677_v11 }
 0x2c7   : > { %919 = vbcast.lane.b32.xlu1 %v2685_v14, 328  ;;  %915 = vbcast.lane.b32.xlu0 %v2685_v14, 320 }
 0x2cb   : > { %956 = vbcast.lane.b32.xlu1 %v840_v54, 344  ;;  %952 = vbcast.lane.b32.xlu0 %v840_v54, 336 }
 0x2cc   : > { %v2013_v16 = vpop.eup %2012 }
 0x2cd   : > { %v671_v19 = vmul.f32 0.6931472, %v2013_v16  ;;  %v2015_v22 = vpop.eup %2014 }
 0x2ce   : > { %v2017_v27 = vpop.eup %2016  ;;  %v679_v31 = vsub.f32 0.0, %v2015_v22 }
 0x2cf   : > { %v672_v21 = vadd.f32 %v671_v19, %v664_v18  ;;  %964 = vbcast.lane.b32.xlu1 %v852_v53, 344  ;;  %960 = vbcast.lane.b32.xlu0 %v852_v53, 336  ;;  %v680_v36 = vsub.f32 0.0, %v2017_v27 }
 0x2d1   : > { %v682_v23 = vcombine.high %v672_v21, %v672_v21  ;;  %v689_v24 = vrot.slane %v672_v21, %v688_v20  ;;  %v835_v25 = vmul.f32 %v672_v21, %v2635_v42 }
 0x2d3   : > { %v696_v28 = vrot.slane %v682_v23, %v688_v20  ;;  %v697_v29 = vcombine.high %v689_v24, %v689_v24  ;;  %v705_v30 = vrot.slane %v689_v24, %v688_v20  ;;  %836 = vst.msk [vmem:[#allocation3] sm:$0xff] %vm532_vm3, %v835_v25  ;;  %972 = vbcast.lane.b32.xlu1 %v864_v61, 344 }
 0x2d4   : > { %968 = vbcast.lane.b32.xlu0 %v864_v61, 336 }
 0x2d5   : > { %v698_v32 = vcombine.high %v696_v28, %v696_v28  ;;  %v719_v33 = vrot.slane %v697_v29, %v688_v20  ;;  %v727_v34 = vcombine.high %v705_v30, %v705_v30  ;;  %v734_v37 = vrot.slane %v705_v30, %v2645_v47 }
 0x2d6   : > { %v712_v38 = vrot.slane %v696_v28, %v688_v20 }
 0x2d7   : > { %v729_v39 = vcombine.high %v719_v33, %v719_v33  ;;  %v738_v40 = vrot.slane %v719_v33, %v2645_v47  ;;  %931 = vbcast.lane.b32.xlu1 %v2694_v35, 328  ;;  %v742_v41 = vrot.slane %v727_v34, %v2645_v47  ;;  %v726_v43 = vrot.slane %v698_v32, %v688_v20 }
 0x2d8   : > { %927 = vbcast.lane.b32.xlu0 %v2694_v35, 320  ;;  %v771_v45 = vmul.f32 %v734_v37, %v679_v31  ;;  %v772_v46 = vmul.f32 %v734_v37, %v680_v36  ;;  %v728_v50 = vcombine.high %v712_v38, %v712_v38  ;;  %v750_v51 = vrot.slane %v712_v38, %v2645_v47 }
 0x2d9   : > { %v746_v44 = vrot.slane %v729_v39, %v2645_v47  ;;  %v773_v48 = vmul.f32 %v738_v40, %v679_v31  ;;  %v774_v49 = vmul.f32 %v738_v40, %v680_v36  ;;  %v775_v52 = vmul.f32 %v742_v41, %v679_v31 }
 0x2da   : > { %v776_v53 = vmul.f32 %v742_v41, %v680_v36  ;;  %v730_v54 = vcombine.high %v726_v43, %v726_v43  ;;  %v754_v55 = vrot.slane %v726_v43, %v2645_v47  ;;  %v787_v57 = vmul.f32 1.442695, %v771_v45 }
 0x2db   : > { %980 = vbcast.lane.b32.xlu1 %v2661_v63, 344  ;;  %v777_v56 = vmul.f32 %v746_v44, %v679_v31  ;;  %v778_v58 = vmul.f32 %v746_v44, %v680_v36  ;;  %v789_v59 = vmul.f32 1.442695, %v772_v46  ;;  %v791_v60 = vmul.f32 1.442695, %v773_v48 }
 0x2dc   : > { %976 = vbcast.lane.b32.xlu0 %v2661_v63, 336  ;;  %v793_v61 = vmul.f32 1.442695, %v774_v49  ;;  %v758_v62 = vrot.slane %v728_v50, %v2645_v47  ;;  %v779_v0 = vmul.f32 %v750_v51, %v679_v31  ;;  %2018 = vpow2.f32 %v787_v57 }
 0x2dd   : > { %v795_v2 = vmul.f32 1.442695, %v775_v52  ;;  %v780_v4 = vmul.f32 %v750_v51, %v680_v36  ;;  %2020 = vpow2.f32 %v789_v59  ;;  %v797_v5 = vmul.f32 1.442695, %v776_v53 }
 0x2de   : > { %v762_v6 = vrot.slane %v730_v54, %v2645_v47  ;;  %v781_v63 = vmul.f32 %v754_v55, %v679_v31  ;;  %2022 = vpow2.f32 %v791_v60  ;;  %v799_v8 = vmul.f32 1.442695, %v777_v56 }
 0x2df   : > { %v782_v9 = vmul.f32 %v754_v55, %v680_v36  ;;  %2024 = vpow2.f32 %v793_v61  ;;  %v801_v10 = vmul.f32 1.442695, %v778_v58  ;;  %v783_v11 = vmul.f32 %v758_v62, %v679_v31  ;;  %988 = vbcast.lane.b32.xlu1 %v2667_v1, 344 }
 0x2e0   : > { %2026 = vpow2.f32 %v795_v2  ;;  %v803_v12 = vmul.f32 1.442695, %v779_v0  ;;  %984 = vbcast.lane.b32.xlu0 %v2667_v1, 336  ;;  %v784_v13 = vmul.f32 %v758_v62, %v680_v36  ;;  %v805_v15 = vmul.f32 1.442695, %v780_v4 }
 0x2e1   : > { %2028 = vpow2.f32 %v797_v5  ;;  %v785_v16 = vmul.f32 %v762_v6, %v679_v31  ;;  %v807_v18 = vmul.f32 1.442695, %v781_v63  ;;  %v786_v47 = vmul.f32 %v762_v6, %v680_v36 }
 0x2e2   : > { %2030 = vpow2.f32 %v799_v8  ;;  %v809_v19 = vmul.f32 1.442695, %v782_v9  ;;  %v811_v20 = vmul.f32 1.442695, %v783_v11  ;;  %v813_v21 = vmul.f32 1.442695, %v784_v13 }
 0x2e3   : > { %2032 = vpow2.f32 %v801_v10  ;;  %996 = vbcast.lane.b32.xlu1 %v2676_v7, 344  ;;  %v815_v1 = vmul.f32 1.442695, %v785_v16  ;;  %v817_v24 = vmul.f32 1.442695, %v786_v47 }
 0x2e4   : > { %2034 = vpow2.f32 %v803_v12  ;;  %992 = vbcast.lane.b32.xlu0 %v2676_v7, 336 }
 0x2e5   : > { %2036 = vpow2.f32 %v805_v15 }
 0x2e6   : > { %v2019_v22 = vpop.eup %2018  ;;  %2038 = vpow2.f32 %v807_v18 }
 0x2e7   : > { %v2021_v23 = vpop.eup %2020  ;;  %2040 = vpow2.f32 %v809_v19  ;;  %1004 = vbcast.lane.b32.xlu1 %v2685_v14, 344 }
 0x2e8   : > { %v2023_v25 = vpop.eup %2022  ;;  %2042 = vpow2.f32 %v811_v20  ;;  %1000 = vbcast.lane.b32.xlu0 %v2685_v14, 336  ;;  %v819_v26 = vpack.c.bf16 %v2021_v23, %v2019_v22 }
 0x2e9   : > { %v2025_v27 = vpop.eup %2024  ;;  %2044 = vpow2.f32 %v813_v21 }
 0x2ea   : > { %v2027_v28 = vpop.eup %2026  ;;  %2046 = vpow2.f32 %v815_v1  ;;  %827 = vst.msk [vmem:[#allocation2] sm:$0xff] %vm532_vm3, %v819_v26  ;;  %v820_v7 = vpack.c.bf16 %v2025_v27, %v2023_v25  ;;  %v1797_v25 = vmul.f32 -1.442695, %v2616_v17 }
 0x2eb   : > { %v2029_v29 = vpop.eup %2028  ;;  %2048 = vpow2.f32 %v817_v24  ;;  %1012 = vbcast.lane.b32.xlu1 %v2694_v35, 344 }
 0x2ec   : > { %v2031_v30 = vpop.eup %2030  ;;  %1008 = vbcast.lane.b32.xlu0 %v2694_v35, 336  ;;  %828 = vst.msk [vmem:[#allocation2 + $0x8] sm:$0xff] %vm532_vm3, %v820_v7  ;;  %v821_v31 = vpack.c.bf16 %v2029_v29, %v2027_v28  ;;  %2050 = vpow2.f32 %v1797_v25 }
 0x2ed   : > { %v2033_v32 = vpop.eup %2032 }
 0x2ee   : > { %v2035_v14 = vpop.eup %2034  ;;  %829 = vst.msk [vmem:[#allocation2 + $0x10] sm:$0xff] %vm532_vm3, %v821_v31  ;;  %v822_v33 = vpack.c.bf16 %v2033_v32, %v2031_v30 }
 0x2ef   : > { %v2037_v34 = vpop.eup %2036 }
 0x2f0   : > { %v2039_v36 = vpop.eup %2038  ;;  %830 = vst.msk [vmem:[#allocation2 + $0x18] sm:$0xff] %vm532_vm3, %v822_v33  ;;  %v823_v37 = vpack.c.bf16 %v2037_v34, %v2035_v14 }
 0x2f1   : > { %v2041_v38 = vpop.eup %2040 }
 0x2f2   : > { %v2043_v39 = vpop.eup %2042  ;;  %831 = vst.msk [vmem:[#allocation2 + $0x20] sm:$0xff] %vm532_vm3, %v823_v37  ;;  %v824_v40 = vpack.c.bf16 %v2041_v38, %v2039_v36 }
 0x2f3   : > { %v2045_v41 = vpop.eup %2044 }
 0x2f4   : > { %v2047_v35 = vpop.eup %2046  ;;  %832 = vst.msk [vmem:[#allocation2 + $0x28] sm:$0xff] %vm532_vm3, %v824_v40  ;;  %v825_v44 = vpack.c.bf16 %v2045_v41, %v2043_v39 }
 0x2f5   : > { %v2049_v43 = vpop.eup %2048 }
 0x2f6   : > { %v826_v45 = vpack.c.bf16 %v2049_v43, %v2047_v35  ;;  %833 = vst.msk [vmem:[#allocation2 + $0x30] sm:$0xff] %vm532_vm3, %v825_v44  ;;  %v2051_v33 = vpop.eup %2050 }
 0x2f7   : > { %v1506_v39 = vadd.f32 1.0, %v2051_v33 }
 0x2f8   : > { %834 = vst.msk [vmem:[#allocation2 + $0x38] sm:$0xff] %vm532_vm3, %v826_v45 }
 0x2f9   : > { %2052 = vrcp.f32 %v1506_v39  ;;  %v1791_v39 = vld [vmem:[#allocation3 + $0x3] ss:$0 sm:$0xff] }
 0x321   : > { %v856_v46 = vpop.permute.xlu1 %855  ;;  %v844_v48 = vpop.permute.xlu0 %843 }
 0x322   : > { %936 = vst.msk [vmem:[#allocation4 + $0x10] sm:$0xff] %vm933_vm4, %v856_v46  ;;  %934 = vst.msk [vmem:[#allocation4] sm:$0xff] %vm933_vm4, %v844_v48 }
 0x325   : > { %v860_v49 = vpop.permute.xlu1 %859  ;;  %v848_v50 = vpop.permute.xlu0 %847 }
 0x326   : > { %937 = vst.msk [vmem:[#allocation4 + $0x18] sm:$0xff] %vm933_vm4, %v860_v49  ;;  %935 = vst.msk [vmem:[#allocation4 + $0x8] sm:$0xff] %vm933_vm4, %v848_v50 }
 0x329   : > { %v872_v51 = vpop.permute.xlu1 %871  ;;  %v868_v52 = vpop.permute.xlu0 %867  ;;  %v1040_v53 = vld [vmem:[#allocation4] sm:$0xff]  ;;  %v1096_v61 = vld [vmem:[#allocation4 + $0x10] sm:$0xff] }
 0x32a   : > { %939 = vst.msk [vmem:[#allocation4 + $0x28] sm:$0xff] %vm933_vm4, %v872_v51  ;;  %938 = vst.msk [vmem:[#allocation4 + $0x20] sm:$0xff] %vm933_vm4, %v868_v52  ;;  %1048 = vperm.xlu0 %1988, %v1040_v53   ;;  %v2053_v52 = vpop.eup %2052 }
 0x32d   : > { %v884_v54 = vpop.permute.xlu1 %883  ;;  %v880_v55 = vpop.permute.xlu0 %879  ;;  %v1097_v56 = vld [vmem:[#allocation4 + $0x18] sm:$0xff]  ;;  %v1041_v57 = vld [vmem:[#allocation4 + $0x8] sm:$0xff] }
 0x32e   : > { %941 = vst.msk [vmem:[#allocation4 + $0x38] sm:$0xff] %vm933_vm4, %v884_v54  ;;  %940 = vst.msk [vmem:[#allocation4 + $0x30] sm:$0xff] %vm933_vm4, %v880_v55  ;;  %1109 = vperm.xlu0 %1988, %v1097_v56   ;;  %1053 = vperm.xlu1 %1989, %v1041_v57   ;;  %v1509_v54 = vmul.f32 %v2053_v52, %v2616_v17  ;;  %v2002_v55 = vld [vmem:[#allocation15] sm:$0xff]   ;;  %v2003_v56 = vld [vmem:[#allocation15 + $0x8] sm:$0xff]  }
 0x32f   : > { %1860 = vmatpush3.bf16.msra.mxu1 %v2002_v55  ;;  %v2004_v57 = vld [vmem:[#allocation15 + $0x10] sm:$0xff]   ;;  %v1788_v17 = vld [vmem:[#allocation3] ss:$0 sm:$0xff] }
 0x330   : > { %1861 = vmatprep.subr.bf16.mxu1 %v2283_v3 }
 0x331   : > { %v896_v58 = vpop.permute.xlu1 %895  ;;  %v892_v59 = vpop.permute.xlu0 %891  ;;  %v1153_v60 = vld [vmem:[#allocation4 + $0x28] sm:$0xff]  ;;  %v1152_v4 = vld [vmem:[#allocation4 + $0x20] sm:$0xff] }
 0x332   : > { %943 = vst.msk [vmem:[#allocation4 + $0x48] sm:$0xff] %vm933_vm4, %v896_v58  ;;  %942 = vst.msk [vmem:[#allocation4 + $0x40] sm:$0xff] %vm933_vm4, %v892_v59  ;;  %1165 = vperm.xlu0 %1988, %v1153_v60   ;;  %1104 = vperm.xlu1 %1989, %v1096_v61   ;;  %v2005_v58 = vld [vmem:[#allocation15 + $0x18] sm:$0xff]   ;;  %v1032_v59 = vld [vmem:[#allocation2] sm:$0xff] }
 0x333   : > { %1862 = vmatpush3.bf16.msra.mxu1 %v2003_v56  ;;  %v1033_v60 = vunpack.c.l.bf16 %v1032_v59 }
 0x334   : > { %1863 = vmatprep.subr.bf16.mxu1 %v2283_v3 }
 0x335   : > { %v908_v62 = vpop.permute.xlu1 %907  ;;  %v904_v0 = vpop.permute.xlu0 %903  ;;  %v1209_v2 = vld [vmem:[#allocation4 + $0x38] sm:$0xff]  ;;  %v1208_v8 = vld [vmem:[#allocation4 + $0x30] sm:$0xff] }
 0x336   : > { %945 = vst.msk [vmem:[#allocation4 + $0x58] sm:$0xff] %vm933_vm4, %v908_v62  ;;  %944 = vst.msk [vmem:[#allocation4 + $0x50] sm:$0xff] %vm933_vm4, %v904_v0  ;;  %1221 = vperm.xlu0 %1988, %v1209_v2   ;;  %1160 = vperm.xlu1 %1989, %v1152_v4   ;;  %v1030_v62 = vld [vmem:[#allocation7] sm:$0xff]  ;;  %v1034_v2 = vunpack.c.h.bf16 %v1032_v59  ;;  %v1031_v4 = vld [vmem:[#allocation7 + $0x8] sm:$0xff] }
 0x337   : > { %1864 = vmatpush3.bf16.msra.mxu1 %v2004_v57 }
 0x338   : > { %1865 = vmatprep.subr.bf16.mxu1 %v2283_v3 }
 0x339   : > { %v920_v5 = vpop.permute.xlu1 %919  ;;  %v916_v6 = vpop.permute.xlu0 %915  ;;  %v1265_v63 = vld [vmem:[#allocation4 + $0x48] sm:$0xff]  ;;  %v1264_v12 = vld [vmem:[#allocation4 + $0x40] sm:$0xff] }
 0x33a   : > { %947 = vst.msk [vmem:[#allocation4 + $0x68] sm:$0xff] %vm933_vm4, %v920_v5  ;;  %946 = vst.msk [vmem:[#allocation4 + $0x60] sm:$0xff] %vm933_vm4, %v916_v6  ;;  %1277 = vperm.xlu0 %1988, %v1265_v63   ;;  %1216 = vperm.xlu1 %1989, %v1208_v8   ;;  %v1035_v5 = vmul.f32 %v1033_v60, %v1030_v62  ;;  %v1087_v8 = vld [vmem:[#allocation2 + $0x8] sm:$0xff] }
 0x33b   : > { %1866 = vmatpush3.bf16.msra.mxu1 %v2005_v58  ;;  %v1089_v3 = vunpack.c.h.bf16 %v1087_v8 }
 0x33d   : > { %v957_v9 = vpop.permute.xlu1 %956  ;;  %v953_v10 = vpop.permute.xlu0 %952  ;;  %v1321_v11 = vld [vmem:[#allocation4 + $0x58] sm:$0xff]  ;;  %v1320_v18 = vld [vmem:[#allocation4 + $0x50] sm:$0xff] }
 0x33e   : > { %1015 = vst.msk [vmem:[#allocation5 + $0x8] sm:$0xff] %vm933_vm4, %v957_v9  ;;  %1014 = vst.msk [vmem:[#allocation5] sm:$0xff] %vm933_vm4, %v953_v10  ;;  %1333 = vperm.xlu0 %1988, %v1321_v11   ;;  %1272 = vperm.xlu1 %1989, %v1264_v12   ;;  %v1036_v10 = vmul.f32 %v1034_v2, %v1031_v4 }
 0x341   : > { %v965_v13 = vpop.permute.xlu1 %964  ;;  %v961_v15 = vpop.permute.xlu0 %960  ;;  %v1377_v16 = vld [vmem:[#allocation4 + $0x68] sm:$0xff]  ;;  %v1376_v21 = vld [vmem:[#allocation4 + $0x60] sm:$0xff] }
 0x342   : > { %1017 = vst.msk [vmem:[#allocation5 + $0x18] sm:$0xff] %vm933_vm4, %v965_v13  ;;  %1016 = vst.msk [vmem:[#allocation5 + $0x10] sm:$0xff] %vm933_vm4, %v961_v15  ;;  %1389 = vperm.xlu0 %1988, %v1377_v16   ;;  %1328 = vperm.xlu1 %1989, %v1320_v18   ;;  %v1088_v13 = vunpack.c.l.bf16 %v1087_v8  ;;  %v1789_v15 = vld [vmem:[#allocation3 + $0x1] ss:$0 sm:$0xff] }
 0x345   : > { %v973_v47 = vpop.permute.xlu1 %972  ;;  %v1062_v20 = vld [vmem:[#allocation5 + $0x8] sm:$0xff]  ;;  %v1061_v23 = vld [vmem:[#allocation5] sm:$0xff] }
 0x346   : > { %v969_v19 = vpop.permute.xlu0 %968  ;;  %1019 = vst.msk [vmem:[#allocation5 + $0x28] sm:$0xff] %vm933_vm4, %v973_v47  ;;  %1070 = vperm.xlu0 %1988, %v1062_v20   ;;  %1384 = vperm.xlu1 %1989, %v1376_v21   ;;  %v1143_v47 = vld [vmem:[#allocation2 + $0x10] sm:$0xff] }
 0x347   : > { %1018 = vst.msk [vmem:[#allocation5 + $0x20] sm:$0xff] %vm933_vm4, %v969_v19  ;;  %v1144_v25 = vunpack.c.l.bf16 %v1143_v47 }
 0x349   : > { %v932_v22 = vpop.permute.xlu1 %931  ;;  %v1118_v1 = vld [vmem:[#allocation5 + $0x18] sm:$0xff]  ;;  %v1117_v28 = vld [vmem:[#allocation5 + $0x10] sm:$0xff] }
 0x34a   : > { %949 = vst.msk [vmem:[#allocation4 + $0x78] sm:$0xff] %vm933_vm4, %v932_v22  ;;  %v928_v24 = vpop.permute.xlu0 %927  ;;  %1126 = vperm.xlu0 %1988, %v1118_v1   ;;  %1065 = vperm.xlu1 %1989, %v1061_v23  }
 0x34b   : > { %948 = vst.msk [vmem:[#allocation4 + $0x70] sm:$0xff] %vm933_vm4, %v928_v24  ;;  %v1145_v24 = vunpack.c.h.bf16 %v1143_v47 }
 0x34d   : > { %v981_v26 = vpop.permute.xlu1 %980  ;;  %v1174_v27 = vld [vmem:[#allocation5 + $0x28] sm:$0xff] }
 0x34e   : > { %1021 = vst.msk [vmem:[#allocation5 + $0x38] sm:$0xff] %vm933_vm4, %v981_v26  ;;  %v977_v7 = vpop.permute.xlu0 %976  ;;  %1182 = vperm.xlu0 %1988, %v1174_v27   ;;  %1121 = vperm.xlu1 %1989, %v1117_v28   ;;  %v1173_v29 = vld [vmem:[#allocation5 + $0x20] sm:$0xff]  ;;  %v1790_v26 = vld [vmem:[#allocation3 + $0x2] ss:$0 sm:$0xff] }
 0x34f   : > { %1020 = vst.msk [vmem:[#allocation5 + $0x30] sm:$0xff] %vm933_vm4, %v977_v7  ;;  %v1199_v7 = vld [vmem:[#allocation2 + $0x18] sm:$0xff] }
 0x351   : > { %v989_v30 = vpop.permute.xlu1 %988  ;;  %v1433_v37 = vld [vmem:[#allocation4 + $0x78] sm:$0xff] }
 0x352   : > { %1177 = vperm.xlu1 %1989, %v1173_v29   ;;  %v985_v31 = vpop.permute.xlu0 %984  ;;  %1023 = vst.msk [vmem:[#allocation5 + $0x48] sm:$0xff] %vm933_vm4, %v989_v30  ;;  %v1432_v38 = vld [vmem:[#allocation4 + $0x70] sm:$0xff] }
 0x353   : > { %1022 = vst.msk [vmem:[#allocation5 + $0x40] sm:$0xff] %vm933_vm4, %v985_v31 }
 0x355   : > { %v1230_v32 = vld [vmem:[#allocation5 + $0x38] sm:$0xff]  ;;  %v997_v34 = vpop.permute.xlu1 %996 }
 0x356   : > { %1238 = vperm.xlu0 %1988, %v1230_v32   ;;  %v1229_v14 = vld [vmem:[#allocation5 + $0x30] sm:$0xff]  ;;  %v993_v36 = vpop.permute.xlu0 %992  ;;  %1025 = vst.msk [vmem:[#allocation5 + $0x58] sm:$0xff] %vm933_vm4, %v997_v34  ;;  %v1201_v34 = vunpack.c.h.bf16 %v1199_v7 }
 0x357   : > { %1233 = vperm.xlu1 %1989, %v1229_v14   ;;  %1024 = vst.msk [vmem:[#allocation5 + $0x50] sm:$0xff] %vm933_vm4, %v993_v36 }
 0x359   : > { %v1005_v40 = vpop.permute.xlu1 %1004  ;;  %v1286_v35 = vld [vmem:[#allocation5 + $0x48] sm:$0xff] }
 0x35a   : > { %1445 = vperm.xlu0 %1988, %v1433_v37   ;;  %v1001_v41 = vpop.permute.xlu0 %1000  ;;  %1027 = vst.msk [vmem:[#allocation5 + $0x68] sm:$0xff] %vm933_vm4, %v1005_v40  ;;  %v1285_v43 = vld [vmem:[#allocation5 + $0x40] sm:$0xff] }
 0x35b   : > { %1440 = vperm.xlu1 %1989, %v1432_v38   ;;  %1026 = vst.msk [vmem:[#allocation5 + $0x60] sm:$0xff] %vm933_vm4, %v1001_v41  ;;  %v1200_v38 = vunpack.c.l.bf16 %v1199_v7 }
 0x35d   : > { %v1013_v44 = vpop.permute.xlu1 %1012  ;;  %v1342_v46 = vld [vmem:[#allocation5 + $0x58] sm:$0xff] }
 0x35e   : > { %1294 = vperm.xlu0 %1988, %v1286_v35   ;;  %v1009_v45 = vpop.permute.xlu0 %1008  ;;  %1029 = vst.msk [vmem:[#allocation5 + $0x78] sm:$0xff] %vm933_vm4, %v1013_v44  ;;  %v1341_v48 = vld [vmem:[#allocation5 + $0x50] sm:$0xff] }
 0x35f   : > { %1289 = vperm.xlu1 %1989, %v1285_v43   ;;  %1028 = vst.msk [vmem:[#allocation5 + $0x70] sm:$0xff] %vm933_vm4, %v1009_v45 }
 0x361   : > { %v1398_v49 = vld [vmem:[#allocation5 + $0x68] sm:$0xff] }
 0x362   : > { %1350 = vperm.xlu0 %1988, %v1342_v46   ;;  %v1397_v50 = vld [vmem:[#allocation5 + $0x60] sm:$0xff]  ;;  %v1255_v46 = vld [vmem:[#allocation2 + $0x20] sm:$0xff] }
 0x363   : > { %1345 = vperm.xlu1 %1989, %v1341_v48  }
 0x365   : > { %v1454_v51 = vld [vmem:[#allocation5 + $0x78] sm:$0xff] }
 0x366   : > { %1406 = vperm.xlu0 %1988, %v1398_v49   ;;  %v1453_v53 = vld [vmem:[#allocation5 + $0x70] sm:$0xff] }
 0x367   : > { %1401 = vperm.xlu1 %1989, %v1397_v50   ;;  %v1257_v50 = vunpack.c.h.bf16 %v1255_v46 }
 0x36a   : > { %1462 = vperm.xlu0 %1988, %v1454_v51  }
 0x36b   : > { %1457 = vperm.xlu1 %1989, %v1453_v53   ;;  %v1256_v53 = vunpack.c.l.bf16 %v1255_v46 }
 0x36f   : > { %1511 = vrot.lane.b32.xlu1 %v1509_v54, %s2287_s9  ;;  %v1792_v54 = vld [vmem:[#allocation3 + $0x4] ss:$0 sm:$0xff]  ;;  %s2172_s9 = sshll.u32 %s2288_s12, 4  ;;  %s2173_s9 = int_to_ptr.vmem [resolvable:$false] %s2172_s9 }
 0x370   : > { %s2174_s6 = scalar_lea.vmem %s2173_s9, 256  ;;  %p2175_p11 = scmp.lt.s32.totalorder %s2821_s29, %s2173_s9 }
 0x371   : > { %p2176_p1 = scmp.lt.s32.totalorder %s2174_s6, %s2168_s23 }
 0x373   : > { %p2177_p2 = por %p2176_p1, %p2175_p11 }
 0x375   : > { %p2178_p8 = pnand %p2177_p2, %p2171_p7 }
 0x3a9   : > { %v1049_v61 = vpop.permute.xlu0 %1048 }
 0x3aa   : > { %v1056_v0 = vmul.f32 %v1788_v17, %v1049_v61  ;;  %v1311_v61 = vld [vmem:[#allocation2 + $0x28] sm:$0xff] }
 0x3ab   : > { %v1312_v4 = vunpack.c.l.bf16 %v1311_v61 }
 0x3ac   : > { %v2761_v11 = vadd.f32 %v1056_v0, %v1035_v5  ;;  %v1313_v0 = vunpack.c.h.bf16 %v1311_v61  ;;  %v1793_v5 = vld [vmem:[#allocation3 + $0x5] ss:$0 sm:$0xff] }
 0x3ad   : > { %v1054_v6 = vpop.permute.xlu1 %1053  ;;  %v1110_v63 = vpop.permute.xlu0 %1109 }
 0x3ae   : > { %v1057_v9 = vmul.f32 %v1788_v17, %v1054_v6  ;;  %v1113_v19 = vmul.f32 %v1789_v15, %v1110_v63  ;;  %v1090_v22 = vmul.f32 %v1088_v13, %v2761_v11  ;;  %v1367_v13 = vld [vmem:[#allocation2 + $0x30] sm:$0xff] }
 0x3b0   : > { %v2763_v12 = vadd.f32 %v1057_v9, %v1036_v10 }
 0x3b1   : > { %v1105_v16 = vpop.permute.xlu1 %1104  ;;  %v1166_v18 = vpop.permute.xlu0 %1165 }
 0x3b2   : > { %v1112_v20 = vmul.f32 %v1789_v15, %v1105_v16  ;;  %v1091_v21 = vmul.f32 %v1089_v3, %v2763_v12  ;;  %v1169_v29 = vmul.f32 %v1790_v26, %v1166_v18  ;;  %v1369_v18 = vunpack.c.h.bf16 %v1367_v13 }
 0x3b4   : > { %v2767_v1 = vadd.f32 %v1113_v19, %v1091_v21  ;;  %v1114_v23 = vadd.f32 %v1112_v20, %v1090_v22  ;;  %v1368_v20 = vunpack.c.l.bf16 %v1367_v13  ;;  %v1794_v21 = vld [vmem:[#allocation3 + $0x6] ss:$0 sm:$0xff] }
 0x3b5   : > { %v1161_v27 = vpop.permute.xlu1 %1160  ;;  %v1222_v28 = vpop.permute.xlu0 %1221 }
 0x3b6   : > { %v1168_v30 = vmul.f32 %v1790_v26, %v1161_v27  ;;  %v1147_v31 = vmul.f32 %v1145_v24, %v2767_v1  ;;  %v1146_v32 = vmul.f32 %v1144_v25, %v1114_v23  ;;  %v1225_v43 = vmul.f32 %v1791_v39, %v1222_v28 }
 0x3b8   : > { %v1171_v14 = vadd.f32 %v1169_v29, %v1147_v31  ;;  %v1170_v33 = vadd.f32 %v1168_v30, %v1146_v32  ;;  %v1423_v32 = vld [vmem:[#allocation2 + $0x38] sm:$0xff] }
 0x3b9   : > { %v1217_v36 = vpop.permute.xlu1 %1216  ;;  %v1278_v37 = vpop.permute.xlu0 %1277 }
 0x3ba   : > { %v1203_v40 = vmul.f32 %v1201_v34, %v1171_v14  ;;  %v1224_v41 = vmul.f32 %v1791_v39, %v1217_v36  ;;  %v1202_v35 = vmul.f32 %v1200_v38, %v1170_v33  ;;  %v1281_v58 = vmul.f32 %v1792_v54, %v1278_v37 }
 0x3bc   : > { %v1227_v48 = vadd.f32 %v1225_v43, %v1203_v40  ;;  %v1226_v49 = vadd.f32 %v1224_v41, %v1202_v35 }
 0x3bd   : > { %v1273_v44 = vpop.permute.xlu1 %1272  ;;  %v1334_v45 = vpop.permute.xlu0 %1333 }
 0x3be   : > { %v1259_v55 = vmul.f32 %v1257_v50, %v1227_v48  ;;  %v1280_v56 = vmul.f32 %v1792_v54, %v1273_v44  ;;  %v1258_v57 = vmul.f32 %v1256_v53, %v1226_v49  ;;  %v1337_v10 = vmul.f32 %v1793_v5, %v1334_v45  ;;  %v1795_v44 = vld [vmem:[#allocation3 + $0x7] ss:$0 sm:$0xff] }
 0x3c0   : > { %v2770_v17 = vadd.f32 %v1281_v58, %v1259_v55  ;;  %v2772_v62 = vadd.f32 %v1280_v56, %v1258_v57 }
 0x3c1   : > { %v1329_v51 = vpop.permute.xlu1 %1328  ;;  %v1390_v52 = vpop.permute.xlu0 %1389 }
 0x3c2   : > { %v1315_v6 = vmul.f32 %v1313_v0, %v2770_v17  ;;  %v1336_v63 = vmul.f32 %v1793_v5, %v1329_v51  ;;  %v1314_v9 = vmul.f32 %v1312_v4, %v2772_v62  ;;  %v1393_v27 = vmul.f32 %v1794_v21, %v1390_v52 }
 0x3c4   : > { %v2776_v15 = vadd.f32 %v1337_v10, %v1315_v6  ;;  %v2778_v16 = vadd.f32 %v1336_v63, %v1314_v9 }
 0x3c5   : > { %v1385_v59 = vpop.permute.xlu1 %1384  ;;  %v1071_v60 = vpop.permute.xlu0 %1070 }
 0x3c6   : > { %v1371_v22 = vmul.f32 %v1369_v18, %v2776_v15  ;;  %v1392_v24 = vmul.f32 %v1794_v21, %v1385_v59  ;;  %v1370_v26 = vmul.f32 %v1368_v20, %v2778_v16  ;;  %v1074_v29 = vmul.f32 %v1071_v60, %v2763_v12 }
 0x3c8   : > { %v1395_v38 = vadd.f32 %v1393_v27, %v1371_v22  ;;  %v1076_v12 = vsel %vm532_vm3, %v1074_v29, 0.0 }
 0x3c9   : > { %v1066_v2 = vpop.permute.xlu1 %1065  ;;  %v1127_v8 = vpop.permute.xlu0 %1126 }
 0x3ca   : > { %v1073_v28 = vmul.f32 %v1066_v2, %v2761_v11  ;;  %v1130_v30 = vmul.f32 %v1127_v8, %v2767_v1  ;;  %v1424_v11 = vunpack.c.l.bf16 %v1423_v32 }
 0x3cc   : > { %v1075_v41 = vsel %vm532_vm3, %v1073_v28, 0.0  ;;  %v1132_v1 = vsel %vm532_vm3, %v1130_v30, 0.0 }
 0x3cd   : > { %v1122_v3 = vpop.permute.xlu1 %1121  ;;  %v1183_v47 = vpop.permute.xlu0 %1182  ;;  %v1077_v52 = vadd.f32 %v1076_v12, %v1075_v41 }
 0x3ce   : > { %v1129_v25 = vmul.f32 %v1122_v3, %v1114_v23  ;;  %v1186_v34 = vmul.f32 %v1183_v47, %v1171_v14  ;;  %v1394_v23 = vadd.f32 %v1392_v24, %v1370_v26 }
 0x3cf   : > { %v1078_v2 = vrot.slane %v1077_v52, 4 }
 0x3d0   : > { %v1131_v39 = vsel %vm532_vm3, %v1129_v25, 0.0  ;;  %v1426_v55 = vmul.f32 %v1424_v11, %v1394_v23 }
 0x3d1   : > { %v1178_v19 = vpop.permute.xlu1 %1177  ;;  %v1133_v46 = vadd.f32 %v1132_v1, %v1131_v39 }
 0x3d2   : > { %v1185_v7 = vmul.f32 %v1178_v19, %v1170_v33  ;;  %v1425_v33 = vunpack.c.h.bf16 %v1423_v32 }
 0x3d3   : > { %v1134_v60 = vrot.slane %v1133_v46, 4 }
 0x3d4   : > { %v1187_v35 = vsel %vm532_vm3, %v1185_v7, 0.0  ;;  %v1427_v51 = vmul.f32 %v1425_v33, %v1395_v38 }
 0x3d5   : > { %v1239_v31 = vpop.permute.xlu0 %1238  ;;  %v1135_v10 = vadd.f32 %v1134_v60, %v1133_v46 }
 0x3d6   : > { %v1234_v36 = vpop.permute.xlu1 %1233  ;;  %v1242_v37 = vmul.f32 %v1239_v31, %v1227_v48  ;;  %v1188_v48 = vsel %vm532_vm3, %v1186_v34, 0.0 }
 0x3d7   : > { %v1241_v40 = vmul.f32 %v1234_v36, %v1226_v49  ;;  %v1189_v53 = vadd.f32 %v1188_v48, %v1187_v35  ;;  %v1136_v25 = vrot.slane %v1135_v10, 2 }
 0x3d8   : > { %v1244_v14 = vsel %vm532_vm3, %v1242_v37, 0.0 }
 0x3d9   : > { %v1243_v43 = vsel %vm532_vm3, %v1241_v40, 0.0  ;;  %v1446_v45 = vpop.permute.xlu0 %1445  ;;  %v1190_v4 = vrot.slane %v1189_v53, 4  ;;  %v1137_v39 = vadd.f32 %v1136_v25, %v1135_v10 }
 0x3da   : > { %v1441_v49 = vpop.permute.xlu1 %1440  ;;  %v1449_v50 = vmul.f32 %v1795_v44, %v1446_v45  ;;  %v1245_v56 = vadd.f32 %v1244_v14, %v1243_v43 }
 0x3db   : > { %v1448_v54 = vmul.f32 %v1795_v44, %v1441_v49  ;;  %v1191_v47 = vadd.f32 %v1190_v4, %v1189_v53  ;;  %v1138_v46 = vrot.slane %v1137_v39, 1 }
 0x3dc   : > { %v1451_v57 = vadd.f32 %v1449_v50, %v1427_v51  ;;  %v1246_v6 = vrot.slane %v1245_v56, 4 }
 0x3dd   : > { %v1295_v58 = vpop.permute.xlu0 %1294  ;;  %v1450_v59 = vadd.f32 %v1448_v54, %v1426_v55  ;;  %v1192_v30 = vrot.slane %v1191_v47, 2 }
 0x3de   : > { %v1290_v61 = vpop.permute.xlu1 %1289  ;;  %v1298_v0 = vmul.f32 %v1295_v58, %v2770_v17  ;;  %1492 = vst.msk [vmem:[#allocation7 + $0x8] sm:$0xff] %vm532_vm3, %v1451_v57  ;;  %v1079_v17 = vadd.f32 %v1078_v2, %v1077_v52  ;;  %v1247_v20 = vadd.f32 %v1246_v6, %v1245_v56 }
 0x3df   : > { %v1297_v5 = vmul.f32 %v1290_v61, %v2772_v62  ;;  %1491 = vst.msk [vmem:[#allocation7] sm:$0xff] %vm532_vm3, %v1450_v59  ;;  %v1193_v12 = vadd.f32 %v1192_v30, %v1191_v47 }
 0x3e0   : > { %v1300_v63 = vsel %vm532_vm3, %v1298_v0, 0.0  ;;  %v1080_v29 = vrot.slane %v1079_v17, 2 }
 0x3e1   : > { %v1299_v8 = vsel %vm532_vm3, %v1297_v5, 0.0  ;;  %v1351_v9 = vpop.permute.xlu0 %1350  ;;  %v1194_v51 = vrot.slane %v1193_v12, 1 }
 0x3e2   : > { %v1301_v3 = vadd.f32 %v1300_v63, %v1299_v8  ;;  %v1346_v13 = vpop.permute.xlu1 %1345  ;;  %v1354_v18 = vmul.f32 %v1351_v9, %v2776_v15  ;;  %v1248_v15 = vrot.slane %v1247_v20, 2  ;;  %v1081_v33 = vadd.f32 %v1080_v29, %v1079_v17 }
 0x3e3   : > { %v1353_v19 = vmul.f32 %v1346_v13, %v2778_v16  ;;  %v1195_v61 = vadd.f32 %v1194_v51, %v1193_v12 }
 0x3e4   : > { %v1302_v21 = vrot.slane %v1301_v3, 4  ;;  %v1356_v62 = vsel %vm532_vm3, %v1354_v18, 0.0  ;;  %v1082_v52 = vrot.slane %v1081_v33, 1 }
 0x3e5   : > { %v1355_v22 = vsel %vm532_vm3, %v1353_v19, 0.0  ;;  %v1407_v24 = vpop.permute.xlu0 %1406 }
 0x3e6   : > { %v1303_v26 = vadd.f32 %v1302_v21, %v1301_v3  ;;  %v1357_v27 = vadd.f32 %v1356_v62, %v1355_v22  ;;  %v1402_v28 = vpop.permute.xlu1 %1401  ;;  %v1410_v7 = vmul.f32 %v1407_v24, %v1395_v38  ;;  %v1249_v38 = vadd.f32 %v1248_v15, %v1247_v20  ;;  %v1796_v62 = vld [vmem:[%s2922_s24] ss:$0 sm:$0xff] }
 0x3e7   : > { %v1409_v31 = vmul.f32 %v1402_v28, %v1394_v23  ;;  %v1083_v0 = vadd.f32 %v1082_v52, %v1081_v33  ;;  %v1501_v22 = vmul.f32 %v1796_v62, %v2635_v42 }
 0x3e8   : > { %v1358_v32 = vrot.slane %v1357_v27, 4  ;;  %v1412_v34 = vsel %vm532_vm3, %v1410_v7, 0.0  ;;  %v1304_v16 = vrot.slane %v1303_v26, 2  ;;  %v1250_v53 = vrot.slane %v1249_v38, 1 }
 0x3e9   : > { %v1411_v36 = vsel %vm532_vm3, %v1409_v31, 0.0  ;;  %v1463_v37 = vpop.permute.xlu0 %1462 }
 0x3ea   : > { %v1359_v40 = vadd.f32 %v1358_v32, %v1357_v27  ;;  %v1413_v41 = vadd.f32 %v1412_v34, %v1411_v36  ;;  %v1458_v35 = vpop.permute.xlu1 %1457  ;;  %v1466_v11 = vmul.f32 %v1463_v37, %v1451_v57  ;;  %v1305_v44 = vadd.f32 %v1304_v16, %v1303_v26 }
 0x3eb   : > { %v1465_v1 = vmul.f32 %v1458_v35, %v1450_v59  ;;  %v1139_v57 = vadd.f32 %v1138_v46, %v1137_v39  ;;  %v1251_v2 = vadd.f32 %v1250_v53, %v1249_v38 }
 0x3ec   : > { %v1360_v43 = vrot.slane %v1359_v40, 2  ;;  %v1414_v14 = vrot.slane %v1413_v41, 4  ;;  %v1468_v23 = vsel %vm532_vm3, %v1466_v11, 0.0  ;;  %v1306_v56 = vrot.slane %v1305_v44, 1 }
 0x3ed   : > { %v1467_v45 = vsel %vm532_vm3, %v1465_v1, 0.0  ;;  %v1477_v63 = vsel %vm1476_vm5, %v1083_v0, %v1139_v57 }
 0x3ee   : > { %v1361_v48 = vadd.f32 %v1360_v43, %v1359_v40  ;;  %v1415_v49 = vadd.f32 %v1414_v14, %v1413_v41  ;;  %v1469_v50 = vadd.f32 %v1468_v23, %v1467_v45  ;;  %v1307_v6 = vadd.f32 %v1306_v56, %v1305_v44  ;;  %v1512_v26 = vpop.permute.xlu1 %1511 }
 0x3ef   : > { %v1479_v10 = vsel %vm1478_vm6, %v1477_v63, %v1195_v61 }
 0x3f0   : > { %v1416_v54 = vrot.slane %v1415_v49, 2  ;;  %v1470_v55 = vrot.slane %v1469_v50, 4  ;;  %v1362_v58 = vrot.slane %v1361_v48, 1  ;;  %v1481_v13 = vsel %vm1480_vm7, %v1479_v10, %v1251_v2 }
 0x3f1   : > { %v1483_v17 = vsel %vm1482_vm8, %v1481_v13, %v1307_v6 }
 0x3f2   : > { %v1417_v59 = vadd.f32 %v1416_v54, %v1415_v49  ;;  %v1471_v60 = vadd.f32 %v1470_v55, %v1469_v50  ;;  %v1363_v8 = vadd.f32 %v1362_v58, %v1361_v48 }
 0x3f4   : > { %v1418_v4 = vrot.slane %v1417_v59, 1  ;;  %v1472_v5 = vrot.slane %v1471_v60, 2  ;;  %v1485_v47 = vsel %vm1484_vm9, %v1483_v17, %v1363_v8 }
 0x3f6   : > { %v1473_v9 = vadd.f32 %v1472_v5, %v1471_v60  ;;  %v1419_v3 = vadd.f32 %v1418_v4, %v1417_v59 }
 0x3f8   : > { %v1474_v18 = vrot.slane %v1473_v9, 1  ;;  %v1487_v20 = vsel %vm1486_vm10, %v1485_v47, %v1419_v3 }
 0x3fa   : > { %v1475_v19 = vadd.f32 %v1474_v18, %v1473_v9 }
 0x3fc   : > { %v1489_v21 = vsel %vm1488_vm11, %v1487_v20, %v1475_v19 }
 0x3fd   : > { %1490 = vst.msk [vmem:[#allocation6] sm:$0xff] %vm532_vm3, %v1489_v21 }
 0x404   : > { %v1493_v24 = vld [vmem:[#allocation6] sm:$0xff] }
 0x405   : > { %v1502_v25 = vadd.f32 %v1501_v22, %v1493_v24 }
 0x407   : > { %v1514_v27 = vmul.f32 %v1512_v26, %v1502_v25 }
 0x409   : > { %v1515_v28 = vpack.c.bf16 %v1514_v27, %v1514_v27 }
 0x40b   : > { %1868 = vmatmul.mubr.msk.bf16.vlgmr.msra.gmra.mrb[4].mxu1 %vm532_vm3, %v1515_v28 }
 0x4de   : > { %v1585_v42 = vpop.f32.mrb[4].mxu1 }
 0x4df   : > { %1591 = vst [vmem:[%s2594_s4] sm:$0xff] %v1585_v42  ;;  %v1869_v7 = vpop.f32.mrb[5].mxu1 }
 0x4e0   : > { %v1588_v29 = vpop.f32.mrb[6].mxu1 }
 0x4e1   : > { %2181 = shalt.err (!%p2178_p8)
}
 0x4e2   : > { %s2182_s3 = scalar_lea.hbm %s2819_s17, 128  ;;  %s2186_s18 = scalar_lea.hbm %s2923_s1, 512 }
 0x4e3   : > { %p2183_p12 = scmp.ne.s32.totalorder %s2819_s17, %s2182_s3  ;;  %p2187_p9 = scmp.lt.u32.totalorder %s2819_s17, %s2923_s1 }
 0x4e4   : > { %p2188_p6 = scmp.lt.u32.totalorder %s2186_s18, %s2182_s3  ;;  %p2190_p10 = scmp.lt.u32.totalorder %s2182_s3, %s2819_s17 }
 0x4e5   : > { %p2184_p4 = pnand %p2183_p12, %p2514_p3 }
 0x4e6   : > { %p2189_p0 = por %p2188_p6, %p2187_p9 }
 0x4e7   : > { %p2185_p13 = pneg %p2184_p4 }
 0x4e8   : > { %p2191_p5 = por %p2190_p10, %p2189_p0 }
 0x4ea   : > { %p2192_p7 = pnand %p2191_p5, %p2185_p13 }
 0x4ec   : > { %2195 = shalt.err (!%p2192_p7)
}
 0x4ed   : > { %1885 = dma.vmem_to_hbm [thread:$0]  (%p2514_p3), %s2821_s29, 128, %s2819_s17, %s1593_s21   ;;  %v1870_v30 = vpop.f32.mrb[7].mxu1 }
 0x4ee PF: > { %s2924_s30 = sld [smem:[#allocation22_spill]]  ;;  %s2925_s20 = sld [smem:[#allocation24_spill]] }
 0x4ef   : > { %p1912_p11 = scmp.ge.s32.totalorder %s2274_s16, 2 }
 0x4f4   : > { %s1620_s28 = sand.u32 1, %s2924_s30   ;;  %p2926_p1 = scmp.ne.s32.totalorder %s2925_s20, 0 }
 0x4f5   : > { %s1621_s22 = scalar_lea.sflag [#allocation11], %s1620_s28 }
 0x4f6   : > { %p1902_p2 = pnand %p1912_p11, %p2926_p1 }
 0x4f8   : > { %2241 = dma.done.wait (!%p1902_p2), %s1621_s22, 128  }
 0x4f9   : > { %2243 = vsyncadd (!%p1902_p2), %s1621_s22, 4294967168  ;;  %s27_s16 = sadd.s32 1, %s2274_s16   ;;  %s2927_s30 = smov %s2250_s10 }
 0x4fa   : > { %p24_p8 = scmp.ge.s32.totalorder %s27_s16, 6   ;;  %s2928_s10 = smov %s2254_s11 }
 0x4fb   : > { %s2929_s11 = smov %s2531_s25  ;;  %s2930_s12 = smov %s2266_s14 }
 0x4fc   : > { %s2931_s13 = smov %s2270_s15  ;;  %s2932_s14 = smov %s2935_s7 }
 0x4fd   : > { %s2933_s15 = smov %s2939_s26  ;;  %26 = sbr.rel (!%p24_p8) target bundleno = 17 (0x11), region = 151 }
 0x504   :  { %1626 = vsyncpa [#allocation10], 1 }
 0x505   :  { %1628 = vsyncpa [#allocation10 + $0x1], 1 }
 0x506   :  { %1629 = vsyncpa [#allocation13], 1 }
 0x507   :  { %1630 = vsyncpa [#allocation16], 1 }
 0x508   :  { %1631 = vsyncpa [#allocation11], 1 }
 0x509   :  { %1633 = vsyncpa [#allocation11 + $0x1], 1 }

</bundles_post_ra>
